<compile_context>
chip_gen: v7x
topology: tpu7x:2x2x1
jax: 0.10.0
libtpu: 0.0.40
codegen_flags: <defaults>
</compile_context>

<pallas_src>
import functools

import numpy as np

import jax
import jax.numpy as jnp
from jax.experimental import pallas as pl
from jax.experimental.pallas import tpu as pltpu


# ------------------------------ fused kernel --------------------------------

def _encoder_kernel(
    # inputs
    video_ref,                     # (Bb, T, E)
    bias_ref,                      # (Bb, T)   additive key-padding bias
    pre_w_ref,                     # (E, D)
    ln_vi_g_ref, ln_vi_b_ref,      # (1, D)
    ln_pi_g_ref, ln_pi_b_ref,      # (1, D)
    pos_ref,                       # (T, D)
    ln1_g_ref, ln1_b_ref,          # (1, 1, D)   (layer-indexed)
    in_w_ref,                      # (1, D, 3D)
    in_b_ref,                      # (1, 1, 3D)
    out_w_ref,                     # (1, D, D)
    out_b_ref,                     # (1, 1, D)
    ln2_g_ref, ln2_b_ref,          # (1, 1, D)
    fc_w_ref,                      # (1, D, 4D)
    fc_b_ref,                      # (1, 1, 4D)
    cp_w_ref,                      # (1, 4D, D)
    cp_b_ref,                      # (1, 1, D)
    ln_post_g_ref, ln_post_b_ref,  # (1, D)
    exo_w_ref,                     # (D, E)
    exo_b_ref,                     # (1, E)
    # outputs
    low_ref,                       # (Bb, T, D)
    high_ref,                      # (Bb, T, E)
    # scratch (persist across the layer grid axis)
    x_sc,                          # (Bb*T, D) f32 residual stream
    sum_sc,                        # (Bb*T, D) f32 running layer-output sum
    *, heads, eps, num_layers):
    l = pl.program_id(1)
    Bb, T, E = video_ref.shape
    D = pre_w_ref.shape[1]
    Dh = D // heads
    M = Bb * T
    scale = 1.0 / (Dh ** 0.5)

    def layernorm(x, g, b):
        mu = jnp.mean(x, axis=-1, keepdims=True)
        var = jnp.mean(jnp.square(x - mu), axis=-1, keepdims=True)
        return (x - mu) * jax.lax.rsqrt(var + eps) * g + b

    # ---- layer 0: pre-proj + ln_video_init + ln(pos); init residual & sum ----
    @pl.when(l == 0)
    def _():
        v = video_ref[...].reshape(M, E)
        h0 = jnp.dot(v, pre_w_ref[...], preferred_element_type=jnp.float32)
        h0 = layernorm(h0, ln_vi_g_ref[...], ln_vi_b_ref[...])
        pos = layernorm(pos_ref[...], ln_pi_g_ref[...], ln_pi_b_ref[...])
        x0 = h0.reshape(Bb, T, D) + pos[None, :, :]
        x_sc[...] = x0.reshape(M, D)
        sum_sc[...] = jnp.zeros_like(sum_sc)

    x = x_sc[...]                                           # (M, D)

    # ---- self-attention sub-block (pre-LN, key_padding_mask on keys) ----
    h = layernorm(x, ln1_g_ref[0], ln1_b_ref[0])
    qkv = jnp.dot(h, in_w_ref[0], preferred_element_type=jnp.float32) + in_b_ref[0]
    w_out = out_w_ref[0]                                    # (D, D)
    bias = bias_ref[...][:, None, :]                        # (Bb, 1, T), bcast heads+queries
    attn = jnp.zeros((M, D), jnp.float32)
    for hh in range(heads):
        lo = hh * Dh
        qh = qkv[:, lo:lo + Dh].reshape(Bb, T, Dh)
        kh = qkv[:, D + lo:D + lo + Dh].reshape(Bb, T, Dh)
        vh = qkv[:, 2 * D + lo:2 * D + lo + Dh].reshape(Bb, T, Dh)
        s = jnp.einsum("bqd,bkd->bqk", qh, kh,
                       preferred_element_type=jnp.float32) * scale + bias
        m = jnp.max(s, axis=-1, keepdims=True)
        p = jnp.exp(s - m)
        p = p * pl.reciprocal(jnp.sum(p, axis=-1, keepdims=True), approx=True)
        oh = jnp.einsum("bqk,bkd->bqd", p, vh, preferred_element_type=jnp.float32)
        # fold the head merge into out_proj: concat_h(o_h) @ W == sum_h o_h @ W[h-rows]
        attn = attn + jnp.dot(oh.reshape(M, Dh), w_out[lo:lo + Dh, :],
                              preferred_element_type=jnp.float32)
    x = x + attn + out_b_ref[0]

    # ---- MLP sub-block (QuickGELU) ----
    h2 = layernorm(x, ln2_g_ref[0], ln2_b_ref[0])
    h2 = jnp.dot(h2, fc_w_ref[0], preferred_element_type=jnp.float32) + fc_b_ref[0]
    h2 = h2 * jax.nn.sigmoid(1.702 * h2)
    h2 = jnp.dot(h2, cp_w_ref[0], preferred_element_type=jnp.float32) + cp_b_ref[0]
    x = x + h2
    x_sc[...] = x

    # ---- accumulate this layer's hidden state for the final mean ----
    @pl.when(l < num_layers - 1)
    def _():
        sum_sc[...] = sum_sc[...] + x

    # ---- last layer: ln_post, mean over layers, exo projection, write outputs ----
    @pl.when(l == num_layers - 1)
    def _():
        x_post = layernorm(x, ln_post_g_ref[...], ln_post_b_ref[...])
        low = (sum_sc[...] + x_post) * (1.0 / num_layers)
        low_ref[...] = low.reshape(Bb, T, D).astype(low_ref.dtype)
        high = jnp.dot(low, exo_w_ref[...],
                       preferred_element_type=jnp.float32) + exo_b_ref[...]
        high_ref[...] = high.reshape(Bb, T, E).astype(high_ref.dtype)


# --------------------------- parameter construction -------------------------

def init_params(key, cfg):
    D, E, L = cfg["feature_dim"], cfg["video_embed_dim"], cfg["num_encoder_layers"]
    attn_std = D ** -0.5
    proj_std = (D ** -0.5) * ((2 * L) ** -0.5)
    fc_std = (2 * D) ** -0.5
    ks = jax.random.split(key, 7)
    return {
        "pre_proj_w": 0.01 * jax.random.normal(ks[0], (E, D), jnp.float32),
        "ln_video_init_g": jnp.ones((1, D), jnp.float32),
        "ln_video_init_b": jnp.zeros((1, D), jnp.float32),
        "ln_position_init_g": jnp.ones((1, D), jnp.float32),
        "ln_position_init_b": jnp.zeros((1, D), jnp.float32),
        "ln_post_g": jnp.ones((1, D), jnp.float32),
        "ln_post_b": jnp.zeros((1, D), jnp.float32),
        "temporal_pos_embed": 0.01 * jax.random.normal(ks[1], (1024, D), jnp.float32),
        "exo_w": 0.02 * jax.random.normal(ks[2], (D, E), jnp.float32),
        "exo_b": jnp.zeros((1, E), jnp.float32),
        # per-layer weights stacked along a leading L axis for the fused kernel
        "ln_1_g": jnp.ones((L, 1, D), jnp.float32),
        "ln_1_b": jnp.zeros((L, 1, D), jnp.float32),
        "ln_2_g": jnp.ones((L, 1, D), jnp.float32),
        "ln_2_b": jnp.zeros((L, 1, D), jnp.float32),
        "in_proj_w": attn_std * jax.random.normal(ks[3], (L, D, 3 * D), jnp.float32),
        "in_proj_b": jnp.zeros((L, 1, 3 * D), jnp.float32),
        "out_proj_w": proj_std * jax.random.normal(ks[4], (L, D, D), jnp.float32),
        "out_proj_b": jnp.zeros((L, 1, D), jnp.float32),
        "c_fc_w": fc_std * jax.random.normal(ks[5], (L, D, 4 * D), jnp.float32),
        "c_fc_b": jnp.zeros((L, 1, 4 * D), jnp.float32),
        "c_proj_w": proj_std * jax.random.normal(ks[6], (L, 4 * D, D), jnp.float32),
        "c_proj_b": jnp.zeros((L, 1, D), jnp.float32),
    }


# --------------------------------- forward ----------------------------------

def view_invariant_encoder_forward(params, video_embed, lang_embed, video_padding_mask,
                                   lang_padding_mask, egocentric_video_embed, cfg,
                                   block_b=None):
    del lang_embed, lang_padding_mask          # unused by the video-branch forward
    assert egocentric_video_embed is not None  # use_distill_nce_loss branch
    B, T, E = video_embed.shape
    D, H, L = cfg["feature_dim"], cfg["heads"], cfg["num_encoder_layers"]
    assert D % H == 0

    if block_b is None:
        block_b = B                # whole batch per grid block at these sizes
    assert B % block_b == 0
    nb = B // block_b

    # key_padding_mask (True = padded key) -> additive bias, broadcast over heads in-kernel
    key_bias = jnp.where(video_padding_mask, -1e30, 0.0).astype(jnp.float32)   # (B, T)
    pos = params["temporal_pos_embed"][0:T]                                    # (T, D)

    inputs_and_specs = [
        (video_embed.astype(jnp.float32),
         pl.BlockSpec((block_b, T, E), lambda b, l: (b, 0, 0))),
        (key_bias, pl.BlockSpec((block_b, T), lambda b, l: (b, 0))),
        (params["pre_proj_w"], pl.BlockSpec((E, D), lambda b, l: (0, 0))),
        (params["ln_video_init_g"], pl.BlockSpec((1, D), lambda b, l: (0, 0))),
        (params["ln_video_init_b"], pl.BlockSpec((1, D), lambda b, l: (0, 0))),
        (params["ln_position_init_g"], pl.BlockSpec((1, D), lambda b, l: (0, 0))),
        (params["ln_position_init_b"], pl.BlockSpec((1, D), lambda b, l: (0, 0))),
        (pos, pl.BlockSpec((T, D), lambda b, l: (0, 0))),
        (params["ln_1_g"], pl.BlockSpec((1, 1, D), lambda b, l: (l, 0, 0))),
        (params["ln_1_b"], pl.BlockSpec((1, 1, D), lambda b, l: (l, 0, 0))),
        (params["in_proj_w"], pl.BlockSpec((1, D, 3 * D), lambda b, l: (l, 0, 0))),
        (params["in_proj_b"], pl.BlockSpec((1, 1, 3 * D), lambda b, l: (l, 0, 0))),
        (params["out_proj_w"], pl.BlockSpec((1, D, D), lambda b, l: (l, 0, 0))),
        (params["out_proj_b"], pl.BlockSpec((1, 1, D), lambda b, l: (l, 0, 0))),
        (params["ln_2_g"], pl.BlockSpec((1, 1, D), lambda b, l: (l, 0, 0))),
        (params["ln_2_b"], pl.BlockSpec((1, 1, D), lambda b, l: (l, 0, 0))),
        (params["c_fc_w"], pl.BlockSpec((1, D, 4 * D), lambda b, l: (l, 0, 0))),
        (params["c_fc_b"], pl.BlockSpec((1, 1, 4 * D), lambda b, l: (l, 0, 0))),
        (params["c_proj_w"], pl.BlockSpec((1, 4 * D, D), lambda b, l: (l, 0, 0))),
        (params["c_proj_b"], pl.BlockSpec((1, 1, D), lambda b, l: (l, 0, 0))),
        (params["ln_post_g"], pl.BlockSpec((1, D), lambda b, l: (0, 0))),
        (params["ln_post_b"], pl.BlockSpec((1, D), lambda b, l: (0, 0))),
        (params["exo_w"], pl.BlockSpec((D, E), lambda b, l: (0, 0))),
        (params["exo_b"], pl.BlockSpec((1, E), lambda b, l: (0, 0))),
    ]
    arrays = [a for a, _ in inputs_and_specs]
    in_specs = [s for _, s in inputs_and_specs]

    grid_spec = pltpu.PrefetchScalarGridSpec(
        num_scalar_prefetch=0,
        grid=(nb, L),
        in_specs=in_specs,
        out_specs=(
            pl.BlockSpec((block_b, T, D), lambda b, l: (b, 0, 0)),
            pl.BlockSpec((block_b, T, E), lambda b, l: (b, 0, 0)),
        ),
        scratch_shapes=[
            pltpu.VMEM((block_b * T, D), jnp.float32),   # residual stream x
            pltpu.VMEM((block_b * T, D), jnp.float32),   # running layer sum
        ],
    )

    low, high = pl.pallas_call(
        functools.partial(_encoder_kernel, heads=H, eps=1e-5, num_layers=L),
        out_shape=(
            jax.ShapeDtypeStruct((B, T, D), jnp.float32),
            jax.ShapeDtypeStruct((B, T, E), jnp.float32),
        ),
        grid_spec=grid_spec,
        compiler_params=pltpu.CompilerParams(
            dimension_semantics=("parallel", "arbitrary")),
    )(*arrays)

    return {"low_dim_features": low, "high_dim_features": high}


# ------------------------- pure-JAX reference (check) ------------------------

def _reference_forward(params, video_embed, video_padding_mask, cfg):
    B, T, E = video_embed.shape
    D, H, L = cfg["feature_dim"], cfg["heads"], cfg["num_encoder_layers"]
    Dh = D // H
    eps = 1e-5
    hp = jax.lax.Precision.HIGHEST

    def ln(x, g, b):
        mu = jnp.mean(x, -1, keepdims=True)
        var = jnp.mean(jnp.square(x - mu), -1, keepdims=True)
        return (x - mu) * jax.lax.rsqrt(var + eps) * g + b

    x = jnp.einsum("bte,ed->btd", video_embed, params["pre_proj_w"], precision=hp)
    x = ln(x, params["ln_video_init_g"], params["ln_video_init_b"])
    pos = ln(params["temporal_pos_embed"][0:T],
             params["ln_position_init_g"], params["ln_position_init_b"])
    x = x + pos[None]
    bias = jnp.where(video_padding_mask, -1e30, 0.0)[:, None, None, :]   # (B,1,1,T)

    outs = []
    for l in range(L):
        h = ln(x, params["ln_1_g"][l], params["ln_1_b"][l])
        qkv = jnp.einsum("btd,de->bte", h, params["in_proj_w"][l],
                         precision=hp) + params["in_proj_b"][l]
        q, k, v = jnp.split(qkv, 3, axis=-1)
        q = q.reshape(B, T, H, Dh).transpose(0, 2, 1, 3)
        k = k.reshape(B, T, H, Dh).transpose(0, 2, 1, 3)
        v = v.reshape(B, T, H, Dh).transpose(0, 2, 1, 3)
        s = jnp.einsum("bhqd,bhkd->bhqk", q, k, precision=hp) / (Dh ** 0.5) + bias
        p = jax.nn.softmax(s, axis=-1)
        o = jnp.einsum("bhqk,bhkd->bhqd", p, v,
                       precision=hp).transpose(0, 2, 1, 3).reshape(B, T, D)
        o = jnp.einsum("btd,de->bte", o, params["out_proj_w"][l],
                       precision=hp) + params["out_proj_b"][l]
        x = x + o
        h2 = ln(x, params["ln_2_g"][l], params["ln_2_b"][l])
        h2 = jnp.einsum("btd,de->bte", h2, params["c_fc_w"][l],
                        precision=hp) + params["c_fc_b"][l]
        h2 = h2 * jax.nn.sigmoid(1.702 * h2)
        h2 = jnp.einsum("btd,de->bte", h2, params["c_proj_w"][l],
                        precision=hp) + params["c_proj_b"][l]
        x = x + h2
        outs.append(x)
    outs[-1] = ln(outs[-1], params["ln_post_g"], params["ln_post_b"])
    low = jnp.mean(jnp.stack(outs, 1), axis=1)
    high = jnp.einsum("btd,de->bte", low, params["exo_w"],
                      precision=hp) + params["exo_b"]
    return low, high


# ----------------------------------- main ------------------------------------

if __name__ == "__main__":
    cfg = dict(video_embed_dim=128, feature_dim=64, num_encoder_layers=2, heads=8)
    B, T = 2, 8

    key = jax.random.PRNGKey(0)
    kp, k1, k2 = jax.random.split(key, 3)
    params = init_params(kp, cfg)

    video_embed = jax.random.normal(k1, (B, T, cfg["video_embed_dim"]), jnp.float32)
    egocentric_video_embed = jax.random.normal(k2, (B, T, cfg["video_embed_dim"]), jnp.float32)
    video_padding_mask = jnp.zeros((B, T), jnp.bool_).at[:, -1].set(True)   # True = padded

    out = view_invariant_encoder_forward(params, video_embed, None, video_padding_mask,
                                         None, egocentric_video_embed, cfg)
    jax.block_until_ready(out)
    assert out["low_dim_features"].shape == (B, T, cfg["feature_dim"])
    assert out["high_dim_features"].shape == (B, T, cfg["video_embed_dim"])

    # loose-tolerance check vs pure-JAX reference (approx softmax reciprocal + MXU
    # accumulation order => not bit-exact).
    ref_low, ref_high = _reference_forward(params, video_embed, video_padding_mask, cfg)
    np.testing.assert_allclose(np.asarray(out["low_dim_features"]), np.asarray(ref_low),
                               rtol=2e-2, atol=2e-2)
    np.testing.assert_allclose(np.asarray(out["high_dim_features"]), np.asarray(ref_high),
                               rtol=2e-2, atol=2e-2)
    print("KERNEL_OK")
</pallas_src>

<mosaic_0001>
module attributes {stable_mosaic.version = 11 : i64} {
  func.func @_encoder_kernel(%arg0: i32, %arg1: i32, %arg2: memref<2x8x128xf32, #tpu.memory_space<vmem>>, %arg3: memref<2x8xf32, #tpu.memory_space<vmem>>, %arg4: memref<128x64xf32, #tpu.memory_space<vmem>>, %arg5: memref<1x64xf32, #tpu.memory_space<vmem>>, %arg6: memref<1x64xf32, #tpu.memory_space<vmem>>, %arg7: memref<1x64xf32, #tpu.memory_space<vmem>>, %arg8: memref<1x64xf32, #tpu.memory_space<vmem>>, %arg9: memref<8x64xf32, #tpu.memory_space<vmem>>, %arg10: memref<1x1x64xf32, #tpu.memory_space<vmem>>, %arg11: memref<1x1x64xf32, #tpu.memory_space<vmem>>, %arg12: memref<1x64x192xf32, #tpu.memory_space<vmem>>, %arg13: memref<1x1x192xf32, #tpu.memory_space<vmem>>, %arg14: memref<1x64x64xf32, #tpu.memory_space<vmem>>, %arg15: memref<1x1x64xf32, #tpu.memory_space<vmem>>, %arg16: memref<1x1x64xf32, #tpu.memory_space<vmem>>, %arg17: memref<1x1x64xf32, #tpu.memory_space<vmem>>, %arg18: memref<1x64x256xf32, #tpu.memory_space<vmem>>, %arg19: memref<1x1x256xf32, #tpu.memory_space<vmem>>, %arg20: memref<1x256x64xf32, #tpu.memory_space<vmem>>, %arg21: memref<1x1x64xf32, #tpu.memory_space<vmem>>, %arg22: memref<1x64xf32, #tpu.memory_space<vmem>>, %arg23: memref<1x64xf32, #tpu.memory_space<vmem>>, %arg24: memref<64x128xf32, #tpu.memory_space<vmem>>, %arg25: memref<1x128xf32, #tpu.memory_space<vmem>>, %arg26: memref<2x8x64xf32, #tpu.memory_space<vmem>>, %arg27: memref<2x8x128xf32, #tpu.memory_space<vmem>>, %arg28: memref<16x64xf32, #tpu.memory_space<vmem>>, %arg29: memref<16x64xf32, #tpu.memory_space<vmem>>) attributes {dimension_semantics = [#tpu.dimension_semantics<parallel>, #tpu.dimension_semantics<arbitrary>], iteration_bounds = array<i64: 1, 2>, scalar_prefetch = 0 : i64, scratch_operands = 2 : i64, tpu.core_type = #tpu.core_type<tc>, window_params = [{transform_indices = @transform_0, window_bounds = array<i64: 2, 8, 128>}, {transform_indices = @transform_1, window_bounds = array<i64: 2, 8>}, {pipeline_mode = #tpu.pipeline_mode<synchronous>, transform_indices = @transform_2, window_bounds = array<i64: 128, 64>}, {pipeline_mode = #tpu.pipeline_mode<synchronous>, transform_indices = @transform_3, window_bounds = array<i64: 1, 64>}, {pipeline_mode = #tpu.pipeline_mode<synchronous>, transform_indices = @transform_4, window_bounds = array<i64: 1, 64>}, {pipeline_mode = #tpu.pipeline_mode<synchronous>, transform_indices = @transform_5, window_bounds = array<i64: 1, 64>}, {pipeline_mode = #tpu.pipeline_mode<synchronous>, transform_indices = @transform_6, window_bounds = array<i64: 1, 64>}, {pipeline_mode = #tpu.pipeline_mode<synchronous>, transform_indices = @transform_7, window_bounds = array<i64: 8, 64>}, {transform_indices = @transform_8, window_bounds = array<i64: 1, 1, 64>}, {transform_indices = @transform_9, window_bounds = array<i64: 1, 1, 64>}, {transform_indices = @transform_10, window_bounds = array<i64: 1, 64, 192>}, {transform_indices = @transform_11, window_bounds = array<i64: 1, 1, 192>}, {transform_indices = @transform_12, window_bounds = array<i64: 1, 64, 64>}, {transform_indices = @transform_13, window_bounds = array<i64: 1, 1, 64>}, {transform_indices = @transform_14, window_bounds = array<i64: 1, 1, 64>}, {transform_indices = @transform_15, window_bounds = array<i64: 1, 1, 64>}, {transform_indices = @transform_16, window_bounds = array<i64: 1, 64, 256>}, {transform_indices = @transform_17, window_bounds = array<i64: 1, 1, 256>}, {transform_indices = @transform_18, window_bounds = array<i64: 1, 256, 64>}, {transform_indices = @transform_19, window_bounds = array<i64: 1, 1, 64>}, {pipeline_mode = #tpu.pipeline_mode<synchronous>, transform_indices = @transform_20, window_bounds = array<i64: 1, 64>}, {pipeline_mode = #tpu.pipeline_mode<synchronous>, transform_indices = @transform_21, window_bounds = array<i64: 1, 64>}, {pipeline_mode = #tpu.pipeline_mode<synchronous>, transform_indices = @transform_22, window_bounds = array<i64: 64, 128>}, {pipeline_mode = #tpu.pipeline_mode<synchronous>, transform_indices = @transform_23, window_bounds = array<i64: 1, 128>}, {transform_indices = @transform_24, window_bounds = array<i64: 2, 8, 64>}, {transform_indices = @transform_25, window_bounds = array<i64: 2, 8, 128>}]} {
    %c0_i32 = arith.constant 0 : i32
    %0 = arith.cmpi eq, %arg1, %c0_i32 : i32
    %1 = arith.extui %0 : i1 to i32
    %c0_i32_0 = arith.constant 0 : i32
    %2 = arith.cmpi ne, %1, %c0_i32_0 : i32
    scf.if %2 {
      %c0_108 = arith.constant 0 : index
      %c0_109 = arith.constant 0 : index
      %c0_110 = arith.constant 0 : index
      %311 = vector.load %arg2[%c0_108, %c0_109, %c0_110] : memref<2x8x128xf32, #tpu.memory_space<vmem>>, vector<2x8x128xf32>
      %312 = vector.shape_cast %311 : vector<2x8x128xf32> to vector<16x128xf32>
      %c0_111 = arith.constant 0 : index
      %c0_112 = arith.constant 0 : index
      %313 = vector.load %arg4[%c0_111, %c0_112] : memref<128x64xf32, #tpu.memory_space<vmem>>, vector<128x64xf32>
      %cst_113 = arith.constant dense<0.000000e+00> : vector<16x64xf32>
      %314 = tpu.matmul %312, %313, %cst_113 {dimension_numbers = #tpu.dot_dimension_numbers<[1], [0], [0], [1], [0, 0, 1, 1], [], []>} : vector<16x128xf32>, vector<128x64xf32>, vector<16x64xf32> -> vector<16x64xf32>
      %c0_114 = arith.constant 0 : index
      %c0_115 = arith.constant 0 : index
      %315 = vector.load %arg5[%c0_114, %c0_115] : memref<1x64xf32, #tpu.memory_space<vmem>>, vector<1x64xf32>
      %c0_116 = arith.constant 0 : index
      %c0_117 = arith.constant 0 : index
      %316 = vector.load %arg6[%c0_116, %c0_117] : memref<1x64xf32, #tpu.memory_space<vmem>>, vector<1x64xf32>
      %cst_118 = arith.constant dense<0.000000e+00> : vector<16xf32>
      %317 = vector.multi_reduction <add>, %314, %cst_118 [1] : vector<16x64xf32> to vector<16xf32>
      %318 = vector.shape_cast %317 : vector<16xf32> to vector<16x1xf32>
      %cst_119 = arith.constant 6.400000e+01 : f32
      %319 = vector.broadcast %cst_119 : f32 to vector<16x1xf32>
      %320 = arith.divf %318, %319 : vector<16x1xf32>
      %321 = vector.broadcast %320 : vector<16x1xf32> to vector<16x64xf32>
      %322 = arith.subf %314, %321 : vector<16x64xf32>
      %323 = arith.mulf %322, %322 : vector<16x64xf32>
      %cst_120 = arith.constant dense<0.000000e+00> : vector<16xf32>
      %324 = vector.multi_reduction <add>, %323, %cst_120 [1] : vector<16x64xf32> to vector<16xf32>
      %325 = vector.shape_cast %324 : vector<16xf32> to vector<16x1xf32>
      %cst_121 = arith.constant 6.400000e+01 : f32
      %326 = vector.broadcast %cst_121 : f32 to vector<16x1xf32>
      %327 = arith.divf %325, %326 : vector<16x1xf32>
      %328 = vector.broadcast %320 : vector<16x1xf32> to vector<16x64xf32>
      %329 = arith.subf %314, %328 : vector<16x64xf32>
      %cst_122 = arith.constant 9.99999974E-6 : f32
      %330 = vector.broadcast %cst_122 : f32 to vector<16x1xf32>
      %331 = arith.addf %327, %330 : vector<16x1xf32>
      %332 = math.rsqrt %331 : vector<16x1xf32>
      %333 = vector.broadcast %332 : vector<16x1xf32> to vector<16x64xf32>
      %334 = arith.mulf %329, %333 : vector<16x64xf32>
      %335 = vector.broadcast %315 : vector<1x64xf32> to vector<16x64xf32>
      %336 = arith.mulf %334, %335 : vector<16x64xf32>
      %337 = vector.broadcast %316 : vector<1x64xf32> to vector<16x64xf32>
      %338 = arith.addf %336, %337 : vector<16x64xf32>
      %c0_123 = arith.constant 0 : index
      %c0_124 = arith.constant 0 : index
      %339 = vector.load %arg9[%c0_123, %c0_124] : memref<8x64xf32, #tpu.memory_space<vmem>>, vector<8x64xf32>
      %c0_125 = arith.constant 0 : index
      %c0_126 = arith.constant 0 : index
      %340 = vector.load %arg7[%c0_125, %c0_126] : memref<1x64xf32, #tpu.memory_space<vmem>>, vector<1x64xf32>
      %c0_127 = arith.constant 0 : index
      %c0_128 = arith.constant 0 : index
      %341 = vector.load %arg8[%c0_127, %c0_128] : memref<1x64xf32, #tpu.memory_space<vmem>>, vector<1x64xf32>
      %cst_129 = arith.constant dense<0.000000e+00> : vector<8xf32>
      %342 = vector.multi_reduction <add>, %339, %cst_129 [1] : vector<8x64xf32> to vector<8xf32>
      %343 = vector.shape_cast %342 : vector<8xf32> to vector<8x1xf32>
      %cst_130 = arith.constant 6.400000e+01 : f32
      %344 = vector.broadcast %cst_130 : f32 to vector<8x1xf32>
      %345 = arith.divf %343, %344 : vector<8x1xf32>
      %346 = vector.broadcast %345 : vector<8x1xf32> to vector<8x64xf32>
      %347 = arith.subf %339, %346 : vector<8x64xf32>
      %348 = arith.mulf %347, %347 : vector<8x64xf32>
      %cst_131 = arith.constant dense<0.000000e+00> : vector<8xf32>
      %349 = vector.multi_reduction <add>, %348, %cst_131 [1] : vector<8x64xf32> to vector<8xf32>
      %350 = vector.shape_cast %349 : vector<8xf32> to vector<8x1xf32>
      %cst_132 = arith.constant 6.400000e+01 : f32
      %351 = vector.broadcast %cst_132 : f32 to vector<8x1xf32>
      %352 = arith.divf %350, %351 : vector<8x1xf32>
      %353 = vector.broadcast %345 : vector<8x1xf32> to vector<8x64xf32>
      %354 = arith.subf %339, %353 : vector<8x64xf32>
      %cst_133 = arith.constant 9.99999974E-6 : f32
      %355 = vector.broadcast %cst_133 : f32 to vector<8x1xf32>
      %356 = arith.addf %352, %355 : vector<8x1xf32>
      %357 = math.rsqrt %356 : vector<8x1xf32>
      %358 = vector.broadcast %357 : vector<8x1xf32> to vector<8x64xf32>
      %359 = arith.mulf %354, %358 : vector<8x64xf32>
      %360 = vector.broadcast %340 : vector<1x64xf32> to vector<8x64xf32>
      %361 = arith.mulf %359, %360 : vector<8x64xf32>
      %362 = vector.broadcast %341 : vector<1x64xf32> to vector<8x64xf32>
      %363 = arith.addf %361, %362 : vector<8x64xf32>
      %364 = vector.shape_cast %338 : vector<16x64xf32> to vector<2x8x64xf32>
      %365 = vector.shape_cast %363 : vector<8x64xf32> to vector<1x8x64xf32>
      %366 = vector.broadcast %365 : vector<1x8x64xf32> to vector<2x8x64xf32>
      %367 = arith.addf %364, %366 : vector<2x8x64xf32>
      %368 = vector.shape_cast %367 : vector<2x8x64xf32> to vector<16x64xf32>
      %c0_134 = arith.constant 0 : index
      %c0_135 = arith.constant 0 : index
      %369 = vector.load %arg28[%c0_134, %c0_135] : memref<16x64xf32, #tpu.memory_space<vmem>>, vector<16x64xf32>
      tpu.vector_store %arg28[%c0_134, %c0_135], %368 {strides = array<i32>} : memref<16x64xf32, #tpu.memory_space<vmem>>, vector<16x64xf32>,
      %cst_136 = arith.constant 0.000000e+00 : f32
      %370 = vector.broadcast %cst_136 : f32 to vector<16x64xf32>
      %c0_137 = arith.constant 0 : index
      %c0_138 = arith.constant 0 : index
      %371 = vector.load %arg29[%c0_137, %c0_138] : memref<16x64xf32, #tpu.memory_space<vmem>>, vector<16x64xf32>
      tpu.vector_store %arg29[%c0_137, %c0_138], %370 {strides = array<i32>} : memref<16x64xf32, #tpu.memory_space<vmem>>, vector<16x64xf32>,
    } else {
    }
    %c0 = arith.constant 0 : index
    %c0_1 = arith.constant 0 : index
    %3 = vector.load %arg28[%c0, %c0_1] : memref<16x64xf32, #tpu.memory_space<vmem>>, vector<16x64xf32>
    %c0_2 = arith.constant 0 : index
    %c0_3 = arith.constant 0 : index
    %c0_4 = arith.constant 0 : index
    %4 = vector.load %arg10[%c0_2, %c0_3, %c0_4] : memref<1x1x64xf32, #tpu.memory_space<vmem>>, vector<1x1x64xf32>
    %5 = vector.shape_cast %4 : vector<1x1x64xf32> to vector<1x64xf32>
    %c0_5 = arith.constant 0 : index
    %c0_6 = arith.constant 0 : index
    %c0_7 = arith.constant 0 : index
    %6 = vector.load %arg11[%c0_5, %c0_6, %c0_7] : memref<1x1x64xf32, #tpu.memory_space<vmem>>, vector<1x1x64xf32>
    %7 = vector.shape_cast %6 : vector<1x1x64xf32> to vector<1x64xf32>
    %cst = arith.constant dense<0.000000e+00> : vector<16xf32>
    %8 = vector.multi_reduction <add>, %3, %cst [1] : vector<16x64xf32> to vector<16xf32>
    %9 = vector.shape_cast %8 : vector<16xf32> to vector<16x1xf32>
    %cst_8 = arith.constant 6.400000e+01 : f32
    %10 = vector.broadcast %cst_8 : f32 to vector<16x1xf32>
    %11 = arith.divf %9, %10 : vector<16x1xf32>
    %12 = vector.broadcast %11 : vector<16x1xf32> to vector<16x64xf32>
    %13 = arith.subf %3, %12 : vector<16x64xf32>
    %14 = arith.mulf %13, %13 : vector<16x64xf32>
    %cst_9 = arith.constant dense<0.000000e+00> : vector<16xf32>
    %15 = vector.multi_reduction <add>, %14, %cst_9 [1] : vector<16x64xf32> to vector<16xf32>
    %16 = vector.shape_cast %15 : vector<16xf32> to vector<16x1xf32>
    %cst_10 = arith.constant 6.400000e+01 : f32
    %17 = vector.broadcast %cst_10 : f32 to vector<16x1xf32>
    %18 = arith.divf %16, %17 : vector<16x1xf32>
    %19 = vector.broadcast %11 : vector<16x1xf32> to vector<16x64xf32>
    %20 = arith.subf %3, %19 : vector<16x64xf32>
    %cst_11 = arith.constant 9.99999974E-6 : f32
    %21 = vector.broadcast %cst_11 : f32 to vector<16x1xf32>
    %22 = arith.addf %18, %21 : vector<16x1xf32>
    %23 = math.rsqrt %22 : vector<16x1xf32>
    %24 = vector.broadcast %23 : vector<16x1xf32> to vector<16x64xf32>
    %25 = arith.mulf %20, %24 : vector<16x64xf32>
    %26 = vector.broadcast %5 : vector<1x64xf32> to vector<16x64xf32>
    %27 = arith.mulf %25, %26 : vector<16x64xf32>
    %28 = vector.broadcast %7 : vector<1x64xf32> to vector<16x64xf32>
    %29 = arith.addf %27, %28 : vector<16x64xf32>
    %c0_12 = arith.constant 0 : index
    %c0_13 = arith.constant 0 : index
    %c0_14 = arith.constant 0 : index
    %30 = vector.load %arg12[%c0_12, %c0_13, %c0_14] : memref<1x64x192xf32, #tpu.memory_space<vmem>>, vector<1x64x192xf32>
    %31 = vector.shape_cast %30 : vector<1x64x192xf32> to vector<64x192xf32>
    %cst_15 = arith.constant dense<0.000000e+00> : vector<16x192xf32>
    %32 = tpu.matmul %29, %31, %cst_15 {dimension_numbers = #tpu.dot_dimension_numbers<[1], [0], [0], [1], [0, 0, 1, 1], [], []>} : vector<16x64xf32>, vector<64x192xf32>, vector<16x192xf32> -> vector<16x192xf32>
    %c0_16 = arith.constant 0 : index
    %c0_17 = arith.constant 0 : index
    %c0_18 = arith.constant 0 : index
    %33 = vector.load %arg13[%c0_16, %c0_17, %c0_18] : memref<1x1x192xf32, #tpu.memory_space<vmem>>, vector<1x1x192xf32>
    %34 = vector.shape_cast %33 : vector<1x1x192xf32> to vector<1x192xf32>
    %35 = vector.broadcast %34 : vector<1x192xf32> to vector<16x192xf32>
    %36 = arith.addf %32, %35 : vector<16x192xf32>
    %c0_19 = arith.constant 0 : index
    %c0_20 = arith.constant 0 : index
    %c0_21 = arith.constant 0 : index
    %37 = vector.load %arg14[%c0_19, %c0_20, %c0_21] : memref<1x64x64xf32, #tpu.memory_space<vmem>>, vector<1x64x64xf32>
    %38 = vector.shape_cast %37 : vector<1x64x64xf32> to vector<64x64xf32>
    %c0_22 = arith.constant 0 : index
    %c0_23 = arith.constant 0 : index
    %39 = vector.load %arg3[%c0_22, %c0_23] : memref<2x8xf32, #tpu.memory_space<vmem>>, vector<2x8xf32>
    %40 = vector.shape_cast %39 : vector<2x8xf32> to vector<2x1x8xf32>
    %cst_24 = arith.constant 0.000000e+00 : f32
    %41 = vector.broadcast %cst_24 : f32 to vector<16x64xf32>
    %42 = vector.extract_strided_slice %36 {offsets = [0, 0], sizes = [16, 8], strides = [1, 1]} : vector<16x192xf32> to vector<16x8xf32>
    %43 = vector.shape_cast %42 : vector<16x8xf32> to vector<2x8x8xf32>
    %44 = vector.extract_strided_slice %36 {offsets = [0, 64], sizes = [16, 8], strides = [1, 1]} : vector<16x192xf32> to vector<16x8xf32>
    %45 = vector.shape_cast %44 : vector<16x8xf32> to vector<2x8x8xf32>
    %46 = vector.extract_strided_slice %36 {offsets = [0, 128], sizes = [16, 8], strides = [1, 1]} : vector<16x192xf32> to vector<16x8xf32>
    %47 = vector.shape_cast %46 : vector<16x8xf32> to vector<2x8x8xf32>
    "tpu.trace_start"() <{level = 10 : i32, message = "bqd,bkd->bqk"}> : () -> ()
    %cst_25 = arith.constant dense<0.000000e+00> : vector<2x8x8xf32>
    %48 = tpu.matmul %43, %45, %cst_25 {dimension_numbers = #tpu.dot_dimension_numbers<[2], [2], [1], [1], [0, 0, 0, 1, 1, 1], [0], [0]>} : vector<2x8x8xf32>, vector<2x8x8xf32>, vector<2x8x8xf32> -> vector<2x8x8xf32>
    "tpu.trace_stop"() : () -> ()
    %cst_26 = arith.constant 0.353553385 : f32
    %49 = vector.broadcast %cst_26 : f32 to vector<2x8x8xf32>
    %50 = arith.mulf %48, %49 : vector<2x8x8xf32>
    %51 = vector.broadcast %40 : vector<2x1x8xf32> to vector<2x8x8xf32>
    %52 = arith.addf %50, %51 : vector<2x8x8xf32>
    %cst_27 = arith.constant dense<0xFF800000> : vector<2x8xf32>
    %53 = vector.multi_reduction <maximumf>, %52, %cst_27 [2] : vector<2x8x8xf32> to vector<2x8xf32>
    %54 = vector.shape_cast %53 : vector<2x8xf32> to vector<2x8x1xf32>
    %55 = vector.broadcast %54 : vector<2x8x1xf32> to vector<2x8x8xf32>
    %56 = arith.subf %52, %55 : vector<2x8x8xf32>
    %57 = math.exp %56 : vector<2x8x8xf32>
    %cst_28 = arith.constant dense<0.000000e+00> : vector<2x8xf32>
    %58 = vector.multi_reduction <add>, %57, %cst_28 [2] : vector<2x8x8xf32> to vector<2x8xf32>
    %59 = vector.shape_cast %58 : vector<2x8xf32> to vector<2x8x1xf32>
    %60 = tpu.reciprocal %59 {approx = true} : vector<2x8x1xf32> -> vector<2x8x1xf32>
    %61 = vector.broadcast %60 : vector<2x8x1xf32> to vector<2x8x8xf32>
    %62 = arith.mulf %57, %61 : vector<2x8x8xf32>
    "tpu.trace_start"() <{level = 10 : i32, message = "bqk,bkd->bqd"}> : () -> ()
    %cst_29 = arith.constant dense<0.000000e+00> : vector<2x8x8xf32>
    %63 = tpu.matmul %62, %47, %cst_29 {dimension_numbers = #tpu.dot_dimension_numbers<[2], [1], [1], [2], [0, 0, 0, 1, 1, 2], [0], [0]>} : vector<2x8x8xf32>, vector<2x8x8xf32>, vector<2x8x8xf32> -> vector<2x8x8xf32>
    "tpu.trace_stop"() : () -> ()
    %64 = vector.shape_cast %63 : vector<2x8x8xf32> to vector<16x8xf32>
    %65 = vector.extract_strided_slice %38 {offsets = [0, 0], sizes = [8, 64], strides = [1, 1]} : vector<64x64xf32> to vector<8x64xf32>
    %cst_30 = arith.constant dense<0.000000e+00> : vector<16x64xf32>
    %66 = tpu.matmul %64, %65, %cst_30 {dimension_numbers = #tpu.dot_dimension_numbers<[1], [0], [0], [1], [0, 0, 1, 1], [], []>} : vector<16x8xf32>, vector<8x64xf32>, vector<16x64xf32> -> vector<16x64xf32>
    %67 = arith.addf %41, %66 : vector<16x64xf32>
    %68 = vector.extract_strided_slice %36 {offsets = [0, 8], sizes = [16, 8], strides = [1, 1]} : vector<16x192xf32> to vector<16x8xf32>
    %69 = vector.shape_cast %68 : vector<16x8xf32> to vector<2x8x8xf32>
    %70 = vector.extract_strided_slice %36 {offsets = [0, 72], sizes = [16, 8], strides = [1, 1]} : vector<16x192xf32> to vector<16x8xf32>
    %71 = vector.shape_cast %70 : vector<16x8xf32> to vector<2x8x8xf32>
    %72 = vector.extract_strided_slice %36 {offsets = [0, 136], sizes = [16, 8], strides = [1, 1]} : vector<16x192xf32> to vector<16x8xf32>
    %73 = vector.shape_cast %72 : vector<16x8xf32> to vector<2x8x8xf32>
    "tpu.trace_start"() <{level = 10 : i32, message = "bqd,bkd->bqk"}> : () -> ()
    %cst_31 = arith.constant dense<0.000000e+00> : vector<2x8x8xf32>
    %74 = tpu.matmul %69, %71, %cst_31 {dimension_numbers = #tpu.dot_dimension_numbers<[2], [2], [1], [1], [0, 0, 0, 1, 1, 1], [0], [0]>} : vector<2x8x8xf32>, vector<2x8x8xf32>, vector<2x8x8xf32> -> vector<2x8x8xf32>
    "tpu.trace_stop"() : () -> ()
    %cst_32 = arith.constant 0.353553385 : f32
    %75 = vector.broadcast %cst_32 : f32 to vector<2x8x8xf32>
    %76 = arith.mulf %74, %75 : vector<2x8x8xf32>
    %77 = vector.broadcast %40 : vector<2x1x8xf32> to vector<2x8x8xf32>
    %78 = arith.addf %76, %77 : vector<2x8x8xf32>
    %cst_33 = arith.constant dense<0xFF800000> : vector<2x8xf32>
    %79 = vector.multi_reduction <maximumf>, %78, %cst_33 [2] : vector<2x8x8xf32> to vector<2x8xf32>
    %80 = vector.shape_cast %79 : vector<2x8xf32> to vector<2x8x1xf32>
    %81 = vector.broadcast %80 : vector<2x8x1xf32> to vector<2x8x8xf32>
    %82 = arith.subf %78, %81 : vector<2x8x8xf32>
    %83 = math.exp %82 : vector<2x8x8xf32>
    %cst_34 = arith.constant dense<0.000000e+00> : vector<2x8xf32>
    %84 = vector.multi_reduction <add>, %83, %cst_34 [2] : vector<2x8x8xf32> to vector<2x8xf32>
    %85 = vector.shape_cast %84 : vector<2x8xf32> to vector<2x8x1xf32>
    %86 = tpu.reciprocal %85 {approx = true} : vector<2x8x1xf32> -> vector<2x8x1xf32>
    %87 = vector.broadcast %86 : vector<2x8x1xf32> to vector<2x8x8xf32>
    %88 = arith.mulf %83, %87 : vector<2x8x8xf32>
    "tpu.trace_start"() <{level = 10 : i32, message = "bqk,bkd->bqd"}> : () -> ()
    %cst_35 = arith.constant dense<0.000000e+00> : vector<2x8x8xf32>
    %89 = tpu.matmul %88, %73, %cst_35 {dimension_numbers = #tpu.dot_dimension_numbers<[2], [1], [1], [2], [0, 0, 0, 1, 1, 2], [0], [0]>} : vector<2x8x8xf32>, vector<2x8x8xf32>, vector<2x8x8xf32> -> vector<2x8x8xf32>
    "tpu.trace_stop"() : () -> ()
    %90 = vector.shape_cast %89 : vector<2x8x8xf32> to vector<16x8xf32>
    %91 = vector.extract_strided_slice %38 {offsets = [8, 0], sizes = [8, 64], strides = [1, 1]} : vector<64x64xf32> to vector<8x64xf32>
    %cst_36 = arith.constant dense<0.000000e+00> : vector<16x64xf32>
    %92 = tpu.matmul %90, %91, %cst_36 {dimension_numbers = #tpu.dot_dimension_numbers<[1], [0], [0], [1], [0, 0, 1, 1], [], []>} : vector<16x8xf32>, vector<8x64xf32>, vector<16x64xf32> -> vector<16x64xf32>
    %93 = arith.addf %67, %92 : vector<16x64xf32>
    %94 = vector.extract_strided_slice %36 {offsets = [0, 16], sizes = [16, 8], strides = [1, 1]} : vector<16x192xf32> to vector<16x8xf32>
    %95 = vector.shape_cast %94 : vector<16x8xf32> to vector<2x8x8xf32>
    %96 = vector.extract_strided_slice %36 {offsets = [0, 80], sizes = [16, 8], strides = [1, 1]} : vector<16x192xf32> to vector<16x8xf32>
    %97 = vector.shape_cast %96 : vector<16x8xf32> to vector<2x8x8xf32>
    %98 = vector.extract_strided_slice %36 {offsets = [0, 144], sizes = [16, 8], strides = [1, 1]} : vector<16x192xf32> to vector<16x8xf32>
    %99 = vector.shape_cast %98 : vector<16x8xf32> to vector<2x8x8xf32>
    "tpu.trace_start"() <{level = 10 : i32, message = "bqd,bkd->bqk"}> : () -> ()
    %cst_37 = arith.constant dense<0.000000e+00> : vector<2x8x8xf32>
    %100 = tpu.matmul %95, %97, %cst_37 {dimension_numbers = #tpu.dot_dimension_numbers<[2], [2], [1], [1], [0, 0, 0, 1, 1, 1], [0], [0]>} : vector<2x8x8xf32>, vector<2x8x8xf32>, vector<2x8x8xf32> -> vector<2x8x8xf32>
    "tpu.trace_stop"() : () -> ()
    %cst_38 = arith.constant 0.353553385 : f32
    %101 = vector.broadcast %cst_38 : f32 to vector<2x8x8xf32>
    %102 = arith.mulf %100, %101 : vector<2x8x8xf32>
    %103 = vector.broadcast %40 : vector<2x1x8xf32> to vector<2x8x8xf32>
    %104 = arith.addf %102, %103 : vector<2x8x8xf32>
    %cst_39 = arith.constant dense<0xFF800000> : vector<2x8xf32>
    %105 = vector.multi_reduction <maximumf>, %104, %cst_39 [2] : vector<2x8x8xf32> to vector<2x8xf32>
    %106 = vector.shape_cast %105 : vector<2x8xf32> to vector<2x8x1xf32>
    %107 = vector.broadcast %106 : vector<2x8x1xf32> to vector<2x8x8xf32>
    %108 = arith.subf %104, %107 : vector<2x8x8xf32>
    %109 = math.exp %108 : vector<2x8x8xf32>
    %cst_40 = arith.constant dense<0.000000e+00> : vector<2x8xf32>
    %110 = vector.multi_reduction <add>, %109, %cst_40 [2] : vector<2x8x8xf32> to vector<2x8xf32>
    %111 = vector.shape_cast %110 : vector<2x8xf32> to vector<2x8x1xf32>
    %112 = tpu.reciprocal %111 {approx = true} : vector<2x8x1xf32> -> vector<2x8x1xf32>
    %113 = vector.broadcast %112 : vector<2x8x1xf32> to vector<2x8x8xf32>
    %114 = arith.mulf %109, %113 : vector<2x8x8xf32>
    "tpu.trace_start"() <{level = 10 : i32, message = "bqk,bkd->bqd"}> : () -> ()
    %cst_41 = arith.constant dense<0.000000e+00> : vector<2x8x8xf32>
    %115 = tpu.matmul %114, %99, %cst_41 {dimension_numbers = #tpu.dot_dimension_numbers<[2], [1], [1], [2], [0, 0, 0, 1, 1, 2], [0], [0]>} : vector<2x8x8xf32>, vector<2x8x8xf32>, vector<2x8x8xf32> -> vector<2x8x8xf32>
    "tpu.trace_stop"() : () -> ()
    %116 = vector.shape_cast %115 : vector<2x8x8xf32> to vector<16x8xf32>
    %117 = vector.extract_strided_slice %38 {offsets = [16, 0], sizes = [8, 64], strides = [1, 1]} : vector<64x64xf32> to vector<8x64xf32>
    %cst_42 = arith.constant dense<0.000000e+00> : vector<16x64xf32>
    %118 = tpu.matmul %116, %117, %cst_42 {dimension_numbers = #tpu.dot_dimension_numbers<[1], [0], [0], [1], [0, 0, 1, 1], [], []>} : vector<16x8xf32>, vector<8x64xf32>, vector<16x64xf32> -> vector<16x64xf32>
    %119 = arith.addf %93, %118 : vector<16x64xf32>
    %120 = vector.extract_strided_slice %36 {offsets = [0, 24], sizes = [16, 8], strides = [1, 1]} : vector<16x192xf32> to vector<16x8xf32>
    %121 = vector.shape_cast %120 : vector<16x8xf32> to vector<2x8x8xf32>
    %122 = vector.extract_strided_slice %36 {offsets = [0, 88], sizes = [16, 8], strides = [1, 1]} : vector<16x192xf32> to vector<16x8xf32>
    %123 = vector.shape_cast %122 : vector<16x8xf32> to vector<2x8x8xf32>
    %124 = vector.extract_strided_slice %36 {offsets = [0, 152], sizes = [16, 8], strides = [1, 1]} : vector<16x192xf32> to vector<16x8xf32>
    %125 = vector.shape_cast %124 : vector<16x8xf32> to vector<2x8x8xf32>
    "tpu.trace_start"() <{level = 10 : i32, message = "bqd,bkd->bqk"}> : () -> ()
    %cst_43 = arith.constant dense<0.000000e+00> : vector<2x8x8xf32>
    %126 = tpu.matmul %121, %123, %cst_43 {dimension_numbers = #tpu.dot_dimension_numbers<[2], [2], [1], [1], [0, 0, 0, 1, 1, 1], [0], [0]>} : vector<2x8x8xf32>, vector<2x8x8xf32>, vector<2x8x8xf32> -> vector<2x8x8xf32>
    "tpu.trace_stop"() : () -> ()
    %cst_44 = arith.constant 0.353553385 : f32
    %127 = vector.broadcast %cst_44 : f32 to vector<2x8x8xf32>
    %128 = arith.mulf %126, %127 : vector<2x8x8xf32>
    %129 = vector.broadcast %40 : vector<2x1x8xf32> to vector<2x8x8xf32>
    %130 = arith.addf %128, %129 : vector<2x8x8xf32>
    %cst_45 = arith.constant dense<0xFF800000> : vector<2x8xf32>
    %131 = vector.multi_reduction <maximumf>, %130, %cst_45 [2] : vector<2x8x8xf32> to vector<2x8xf32>
    %132 = vector.shape_cast %131 : vector<2x8xf32> to vector<2x8x1xf32>
    %133 = vector.broadcast %132 : vector<2x8x1xf32> to vector<2x8x8xf32>
    %134 = arith.subf %130, %133 : vector<2x8x8xf32>
    %135 = math.exp %134 : vector<2x8x8xf32>
    %cst_46 = arith.constant dense<0.000000e+00> : vector<2x8xf32>
    %136 = vector.multi_reduction <add>, %135, %cst_46 [2] : vector<2x8x8xf32> to vector<2x8xf32>
    %137 = vector.shape_cast %136 : vector<2x8xf32> to vector<2x8x1xf32>
    %138 = tpu.reciprocal %137 {approx = true} : vector<2x8x1xf32> -> vector<2x8x1xf32>
    %139 = vector.broadcast %138 : vector<2x8x1xf32> to vector<2x8x8xf32>
    %140 = arith.mulf %135, %139 : vector<2x8x8xf32>
    "tpu.trace_start"() <{level = 10 : i32, message = "bqk,bkd->bqd"}> : () -> ()
    %cst_47 = arith.constant dense<0.000000e+00> : vector<2x8x8xf32>
    %141 = tpu.matmul %140, %125, %cst_47 {dimension_numbers = #tpu.dot_dimension_numbers<[2], [1], [1], [2], [0, 0, 0, 1, 1, 2], [0], [0]>} : vector<2x8x8xf32>, vector<2x8x8xf32>, vector<2x8x8xf32> -> vector<2x8x8xf32>
    "tpu.trace_stop"() : () -> ()
    %142 = vector.shape_cast %141 : vector<2x8x8xf32> to vector<16x8xf32>
    %143 = vector.extract_strided_slice %38 {offsets = [24, 0], sizes = [8, 64], strides = [1, 1]} : vector<64x64xf32> to vector<8x64xf32>
    %cst_48 = arith.constant dense<0.000000e+00> : vector<16x64xf32>
    %144 = tpu.matmul %142, %143, %cst_48 {dimension_numbers = #tpu.dot_dimension_numbers<[1], [0], [0], [1], [0, 0, 1, 1], [], []>} : vector<16x8xf32>, vector<8x64xf32>, vector<16x64xf32> -> vector<16x64xf32>
    %145 = arith.addf %119, %144 : vector<16x64xf32>
    %146 = vector.extract_strided_slice %36 {offsets = [0, 32], sizes = [16, 8], strides = [1, 1]} : vector<16x192xf32> to vector<16x8xf32>
    %147 = vector.shape_cast %146 : vector<16x8xf32> to vector<2x8x8xf32>
    %148 = vector.extract_strided_slice %36 {offsets = [0, 96], sizes = [16, 8], strides = [1, 1]} : vector<16x192xf32> to vector<16x8xf32>
    %149 = vector.shape_cast %148 : vector<16x8xf32> to vector<2x8x8xf32>
    %150 = vector.extract_strided_slice %36 {offsets = [0, 160], sizes = [16, 8], strides = [1, 1]} : vector<16x192xf32> to vector<16x8xf32>
    %151 = vector.shape_cast %150 : vector<16x8xf32> to vector<2x8x8xf32>
    "tpu.trace_start"() <{level = 10 : i32, message = "bqd,bkd->bqk"}> : () -> ()
    %cst_49 = arith.constant dense<0.000000e+00> : vector<2x8x8xf32>
    %152 = tpu.matmul %147, %149, %cst_49 {dimension_numbers = #tpu.dot_dimension_numbers<[2], [2], [1], [1], [0, 0, 0, 1, 1, 1], [0], [0]>} : vector<2x8x8xf32>, vector<2x8x8xf32>, vector<2x8x8xf32> -> vector<2x8x8xf32>
    "tpu.trace_stop"() : () -> ()
    %cst_50 = arith.constant 0.353553385 : f32
    %153 = vector.broadcast %cst_50 : f32 to vector<2x8x8xf32>
    %154 = arith.mulf %152, %153 : vector<2x8x8xf32>
    %155 = vector.broadcast %40 : vector<2x1x8xf32> to vector<2x8x8xf32>
    %156 = arith.addf %154, %155 : vector<2x8x8xf32>
    %cst_51 = arith.constant dense<0xFF800000> : vector<2x8xf32>
    %157 = vector.multi_reduction <maximumf>, %156, %cst_51 [2] : vector<2x8x8xf32> to vector<2x8xf32>
    %158 = vector.shape_cast %157 : vector<2x8xf32> to vector<2x8x1xf32>
    %159 = vector.broadcast %158 : vector<2x8x1xf32> to vector<2x8x8xf32>
    %160 = arith.subf %156, %159 : vector<2x8x8xf32>
    %161 = math.exp %160 : vector<2x8x8xf32>
    %cst_52 = arith.constant dense<0.000000e+00> : vector<2x8xf32>
    %162 = vector.multi_reduction <add>, %161, %cst_52 [2] : vector<2x8x8xf32> to vector<2x8xf32>
    %163 = vector.shape_cast %162 : vector<2x8xf32> to vector<2x8x1xf32>
    %164 = tpu.reciprocal %163 {approx = true} : vector<2x8x1xf32> -> vector<2x8x1xf32>
    %165 = vector.broadcast %164 : vector<2x8x1xf32> to vector<2x8x8xf32>
    %166 = arith.mulf %161, %165 : vector<2x8x8xf32>
    "tpu.trace_start"() <{level = 10 : i32, message = "bqk,bkd->bqd"}> : () -> ()
    %cst_53 = arith.constant dense<0.000000e+00> : vector<2x8x8xf32>
    %167 = tpu.matmul %166, %151, %cst_53 {dimension_numbers = #tpu.dot_dimension_numbers<[2], [1], [1], [2], [0, 0, 0, 1, 1, 2], [0], [0]>} : vector<2x8x8xf32>, vector<2x8x8xf32>, vector<2x8x8xf32> -> vector<2x8x8xf32>
    "tpu.trace_stop"() : () -> ()
    %168 = vector.shape_cast %167 : vector<2x8x8xf32> to vector<16x8xf32>
    %169 = vector.extract_strided_slice %38 {offsets = [32, 0], sizes = [8, 64], strides = [1, 1]} : vector<64x64xf32> to vector<8x64xf32>
    %cst_54 = arith.constant dense<0.000000e+00> : vector<16x64xf32>
    %170 = tpu.matmul %168, %169, %cst_54 {dimension_numbers = #tpu.dot_dimension_numbers<[1], [0], [0], [1], [0, 0, 1, 1], [], []>} : vector<16x8xf32>, vector<8x64xf32>, vector<16x64xf32> -> vector<16x64xf32>
    %171 = arith.addf %145, %170 : vector<16x64xf32>
    %172 = vector.extract_strided_slice %36 {offsets = [0, 40], sizes = [16, 8], strides = [1, 1]} : vector<16x192xf32> to vector<16x8xf32>
    %173 = vector.shape_cast %172 : vector<16x8xf32> to vector<2x8x8xf32>
    %174 = vector.extract_strided_slice %36 {offsets = [0, 104], sizes = [16, 8], strides = [1, 1]} : vector<16x192xf32> to vector<16x8xf32>
    %175 = vector.shape_cast %174 : vector<16x8xf32> to vector<2x8x8xf32>
    %176 = vector.extract_strided_slice %36 {offsets = [0, 168], sizes = [16, 8], strides = [1, 1]} : vector<16x192xf32> to vector<16x8xf32>
    %177 = vector.shape_cast %176 : vector<16x8xf32> to vector<2x8x8xf32>
    "tpu.trace_start"() <{level = 10 : i32, message = "bqd,bkd->bqk"}> : () -> ()
    %cst_55 = arith.constant dense<0.000000e+00> : vector<2x8x8xf32>
    %178 = tpu.matmul %173, %175, %cst_55 {dimension_numbers = #tpu.dot_dimension_numbers<[2], [2], [1], [1], [0, 0, 0, 1, 1, 1], [0], [0]>} : vector<2x8x8xf32>, vector<2x8x8xf32>, vector<2x8x8xf32> -> vector<2x8x8xf32>
    "tpu.trace_stop"() : () -> ()
    %cst_56 = arith.constant 0.353553385 : f32
    %179 = vector.broadcast %cst_56 : f32 to vector<2x8x8xf32>
    %180 = arith.mulf %178, %179 : vector<2x8x8xf32>
    %181 = vector.broadcast %40 : vector<2x1x8xf32> to vector<2x8x8xf32>
    %182 = arith.addf %180, %181 : vector<2x8x8xf32>
    %cst_57 = arith.constant dense<0xFF800000> : vector<2x8xf32>
    %183 = vector.multi_reduction <maximumf>, %182, %cst_57 [2] : vector<2x8x8xf32> to vector<2x8xf32>
    %184 = vector.shape_cast %183 : vector<2x8xf32> to vector<2x8x1xf32>
    %185 = vector.broadcast %184 : vector<2x8x1xf32> to vector<2x8x8xf32>
    %186 = arith.subf %182, %185 : vector<2x8x8xf32>
    %187 = math.exp %186 : vector<2x8x8xf32>
    %cst_58 = arith.constant dense<0.000000e+00> : vector<2x8xf32>
    %188 = vector.multi_reduction <add>, %187, %cst_58 [2] : vector<2x8x8xf32> to vector<2x8xf32>
    %189 = vector.shape_cast %188 : vector<2x8xf32> to vector<2x8x1xf32>
    %190 = tpu.reciprocal %189 {approx = true} : vector<2x8x1xf32> -> vector<2x8x1xf32>
    %191 = vector.broadcast %190 : vector<2x8x1xf32> to vector<2x8x8xf32>
    %192 = arith.mulf %187, %191 : vector<2x8x8xf32>
    "tpu.trace_start"() <{level = 10 : i32, message = "bqk,bkd->bqd"}> : () -> ()
    %cst_59 = arith.constant dense<0.000000e+00> : vector<2x8x8xf32>
    %193 = tpu.matmul %192, %177, %cst_59 {dimension_numbers = #tpu.dot_dimension_numbers<[2], [1], [1], [2], [0, 0, 0, 1, 1, 2], [0], [0]>} : vector<2x8x8xf32>, vector<2x8x8xf32>, vector<2x8x8xf32> -> vector<2x8x8xf32>
    "tpu.trace_stop"() : () -> ()
    %194 = vector.shape_cast %193 : vector<2x8x8xf32> to vector<16x8xf32>
    %195 = vector.extract_strided_slice %38 {offsets = [40, 0], sizes = [8, 64], strides = [1, 1]} : vector<64x64xf32> to vector<8x64xf32>
    %cst_60 = arith.constant dense<0.000000e+00> : vector<16x64xf32>
    %196 = tpu.matmul %194, %195, %cst_60 {dimension_numbers = #tpu.dot_dimension_numbers<[1], [0], [0], [1], [0, 0, 1, 1], [], []>} : vector<16x8xf32>, vector<8x64xf32>, vector<16x64xf32> -> vector<16x64xf32>
    %197 = arith.addf %171, %196 : vector<16x64xf32>
    %198 = vector.extract_strided_slice %36 {offsets = [0, 48], sizes = [16, 8], strides = [1, 1]} : vector<16x192xf32> to vector<16x8xf32>
    %199 = vector.shape_cast %198 : vector<16x8xf32> to vector<2x8x8xf32>
    %200 = vector.extract_strided_slice %36 {offsets = [0, 112], sizes = [16, 8], strides = [1, 1]} : vector<16x192xf32> to vector<16x8xf32>
    %201 = vector.shape_cast %200 : vector<16x8xf32> to vector<2x8x8xf32>
    %202 = vector.extract_strided_slice %36 {offsets = [0, 176], sizes = [16, 8], strides = [1, 1]} : vector<16x192xf32> to vector<16x8xf32>
    %203 = vector.shape_cast %202 : vector<16x8xf32> to vector<2x8x8xf32>
    "tpu.trace_start"() <{level = 10 : i32, message = "bqd,bkd->bqk"}> : () -> ()
    %cst_61 = arith.constant dense<0.000000e+00> : vector<2x8x8xf32>
    %204 = tpu.matmul %199, %201, %cst_61 {dimension_numbers = #tpu.dot_dimension_numbers<[2], [2], [1], [1], [0, 0, 0, 1, 1, 1], [0], [0]>} : vector<2x8x8xf32>, vector<2x8x8xf32>, vector<2x8x8xf32> -> vector<2x8x8xf32>
    "tpu.trace_stop"() : () -> ()
    %cst_62 = arith.constant 0.353553385 : f32
    %205 = vector.broadcast %cst_62 : f32 to vector<2x8x8xf32>
    %206 = arith.mulf %204, %205 : vector<2x8x8xf32>
    %207 = vector.broadcast %40 : vector<2x1x8xf32> to vector<2x8x8xf32>
    %208 = arith.addf %206, %207 : vector<2x8x8xf32>
    %cst_63 = arith.constant dense<0xFF800000> : vector<2x8xf32>
    %209 = vector.multi_reduction <maximumf>, %208, %cst_63 [2] : vector<2x8x8xf32> to vector<2x8xf32>
    %210 = vector.shape_cast %209 : vector<2x8xf32> to vector<2x8x1xf32>
    %211 = vector.broadcast %210 : vector<2x8x1xf32> to vector<2x8x8xf32>
    %212 = arith.subf %208, %211 : vector<2x8x8xf32>
    %213 = math.exp %212 : vector<2x8x8xf32>
    %cst_64 = arith.constant dense<0.000000e+00> : vector<2x8xf32>
    %214 = vector.multi_reduction <add>, %213, %cst_64 [2] : vector<2x8x8xf32> to vector<2x8xf32>
    %215 = vector.shape_cast %214 : vector<2x8xf32> to vector<2x8x1xf32>
    %216 = tpu.reciprocal %215 {approx = true} : vector<2x8x1xf32> -> vector<2x8x1xf32>
    %217 = vector.broadcast %216 : vector<2x8x1xf32> to vector<2x8x8xf32>
    %218 = arith.mulf %213, %217 : vector<2x8x8xf32>
    "tpu.trace_start"() <{level = 10 : i32, message = "bqk,bkd->bqd"}> : () -> ()
    %cst_65 = arith.constant dense<0.000000e+00> : vector<2x8x8xf32>
    %219 = tpu.matmul %218, %203, %cst_65 {dimension_numbers = #tpu.dot_dimension_numbers<[2], [1], [1], [2], [0, 0, 0, 1, 1, 2], [0], [0]>} : vector<2x8x8xf32>, vector<2x8x8xf32>, vector<2x8x8xf32> -> vector<2x8x8xf32>
    "tpu.trace_stop"() : () -> ()
    %220 = vector.shape_cast %219 : vector<2x8x8xf32> to vector<16x8xf32>
    %221 = vector.extract_strided_slice %38 {offsets = [48, 0], sizes = [8, 64], strides = [1, 1]} : vector<64x64xf32> to vector<8x64xf32>
    %cst_66 = arith.constant dense<0.000000e+00> : vector<16x64xf32>
    %222 = tpu.matmul %220, %221, %cst_66 {dimension_numbers = #tpu.dot_dimension_numbers<[1], [0], [0], [1], [0, 0, 1, 1], [], []>} : vector<16x8xf32>, vector<8x64xf32>, vector<16x64xf32> -> vector<16x64xf32>
    %223 = arith.addf %197, %222 : vector<16x64xf32>
    %224 = vector.extract_strided_slice %36 {offsets = [0, 56], sizes = [16, 8], strides = [1, 1]} : vector<16x192xf32> to vector<16x8xf32>
    %225 = vector.shape_cast %224 : vector<16x8xf32> to vector<2x8x8xf32>
    %226 = vector.extract_strided_slice %36 {offsets = [0, 120], sizes = [16, 8], strides = [1, 1]} : vector<16x192xf32> to vector<16x8xf32>
    %227 = vector.shape_cast %226 : vector<16x8xf32> to vector<2x8x8xf32>
    %228 = vector.extract_strided_slice %36 {offsets = [0, 184], sizes = [16, 8], strides = [1, 1]} : vector<16x192xf32> to vector<16x8xf32>
    %229 = vector.shape_cast %228 : vector<16x8xf32> to vector<2x8x8xf32>
    "tpu.trace_start"() <{level = 10 : i32, message = "bqd,bkd->bqk"}> : () -> ()
    %cst_67 = arith.constant dense<0.000000e+00> : vector<2x8x8xf32>
    %230 = tpu.matmul %225, %227, %cst_67 {dimension_numbers = #tpu.dot_dimension_numbers<[2], [2], [1], [1], [0, 0, 0, 1, 1, 1], [0], [0]>} : vector<2x8x8xf32>, vector<2x8x8xf32>, vector<2x8x8xf32> -> vector<2x8x8xf32>
    "tpu.trace_stop"() : () -> ()
    %cst_68 = arith.constant 0.353553385 : f32
    %231 = vector.broadcast %cst_68 : f32 to vector<2x8x8xf32>
    %232 = arith.mulf %230, %231 : vector<2x8x8xf32>
    %233 = vector.broadcast %40 : vector<2x1x8xf32> to vector<2x8x8xf32>
    %234 = arith.addf %232, %233 : vector<2x8x8xf32>
    %cst_69 = arith.constant dense<0xFF800000> : vector<2x8xf32>
    %235 = vector.multi_reduction <maximumf>, %234, %cst_69 [2] : vector<2x8x8xf32> to vector<2x8xf32>
    %236 = vector.shape_cast %235 : vector<2x8xf32> to vector<2x8x1xf32>
    %237 = vector.broadcast %236 : vector<2x8x1xf32> to vector<2x8x8xf32>
    %238 = arith.subf %234, %237 : vector<2x8x8xf32>
    %239 = math.exp %238 : vector<2x8x8xf32>
    %cst_70 = arith.constant dense<0.000000e+00> : vector<2x8xf32>
    %240 = vector.multi_reduction <add>, %239, %cst_70 [2] : vector<2x8x8xf32> to vector<2x8xf32>
    %241 = vector.shape_cast %240 : vector<2x8xf32> to vector<2x8x1xf32>
    %242 = tpu.reciprocal %241 {approx = true} : vector<2x8x1xf32> -> vector<2x8x1xf32>
    %243 = vector.broadcast %242 : vector<2x8x1xf32> to vector<2x8x8xf32>
    %244 = arith.mulf %239, %243 : vector<2x8x8xf32>
    "tpu.trace_start"() <{level = 10 : i32, message = "bqk,bkd->bqd"}> : () -> ()
    %cst_71 = arith.constant dense<0.000000e+00> : vector<2x8x8xf32>
    %245 = tpu.matmul %244, %229, %cst_71 {dimension_numbers = #tpu.dot_dimension_numbers<[2], [1], [1], [2], [0, 0, 0, 1, 1, 2], [0], [0]>} : vector<2x8x8xf32>, vector<2x8x8xf32>, vector<2x8x8xf32> -> vector<2x8x8xf32>
    "tpu.trace_stop"() : () -> ()
    %246 = vector.shape_cast %245 : vector<2x8x8xf32> to vector<16x8xf32>
    %247 = vector.extract_strided_slice %38 {offsets = [56, 0], sizes = [8, 64], strides = [1, 1]} : vector<64x64xf32> to vector<8x64xf32>
    %cst_72 = arith.constant dense<0.000000e+00> : vector<16x64xf32>
    %248 = tpu.matmul %246, %247, %cst_72 {dimension_numbers = #tpu.dot_dimension_numbers<[1], [0], [0], [1], [0, 0, 1, 1], [], []>} : vector<16x8xf32>, vector<8x64xf32>, vector<16x64xf32> -> vector<16x64xf32>
    %249 = arith.addf %223, %248 : vector<16x64xf32>
    %250 = arith.addf %3, %249 : vector<16x64xf32>
    %c0_73 = arith.constant 0 : index
    %c0_74 = arith.constant 0 : index
    %c0_75 = arith.constant 0 : index
    %251 = vector.load %arg15[%c0_73, %c0_74, %c0_75] : memref<1x1x64xf32, #tpu.memory_space<vmem>>, vector<1x1x64xf32>
    %252 = vector.shape_cast %251 : vector<1x1x64xf32> to vector<1x64xf32>
    %253 = vector.broadcast %252 : vector<1x64xf32> to vector<16x64xf32>
    %254 = arith.addf %250, %253 : vector<16x64xf32>
    %c0_76 = arith.constant 0 : index
    %c0_77 = arith.constant 0 : index
    %c0_78 = arith.constant 0 : index
    %255 = vector.load %arg16[%c0_76, %c0_77, %c0_78] : memref<1x1x64xf32, #tpu.memory_space<vmem>>, vector<1x1x64xf32>
    %256 = vector.shape_cast %255 : vector<1x1x64xf32> to vector<1x64xf32>
    %c0_79 = arith.constant 0 : index
    %c0_80 = arith.constant 0 : index
    %c0_81 = arith.constant 0 : index
    %257 = vector.load %arg17[%c0_79, %c0_80, %c0_81] : memref<1x1x64xf32, #tpu.memory_space<vmem>>, vector<1x1x64xf32>
    %258 = vector.shape_cast %257 : vector<1x1x64xf32> to vector<1x64xf32>
    %cst_82 = arith.constant dense<0.000000e+00> : vector<16xf32>
    %259 = vector.multi_reduction <add>, %254, %cst_82 [1] : vector<16x64xf32> to vector<16xf32>
    %260 = vector.shape_cast %259 : vector<16xf32> to vector<16x1xf32>
    %cst_83 = arith.constant 6.400000e+01 : f32
    %261 = vector.broadcast %cst_83 : f32 to vector<16x1xf32>
    %262 = arith.divf %260, %261 : vector<16x1xf32>
    %263 = vector.broadcast %262 : vector<16x1xf32> to vector<16x64xf32>
    %264 = arith.subf %254, %263 : vector<16x64xf32>
    %265 = arith.mulf %264, %264 : vector<16x64xf32>
    %cst_84 = arith.constant dense<0.000000e+00> : vector<16xf32>
    %266 = vector.multi_reduction <add>, %265, %cst_84 [1] : vector<16x64xf32> to vector<16xf32>
    %267 = vector.shape_cast %266 : vector<16xf32> to vector<16x1xf32>
    %cst_85 = arith.constant 6.400000e+01 : f32
    %268 = vector.broadcast %cst_85 : f32 to vector<16x1xf32>
    %269 = arith.divf %267, %268 : vector<16x1xf32>
    %270 = vector.broadcast %262 : vector<16x1xf32> to vector<16x64xf32>
    %271 = arith.subf %254, %270 : vector<16x64xf32>
    %cst_86 = arith.constant 9.99999974E-6 : f32
    %272 = vector.broadcast %cst_86 : f32 to vector<16x1xf32>
    %273 = arith.addf %269, %272 : vector<16x1xf32>
    %274 = math.rsqrt %273 : vector<16x1xf32>
    %275 = vector.broadcast %274 : vector<16x1xf32> to vector<16x64xf32>
    %276 = arith.mulf %271, %275 : vector<16x64xf32>
    %277 = vector.broadcast %256 : vector<1x64xf32> to vector<16x64xf32>
    %278 = arith.mulf %276, %277 : vector<16x64xf32>
    %279 = vector.broadcast %258 : vector<1x64xf32> to vector<16x64xf32>
    %280 = arith.addf %278, %279 : vector<16x64xf32>
    %c0_87 = arith.constant 0 : index
    %c0_88 = arith.constant 0 : index
    %c0_89 = arith.constant 0 : index
    %281 = vector.load %arg18[%c0_87, %c0_88, %c0_89] : memref<1x64x256xf32, #tpu.memory_space<vmem>>, vector<1x64x256xf32>
    %282 = vector.shape_cast %281 : vector<1x64x256xf32> to vector<64x256xf32>
    %cst_90 = arith.constant dense<0.000000e+00> : vector<16x256xf32>
    %283 = tpu.matmul %280, %282, %cst_90 {dimension_numbers = #tpu.dot_dimension_numbers<[1], [0], [0], [1], [0, 0, 1, 1], [], []>} : vector<16x64xf32>, vector<64x256xf32>, vector<16x256xf32> -> vector<16x256xf32>
    %c0_91 = arith.constant 0 : index
    %c0_92 = arith.constant 0 : index
    %c0_93 = arith.constant 0 : index
    %284 = vector.load %arg19[%c0_91, %c0_92, %c0_93] : memref<1x1x256xf32, #tpu.memory_space<vmem>>, vector<1x1x256xf32>
    %285 = vector.shape_cast %284 : vector<1x1x256xf32> to vector<1x256xf32>
    %286 = vector.broadcast %285 : vector<1x256xf32> to vector<16x256xf32>
    %287 = arith.addf %283, %286 : vector<16x256xf32>
    %cst_94 = arith.constant 1.702000e+00 : f32
    %288 = vector.broadcast %cst_94 : f32 to vector<16x256xf32>
    %289 = arith.mulf %288, %287 : vector<16x256xf32>
    %290 = arith.negf %289 : vector<16x256xf32>
    %291 = math.exp %290 : vector<16x256xf32>
    %cst_95 = arith.constant 1.000000e+00 : f32
    %292 = vector.broadcast %cst_95 : f32 to vector<16x256xf32>
    %293 = arith.addf %292, %291 : vector<16x256xf32>
    %294 = arith.divf %292, %293 : vector<16x256xf32>
    %295 = arith.mulf %287, %294 : vector<16x256xf32>
    %c0_96 = arith.constant 0 : index
    %c0_97 = arith.constant 0 : index
    %c0_98 = arith.constant 0 : index
    %296 = vector.load %arg20[%c0_96, %c0_97, %c0_98] : memref<1x256x64xf32, #tpu.memory_space<vmem>>, vector<1x256x64xf32>
    %297 = vector.shape_cast %296 : vector<1x256x64xf32> to vector<256x64xf32>
    %cst_99 = arith.constant dense<0.000000e+00> : vector<16x64xf32>
    %298 = tpu.matmul %295, %297, %cst_99 {dimension_numbers = #tpu.dot_dimension_numbers<[1], [0], [0], [1], [0, 0, 1, 1], [], []>} : vector<16x256xf32>, vector<256x64xf32>, vector<16x64xf32> -> vector<16x64xf32>
    %c0_100 = arith.constant 0 : index
    %c0_101 = arith.constant 0 : index
    %c0_102 = arith.constant 0 : index
    %299 = vector.load %arg21[%c0_100, %c0_101, %c0_102] : memref<1x1x64xf32, #tpu.memory_space<vmem>>, vector<1x1x64xf32>
    %300 = vector.shape_cast %299 : vector<1x1x64xf32> to vector<1x64xf32>
    %301 = vector.broadcast %300 : vector<1x64xf32> to vector<16x64xf32>
    %302 = arith.addf %298, %301 : vector<16x64xf32>
    %303 = arith.addf %254, %302 : vector<16x64xf32>
    %c0_103 = arith.constant 0 : index
    %c0_104 = arith.constant 0 : index
    %304 = vector.load %arg28[%c0_103, %c0_104] : memref<16x64xf32, #tpu.memory_space<vmem>>, vector<16x64xf32>
    tpu.vector_store %arg28[%c0_103, %c0_104], %303 {strides = array<i32>} : memref<16x64xf32, #tpu.memory_space<vmem>>, vector<16x64xf32>,
    %c1_i32 = arith.constant 1 : i32
    %305 = arith.cmpi slt, %arg1, %c1_i32 : i32
    %306 = arith.extui %305 : i1 to i32
    %c0_i32_105 = arith.constant 0 : i32
    %307 = arith.cmpi ne, %306, %c0_i32_105 : i32
    scf.if %307 {
      %c0_108 = arith.constant 0 : index
      %c0_109 = arith.constant 0 : index
      %311 = vector.load %arg29[%c0_108, %c0_109] : memref<16x64xf32, #tpu.memory_space<vmem>>, vector<16x64xf32>
      %312 = arith.addf %311, %303 : vector<16x64xf32>
      %c0_110 = arith.constant 0 : index
      %c0_111 = arith.constant 0 : index
      %313 = vector.load %arg29[%c0_110, %c0_111] : memref<16x64xf32, #tpu.memory_space<vmem>>, vector<16x64xf32>
      tpu.vector_store %arg29[%c0_110, %c0_111], %312 {strides = array<i32>} : memref<16x64xf32, #tpu.memory_space<vmem>>, vector<16x64xf32>,
    } else {
    }
    %c1_i32_106 = arith.constant 1 : i32
    %308 = arith.cmpi eq, %arg1, %c1_i32_106 : i32
    %309 = arith.extui %308 : i1 to i32
    %c0_i32_107 = arith.constant 0 : i32
    %310 = arith.cmpi ne, %309, %c0_i32_107 : i32
    scf.if %310 {
      %c0_108 = arith.constant 0 : index
      %c0_109 = arith.constant 0 : index
      %311 = vector.load %arg22[%c0_108, %c0_109] : memref<1x64xf32, #tpu.memory_space<vmem>>, vector<1x64xf32>
      %c0_110 = arith.constant 0 : index
      %c0_111 = arith.constant 0 : index
      %312 = vector.load %arg23[%c0_110, %c0_111] : memref<1x64xf32, #tpu.memory_space<vmem>>, vector<1x64xf32>
      %cst_112 = arith.constant dense<0.000000e+00> : vector<16xf32>
      %313 = vector.multi_reduction <add>, %303, %cst_112 [1] : vector<16x64xf32> to vector<16xf32>
      %314 = vector.shape_cast %313 : vector<16xf32> to vector<16x1xf32>
      %cst_113 = arith.constant 6.400000e+01 : f32
      %315 = vector.broadcast %cst_113 : f32 to vector<16x1xf32>
      %316 = arith.divf %314, %315 : vector<16x1xf32>
      %317 = vector.broadcast %316 : vector<16x1xf32> to vector<16x64xf32>
      %318 = arith.subf %303, %317 : vector<16x64xf32>
      %319 = arith.mulf %318, %318 : vector<16x64xf32>
      %cst_114 = arith.constant dense<0.000000e+00> : vector<16xf32>
      %320 = vector.multi_reduction <add>, %319, %cst_114 [1] : vector<16x64xf32> to vector<16xf32>
      %321 = vector.shape_cast %320 : vector<16xf32> to vector<16x1xf32>
      %cst_115 = arith.constant 6.400000e+01 : f32
      %322 = vector.broadcast %cst_115 : f32 to vector<16x1xf32>
      %323 = arith.divf %321, %322 : vector<16x1xf32>
      %324 = vector.broadcast %316 : vector<16x1xf32> to vector<16x64xf32>
      %325 = arith.subf %303, %324 : vector<16x64xf32>
      %cst_116 = arith.constant 9.99999974E-6 : f32
      %326 = vector.broadcast %cst_116 : f32 to vector<16x1xf32>
      %327 = arith.addf %323, %326 : vector<16x1xf32>
      %328 = math.rsqrt %327 : vector<16x1xf32>
      %329 = vector.broadcast %328 : vector<16x1xf32> to vector<16x64xf32>
      %330 = arith.mulf %325, %329 : vector<16x64xf32>
      %331 = vector.broadcast %311 : vector<1x64xf32> to vector<16x64xf32>
      %332 = arith.mulf %330, %331 : vector<16x64xf32>
      %333 = vector.broadcast %312 : vector<1x64xf32> to vector<16x64xf32>
      %334 = arith.addf %332, %333 : vector<16x64xf32>
      %c0_117 = arith.constant 0 : index
      %c0_118 = arith.constant 0 : index
      %335 = vector.load %arg29[%c0_117, %c0_118] : memref<16x64xf32, #tpu.memory_space<vmem>>, vector<16x64xf32>
      %336 = arith.addf %335, %334 : vector<16x64xf32>
      %cst_119 = arith.constant 5.000000e-01 : f32
      %337 = vector.broadcast %cst_119 : f32 to vector<16x64xf32>
      %338 = arith.mulf %336, %337 : vector<16x64xf32>
      %339 = vector.shape_cast %338 : vector<16x64xf32> to vector<2x8x64xf32>
      %c0_120 = arith.constant 0 : index
      %c0_121 = arith.constant 0 : index
      %c0_122 = arith.constant 0 : index
      %340 = vector.load %arg26[%c0_120, %c0_121, %c0_122] : memref<2x8x64xf32, #tpu.memory_space<vmem>>, vector<2x8x64xf32>
      tpu.vector_store %arg26[%c0_120, %c0_121, %c0_122], %339 {strides = array<i32>} : memref<2x8x64xf32, #tpu.memory_space<vmem>>, vector<2x8x64xf32>,
      %c0_123 = arith.constant 0 : index
      %c0_124 = arith.constant 0 : index
      %341 = vector.load %arg24[%c0_123, %c0_124] : memref<64x128xf32, #tpu.memory_space<vmem>>, vector<64x128xf32>
      %cst_125 = arith.constant dense<0.000000e+00> : vector<16x128xf32>
      %342 = tpu.matmul %338, %341, %cst_125 {dimension_numbers = #tpu.dot_dimension_numbers<[1], [0], [0], [1], [0, 0, 1, 1], [], []>} : vector<16x64xf32>, vector<64x128xf32>, vector<16x128xf32> -> vector<16x128xf32>
      %c0_126 = arith.constant 0 : index
      %c0_127 = arith.constant 0 : index
      %343 = vector.load %arg25[%c0_126, %c0_127] : memref<1x128xf32, #tpu.memory_space<vmem>>, vector<1x128xf32>
      %344 = vector.broadcast %343 : vector<1x128xf32> to vector<16x128xf32>
      %345 = arith.addf %342, %344 : vector<16x128xf32>
      %346 = vector.shape_cast %345 : vector<16x128xf32> to vector<2x8x128xf32>
      %c0_128 = arith.constant 0 : index
      %c0_129 = arith.constant 0 : index
      %c0_130 = arith.constant 0 : index
      %347 = vector.load %arg27[%c0_128, %c0_129, %c0_130] : memref<2x8x128xf32, #tpu.memory_space<vmem>>, vector<2x8x128xf32>
      tpu.vector_store %arg27[%c0_128, %c0_129, %c0_130], %346 {strides = array<i32>} : memref<2x8x128xf32, #tpu.memory_space<vmem>>, vector<2x8x128xf32>,
    } else {
    }
    return
  }
  func.func @transform_0(%arg0: i32, %arg1: i32) -> (i32, i32, i32) {
    %c0_i32 = arith.constant 0 : i32
    %c0_i32_0 = arith.constant 0 : i32
    %c0_i32_1 = arith.constant 0 : i32
    return %arg0, %c0_i32, %c0_i32_0 : i32, i32, i32
  }
  func.func @transform_1(%arg0: i32, %arg1: i32) -> (i32, i32) {
    %c0_i32 = arith.constant 0 : i32
    %c0_i32_0 = arith.constant 0 : i32
    return %arg0, %c0_i32 : i32, i32
  }
  func.func @transform_2(%arg0: i32, %arg1: i32) -> (i32, i32) {
    %c0_i32 = arith.constant 0 : i32
    %c0_i32_0 = arith.constant 0 : i32
    %c0_i32_1 = arith.constant 0 : i32
    return %c0_i32, %c0_i32_0 : i32, i32
  }
  func.func @transform_3(%arg0: i32, %arg1: i32) -> (i32, i32) {
    %c0_i32 = arith.constant 0 : i32
    %c0_i32_0 = arith.constant 0 : i32
    %c0_i32_1 = arith.constant 0 : i32
    return %c0_i32, %c0_i32_0 : i32, i32
  }
  func.func @transform_4(%arg0: i32, %arg1: i32) -> (i32, i32) {
    %c0_i32 = arith.constant 0 : i32
    %c0_i32_0 = arith.constant 0 : i32
    %c0_i32_1 = arith.constant 0 : i32
    return %c0_i32, %c0_i32_0 : i32, i32
  }
  func.func @transform_5(%arg0: i32, %arg1: i32) -> (i32, i32) {
    %c0_i32 = arith.constant 0 : i32
    %c0_i32_0 = arith.constant 0 : i32
    %c0_i32_1 = arith.constant 0 : i32
    return %c0_i32, %c0_i32_0 : i32, i32
  }
  func.func @transform_6(%arg0: i32, %arg1: i32) -> (i32, i32) {
    %c0_i32 = arith.constant 0 : i32
    %c0_i32_0 = arith.constant 0 : i32
    %c0_i32_1 = arith.constant 0 : i32
    return %c0_i32, %c0_i32_0 : i32, i32
  }
  func.func @transform_7(%arg0: i32, %arg1: i32) -> (i32, i32) {
    %c0_i32 = arith.constant 0 : i32
    %c0_i32_0 = arith.constant 0 : i32
    %c0_i32_1 = arith.constant 0 : i32
    return %c0_i32, %c0_i32_0 : i32, i32
  }
  func.func @transform_8(%arg0: i32, %arg1: i32) -> (i32, i32, i32) {
    %c0_i32 = arith.constant 0 : i32
    %c0_i32_0 = arith.constant 0 : i32
    %c0_i32_1 = arith.constant 0 : i32
    return %arg1, %c0_i32, %c0_i32_0 : i32, i32, i32
  }
  func.func @transform_9(%arg0: i32, %arg1: i32) -> (i32, i32, i32) {
    %c0_i32 = arith.constant 0 : i32
    %c0_i32_0 = arith.constant 0 : i32
    %c0_i32_1 = arith.constant 0 : i32
    return %arg1, %c0_i32, %c0_i32_0 : i32, i32, i32
  }
  func.func @transform_10(%arg0: i32, %arg1: i32) -> (i32, i32, i32) {
    %c0_i32 = arith.constant 0 : i32
    %c0_i32_0 = arith.constant 0 : i32
    %c0_i32_1 = arith.constant 0 : i32
    return %arg1, %c0_i32, %c0_i32_0 : i32, i32, i32
  }
  func.func @transform_11(%arg0: i32, %arg1: i32) -> (i32, i32, i32) {
    %c0_i32 = arith.constant 0 : i32
    %c0_i32_0 = arith.constant 0 : i32
    %c0_i32_1 = arith.constant 0 : i32
    return %arg1, %c0_i32, %c0_i32_0 : i32, i32, i32
  }
  func.func @transform_12(%arg0: i32, %arg1: i32) -> (i32, i32, i32) {
    %c0_i32 = arith.constant 0 : i32
    %c0_i32_0 = arith.constant 0 : i32
    %c0_i32_1 = arith.constant 0 : i32
    return %arg1, %c0_i32, %c0_i32_0 : i32, i32, i32
  }
  func.func @transform_13(%arg0: i32, %arg1: i32) -> (i32, i32, i32) {
    %c0_i32 = arith.constant 0 : i32
    %c0_i32_0 = arith.constant 0 : i32
    %c0_i32_1 = arith.constant 0 : i32
    return %arg1, %c0_i32, %c0_i32_0 : i32, i32, i32
  }
  func.func @transform_14(%arg0: i32, %arg1: i32) -> (i32, i32, i32) {
    %c0_i32 = arith.constant 0 : i32
    %c0_i32_0 = arith.constant 0 : i32
    %c0_i32_1 = arith.constant 0 : i32
    return %arg1, %c0_i32, %c0_i32_0 : i32, i32, i32
  }
  func.func @transform_15(%arg0: i32, %arg1: i32) -> (i32, i32, i32) {
    %c0_i32 = arith.constant 0 : i32
    %c0_i32_0 = arith.constant 0 : i32
    %c0_i32_1 = arith.constant 0 : i32
    return %arg1, %c0_i32, %c0_i32_0 : i32, i32, i32
  }
  func.func @transform_16(%arg0: i32, %arg1: i32) -> (i32, i32, i32) {
    %c0_i32 = arith.constant 0 : i32
    %c0_i32_0 = arith.constant 0 : i32
    %c0_i32_1 = arith.constant 0 : i32
    return %arg1, %c0_i32, %c0_i32_0 : i32, i32, i32
  }
  func.func @transform_17(%arg0: i32, %arg1: i32) -> (i32, i32, i32) {
    %c0_i32 = arith.constant 0 : i32
    %c0_i32_0 = arith.constant 0 : i32
    %c0_i32_1 = arith.constant 0 : i32
    return %arg1, %c0_i32, %c0_i32_0 : i32, i32, i32
  }
  func.func @transform_18(%arg0: i32, %arg1: i32) -> (i32, i32, i32) {
    %c0_i32 = arith.constant 0 : i32
    %c0_i32_0 = arith.constant 0 : i32
    %c0_i32_1 = arith.constant 0 : i32
    return %arg1, %c0_i32, %c0_i32_0 : i32, i32, i32
  }
  func.func @transform_19(%arg0: i32, %arg1: i32) -> (i32, i32, i32) {
    %c0_i32 = arith.constant 0 : i32
    %c0_i32_0 = arith.constant 0 : i32
    %c0_i32_1 = arith.constant 0 : i32
    return %arg1, %c0_i32, %c0_i32_0 : i32, i32, i32
  }
  func.func @transform_20(%arg0: i32, %arg1: i32) -> (i32, i32) {
    %c0_i32 = arith.constant 0 : i32
    %c0_i32_0 = arith.constant 0 : i32
    %c0_i32_1 = arith.constant 0 : i32
    return %c0_i32, %c0_i32_0 : i32, i32
  }
  func.func @transform_21(%arg0: i32, %arg1: i32) -> (i32, i32) {
    %c0_i32 = arith.constant 0 : i32
    %c0_i32_0 = arith.constant 0 : i32
    %c0_i32_1 = arith.constant 0 : i32
    return %c0_i32, %c0_i32_0 : i32, i32
  }
  func.func @transform_22(%arg0: i32, %arg1: i32) -> (i32, i32) {
    %c0_i32 = arith.constant 0 : i32
    %c0_i32_0 = arith.constant 0 : i32
    %c0_i32_1 = arith.constant 0 : i32
    return %c0_i32, %c0_i32_0 : i32, i32
  }
  func.func @transform_23(%arg0: i32, %arg1: i32) -> (i32, i32) {
    %c0_i32 = arith.constant 0 : i32
    %c0_i32_0 = arith.constant 0 : i32
    %c0_i32_1 = arith.constant 0 : i32
    return %c0_i32, %c0_i32_0 : i32, i32
  }
  func.func @transform_24(%arg0: i32, %arg1: i32) -> (i32, i32, i32) {
    %c0_i32 = arith.constant 0 : i32
    %c0_i32_0 = arith.constant 0 : i32
    %c0_i32_1 = arith.constant 0 : i32
    return %arg0, %c0_i32, %c0_i32_0 : i32, i32, i32
  }
  func.func @transform_25(%arg0: i32, %arg1: i32) -> (i32, i32, i32) {
    %c0_i32 = arith.constant 0 : i32
    %c0_i32_0 = arith.constant 0 : i32
    %c0_i32_1 = arith.constant 0 : i32
    return %arg0, %c0_i32, %c0_i32_0 : i32, i32, i32
  }
}

</mosaic_0001>

<bundles_post_ra>
// kernel: tpu_custom_call.1
= control target key start
LH: loop header
LB: loop body
LE: loop exit
PB: predicated region body
PF: predicated region fallthrough
CT: control target
= control target key end

     0   :  { %s7190_s0 = inlined_call_operand.vmem [shape: f32[2,8,128], index: 0, kind: input, shape index: {}]   ;;  %s7191_s1 = inlined_call_operand.vmem [shape: f32[2,8], index: 1, kind: input, shape index: {}]   ;;  %s7192_s2 = inlined_call_operand.vmem [shape: f32[128,64], index: 2, kind: input, shape index: {}]   ;;  %s7193_s3 = inlined_call_operand.vmem [shape: f32[1,64], index: 3, kind: input, shape index: {}]   ;;  %s7194_s4 = inlined_call_operand.vmem [shape: f32[1,64], index: 4, kind: input, shape index: {}]   ;;  %s7195_s5 = inlined_call_operand.vmem [shape: f32[1,64], index: 5, kind: input, shape index: {}]   ;;  %s7196_s6 = inlined_call_operand.vmem [shape: f32[1,64], index: 6, kind: input, shape index: {}]   ;;  %s7197_s7 = inlined_call_operand.vmem [shape: f32[8,64], index: 7, kind: input, shape index: {}]   ;;  %s7198_s8 = inlined_call_operand.vmem [shape: f32[2,1,64], index: 8, kind: input, shape index: {}]   ;;  %s7199_s9 = inlined_call_operand.vmem [shape: f32[2,1,64], index: 9, kind: input, shape index: {}]   ;;  %s7200_s10 = inlined_call_operand.vmem [shape: f32[2,64,192], index: 10, kind: input, shape index: {}]   ;;  %s7201_s11 = inlined_call_operand.vmem [shape: f32[2,1,192], index: 11, kind: input, shape index: {}]   ;;  %s7202_s12 = inlined_call_operand.vmem [shape: f32[2,64,64], index: 12, kind: input, shape index: {}]   ;;  %s7203_s13 = inlined_call_operand.vmem [shape: f32[2,1,64], index: 13, kind: input, shape index: {}]   ;;  %s7204_s14 = inlined_call_operand.vmem [shape: f32[2,1,64], index: 14, kind: input, shape index: {}]   ;;  %s7205_s15 = inlined_call_operand.vmem [shape: f32[2,1,64], index: 15, kind: input, shape index: {}]   ;;  %s7206_s16 = inlined_call_operand.vmem [shape: f32[2,64,256], index: 16, kind: input, shape index: {}]   ;;  %s7207_s17 = inlined_call_operand.vmem [shape: f32[2,1,256], index: 17, kind: input, shape index: {}]   ;;  %s7208_s18 = inlined_call_operand.vmem [shape: f32[2,256,64], index: 18, kind: input, shape index: {}]   ;;  %s7209_s19 = inlined_call_operand.vmem [shape: f32[2,1,64], index: 19, kind: input, shape index: {}]   ;;  %s7210_s20 = inlined_call_operand.vmem [shape: f32[1,64], index: 20, kind: input, shape index: {}]   ;;  %s7211_s21 = inlined_call_operand.vmem [shape: f32[1,64], index: 21, kind: input, shape index: {}]   ;;  %s7212_s22 = inlined_call_operand.vmem [shape: f32[64,128], index: 22, kind: input, shape index: {}]   ;;  %s7213_s23 = inlined_call_operand.vmem [shape: f32[1,128], index: 23, kind: input, shape index: {}]   ;;  %s7214_s24 = inlined_call_operand.hbm [shape: f32[2,8,64], index: 24, kind: output, shape index: {0}]   ;;  %s7215_s25 = inlined_call_operand.hbm [shape: f32[2,8,128], index: 25, kind: output, shape index: {1}]  }
   0x1   :  { %7222 = sst [smem:[#allocation13_spill]] %s7190_s0 }
   0x2   :  { %7223 = sst [smem:[#allocation14_spill]] %s7191_s1 }
   0x3   :  { %7224 = sst [smem:[#allocation15_spill]] %s7192_s2 }
   0x4   :  { %7225 = sst [smem:[#allocation16_spill]] %s7193_s3 }
   0x5   :  { %7226 = sst [smem:[#allocation17_spill]] %s7194_s4 }
   0x6   :  { %7227 = sst [smem:[#allocation18_spill]] %s7195_s5 }
   0x7   :  { %7228 = sst [smem:[#allocation19_spill]] %s7196_s6 }
   0x8   :  { %7229 = sst [smem:[#allocation20_spill]] %s7197_s7 }
   0x9   :  { %7230 = sst [smem:[#allocation21_spill]] %s7198_s8 }
   0xa   :  { %7231 = sst [smem:[#allocation22_spill]] %s7199_s9 }
   0xb   :  { %7232 = sst [smem:[#allocation23_spill]] %s7200_s10 }
   0xc   :  { %7233 = sst [smem:[#allocation24_spill]] %s7201_s11 }
   0xd   :  { %7234 = sst [smem:[#allocation25_spill]] %s7210_s20 }
   0xe   :  { %7235 = sst [smem:[#allocation26_spill]] %s7211_s21 }
   0xf   :  { %7236 = sst [smem:[#allocation27_spill]] %s7213_s23 }
  0x10   :  { %7237 = sst [smem:[#allocation28_spill]] %s7214_s24 }
  0x11   :  { %7238 = sst [smem:[#allocation29_spill]] %s7215_s25 }
  0x12   :  { %31 = vsyncpa [#allocation5], 0 }
  0x13   :  { %32 = vsyncpa [#allocation7], 0  ;;  %s6458_s29 = smov 0   ;;  %s6460_s2 = smov 0  }
  0x14   :  { %s6462_s6 = smov 0  }
  0x15 LB: > { %7239 = sst [smem:[#allocation10_spill]] %s6300_s2  ;;  %s47_s7 = sadd.s32 1, %s6300_s2  ;;  %s6304_s6 = sphi %s6462_s6, %s38_s6   ;;  %s6300_s2 = sphi %s6460_s2, %s7272_s2   ;;  %s6296_s29 = sphi %s6458_s29, %s7271_s29  }
  0x16   : > { %7240 = sst [smem:[#allocation11_spill]] %s6304_s6  ;;  %p48_p0 = scmp.ge.s32.totalorder %s47_s7, 2 }
  0x17   : > { %p5418_p1 = scmp.ge.s32.totalorder %s6304_s6, 1  ;;  %p820_p2 = scmp.lt.s32.totalorder %s6304_s6, 3 }
  0x18   : > { %s7274_s7 = smov (%p48_p0, %s47_s7), 0 }
  0x19   : > { %7241 = sst [smem:[#allocation12_spill]] %s7274_s7  ;;  %p821_p3 = pnand %p5418_p1, %p820_p2 }
  0x1a   : > { %p943_p4 = scmp.lt.s32.totalorder (!%p821_p3), %s6296_s29, 1  ;;  %s7244_s10 = sld [smem:[#allocation23_spill]] (!%p821_p3) }
  0x1b   : > { %824 = sbr.rel (%p821_p3) target bundleno = 7092 (0x1bb4), region = 116  ;;  %s7245_s11 = sld [smem:[#allocation24_spill]] (!%p821_p3) }
  0x1c   : > { %p5429_p5 = scmp.ne.s32.totalorder (!%p821_p3), %s6296_s29, 0 }
  0x22   : > { %s6481_s3 = scalar_select %p943_p4, %s6296_s29, 1 }
  0x23   : > { %994 = sbr.rel (%p5429_p5) target bundleno = 610 (0x262), region = 120  ;;  %s7246_s7 = sld [smem:[#allocation15_spill]] (!%p5429_p5)  ;;  %vm1090_vm0 = vcmask (!%p5429_p5), 523264   ;;  %v6306_v26 = vmov (!%p5429_p5), 0.0  }
  0x24   : > { %s5526_s0 = sshll.u32 %s6481_s3, 7  ;;  %s5421_s30 = sshll.u32 %s6481_s3, 1  ;;  %1168 = vst.msk [vmem:[#allocation3] sm:$0xff] (!%p5429_p5), %vm1090_vm0, %v6306_v26  ;;  %1169 = vst.msk [vmem:[#allocation3 + $0x8] sm:$0xff] (!%p5429_p5), %vm1090_vm0, %v6306_v26 }
  0x25   : > { %s6496_s26 = scalar_lea.vmem %s7244_s10, %s5526_s0  ;;  %s6501_s24 = scalar_lea.vmem %s7245_s11, %s5421_s30 }
  0x26   : > { %s5527_s6 = sshll.u32 %s6481_s3, 6  ;;  %s6524_s20 = scalar_lea.vmem %s7206_s16, %s5526_s0 }
  0x27   : > { %s6511_s28 = scalar_lea.vmem %s7202_s12, %s5527_s6  ;;  %s6529_s8 = scalar_lea.vmem %s7207_s17, %s5421_s30 }
  0x28   : > { %s5529_s6 = sshll.u32 %s6481_s3, 8  ;;  %s7247_s30 = sld [smem:[#allocation13_spill]] (!%p5429_p5) }
  0x29   : > { %s6535_s5 = scalar_lea.vmem %s7208_s18, %s5529_s6  ;;  %v997_v0 = vld [vmem:[%s7246_s7] sm:$0xff] (!%p5429_p5)  ;;  %v998_v1 = vld [vmem:[%s7246_s7 + $0x8] sm:$0xff] (!%p5429_p5)  ;;  %v999_v2 = vld [vmem:[%s7246_s7 + $0x10] sm:$0xff] (!%p5429_p5)  ;;  %s7248_s2 = sld [smem:[#allocation20_spill]] (!%p5429_p5) }
  0x2a   : > { %v5938_v3 = vpack.c.bf16 %v998_v1, %v997_v0  ;;  %v1000_v4 = vld [vmem:[%s7246_s7 + $0x18] sm:$0xff]  ;;  %v1001_v6 = vld [vmem:[%s7246_s7 + $0x20] sm:$0xff]  ;;  %v1002_v7 = vld [vmem:[%s7246_s7 + $0x28] sm:$0xff]  ;;  %s7249_s11 = sld [smem:[#allocation16_spill]]  ;;  %s7250_s21 = sld [smem:[#allocation18_spill]] }
  0x2b   : > { %v5942_v5 = vpack.c.bf16 %v1000_v4, %v999_v2  ;;  %v5946_v8 = vpack.c.bf16 %v1002_v7, %v1001_v6  ;;  %v1003_v10 = vld [vmem:[%s7246_s7 + $0x30] sm:$0xff]  ;;  %v1004_v11 = vld [vmem:[%s7246_s7 + $0x38] sm:$0xff]  ;;  %v1005_v13 = vld [vmem:[%s7246_s7 + $0x40] sm:$0xff]  ;;  %s7251_s27 = sld [smem:[#allocation17_spill]]  ;;  %s7252_s25 = sld [smem:[#allocation19_spill]] }
  0x2c   : > { %5939 = vmatprep.subr.bf16.mxu0 %v5938_v3  ;;  %v5950_v12 = vpack.c.bf16 %v1004_v11, %v1003_v10  ;;  %v1006_v14 = vld [vmem:[%s7246_s7 + $0x48] sm:$0xff]  ;;  %v1007_v16 = vld [vmem:[%s7246_s7 + $0x50] sm:$0xff]  ;;  %v1008_v17 = vld [vmem:[%s7246_s7 + $0x58] sm:$0xff] }
  0x2d   : > { %5941 = vmatpush3.bf16.msra.mxu0 %v5938_v3  ;;  %v5954_v15 = vpack.c.bf16 %v1006_v14, %v1005_v13  ;;  %v5958_v18 = vpack.c.bf16 %v1008_v17, %v1007_v16  ;;  %v1009_v19 = vld [vmem:[%s7246_s7 + $0x60] sm:$0xff]  ;;  %v1010_v20 = vld [vmem:[%s7246_s7 + $0x68] sm:$0xff]  ;;  %v1011_v22 = vld [vmem:[%s7246_s7 + $0x70] sm:$0xff] }
  0x2e   : > { %5943 = vmatprep.subr.bf16.mxu0 %v5942_v5  ;;  %v995_v9 = vld [vmem:[%s7247_s30] sm:$0xff]  ;;  %v5962_v21 = vpack.c.bf16 %v1010_v20, %v1009_v19  ;;  %v1012_v23 = vld [vmem:[%s7246_s7 + $0x78] sm:$0xff]  ;;  %v996_v25 = vld [vmem:[%s7247_s30 + $0x8] sm:$0xff] }
  0x2f   : > { %5716 = vmatprep.mubr.f32.mxu0 %v995_v9  ;;  %v5966_v24 = vpack.c.bf16 %v1012_v23, %v1011_v22  ;;  %v1134_v27 = vld [vmem:[%s7248_s2] sm:$0xff] }
  0x30   : > { %v1137_v28 = vsel %vm1090_vm0, %v1134_v27, 0.0  ;;  %v5430_v59 = vld [vmem:[%s7249_s11] ss:$0 sm:$0xff] }
  0x31   : > { %5945 = vmatpush3.bf16.msra.mxu0 %v5942_v5  ;;  %1138 = vadd.xlane.f32.xlu1 %v1137_v28  ;;  %v5432_v61 = vld [vmem:[%s7250_s21] ss:$0 sm:$0xff] }
  0x32   : > { %5947 = vmatprep.subr.bf16.mxu0 %v5946_v8  ;;  %v5431_v1 = vld [vmem:[%s7251_s27] ss:$0 sm:$0xff] }
  0x33   : > { %v5433_v2 = vld [vmem:[%s7252_s25] ss:$0 sm:$0xff] }
  0x35   : > { %5949 = vmatpush3.bf16.msra.mxu0 %v5946_v8 }
  0x36   : > { %5951 = vmatprep.subr.bf16.mxu0 %v5950_v12 }
  0x39   : > { %5953 = vmatpush3.bf16.msra.mxu0 %v5950_v12 }
  0x3a   : > { %5955 = vmatprep.subr.bf16.mxu0 %v5954_v15 }
  0x3d   : > { %5957 = vmatpush3.bf16.msra.mxu0 %v5954_v15 }
  0x3e   : > { %5959 = vmatprep.subr.bf16.mxu0 %v5958_v18 }
  0x41   : > { %5961 = vmatpush3.bf16.msra.mxu0 %v5958_v18 }
  0x42   : > { %5963 = vmatprep.subr.bf16.mxu0 %v5962_v21 }
  0x45   : > { %5965 = vmatpush3.bf16.msra.mxu0 %v5962_v21 }
  0x46   : > { %5967 = vmatprep.subr.bf16.mxu0 %v5966_v24 }
  0x49   : > { %5969 = vmatpush3.bf16.msra.mxu0 %v5966_v24 }
  0x4c   : > { %5717 = vmatmul.mubr.f32.vlgmr.msra.gmra.mrb[0].mxu0 %v996_v25 }
  0xbe   : > { %v1139_v33 = vpop.xlane.xlu1 %1138 }
  0xbf   : > { %v1140_v34 = vmul.f32 0.015625, %v1139_v33 }
  0xc1   : > { %v1141_v37 = vsub.f32 %v1134_v27, %v1140_v34 }
  0xc3   : > { %v1142_v42 = vmul.f32 %v1141_v37, %v1141_v37 }
  0xc5   : > { %v1143_v45 = vsel %vm1090_vm0, %v1142_v42, 0.0 }
 0x11f   : > { %v5718_v29 = vpop.f32.mrb[0].mxu0 }
 0x120   : > { %v1079_v30 = vpop.f32.mrb[1].mxu0  ;;  %v1094_v32 = vsel %vm1090_vm0, %v5718_v29, 0.0 }
 0x121   : > { %v1091_v31 = vsel %vm1090_vm0, %v1079_v30, 0.0 }
 0x122   : > { %1092 = vadd.xlane.f32.xlu0 %v1091_v31 }
 0x126   : > { %1095 = vadd.xlane.f32.xlu0 %v1094_v32 }
 0x1af   : > { %v1093_v35 = vpop.xlane.xlu0 %1092 }
 0x1b0   : > { %v1098_v36 = vmul.f32 0.015625, %v1093_v35 }
 0x1b2   : > { %v1100_v38 = vsub.f32 %v1079_v30, %v1098_v36 }
 0x1b3   : > { %v1096_v39 = vpop.xlane.xlu0 %1095 }
 0x1b4   : > { %v1099_v40 = vmul.f32 0.015625, %v1096_v39  ;;  %v1102_v41 = vmul.f32 %v1100_v38, %v1100_v38 }
 0x1b6   : > { %v1101_v43 = vsub.f32 %v5718_v29, %v1099_v40  ;;  %v1104_v44 = vsel %vm1090_vm0, %v1102_v41, 0.0 }
 0x1b7   : > { %1105 = vadd.xlane.f32.xlu1 %v1104_v44 }
 0x1b8   : > { %v1103_v46 = vmul.f32 %v1101_v43, %v1101_v43 }
 0x1ba   : > { %v1107_v47 = vsel %vm1090_vm0, %v1103_v46, 0.0 }
 0x1bb   : > { %1144 = vadd.xlane.f32.xlu1 %v1143_v45  ;;  %1108 = vadd.xlane.f32.xlu0 %v1107_v47 }
 0x244   : > { %v1106_v48 = vpop.xlane.xlu1 %1105 }
 0x245   : > { %v1110_v49 = vmul.f32 0.015625, %v1106_v48 }
 0x247   : > { %v1112_v50 = vadd.f32 1e-05, %v1110_v49 }
 0x248   : > { %v1145_v51 = vpop.xlane.xlu1 %1144  ;;  %v1109_v52 = vpop.xlane.xlu0 %1108 }
 0x249   : > { %6122 = vrsqrt.f32 %v1112_v50  ;;  %v1146_v53 = vmul.f32 0.015625, %v1145_v51  ;;  %v1111_v54 = vmul.f32 0.015625, %v1109_v52 }
 0x24b   : > { %v1147_v55 = vadd.f32 1e-05, %v1146_v53  ;;  %v1113_v56 = vadd.f32 1e-05, %v1111_v54 }
 0x24d   : > { %6124 = vrsqrt.f32 %v1147_v55 }
 0x24e   : > { %6126 = vrsqrt.f32 %v1113_v56 }
 0x253   : > { %v6123_v57 = vpop.eup %6122 }
 0x254   : > { %v1116_v58 = vmul.f32 %v6123_v57, %v1100_v38 }
 0x256   : > { %v1124_v63 = vmul.f32 %v5430_v59, %v1116_v58 }
 0x257   : > { %v6125_v60 = vpop.eup %6124 }
 0x258   : > { %v6127_v62 = vpop.eup %6126  ;;  %v1149_v0 = vmul.f32 %v6125_v60, %v1141_v37  ;;  %v1132_v6 = vadd.f32 %v5431_v1, %v1124_v63 }
 0x259   : > { %v1117_v3 = vmul.f32 %v6127_v62, %v1101_v43 }
 0x25a   : > { %v1156_v4 = vmul.f32 %v5432_v61, %v1149_v0 }
 0x25b   : > { %v1125_v5 = vmul.f32 %v5430_v59, %v1117_v3 }
 0x25c   : > { %v1163_v7 = vadd.f32 %v5433_v2, %v1156_v4 }
 0x25d   : > { %v1133_v8 = vadd.f32 %v5431_v1, %v1125_v5 }
 0x25e   : > { %v1164_v9 = vadd.f32 %v1163_v7, %v1132_v6 }
 0x25f   : > { %v1165_v10 = vadd.f32 %v1163_v7, %v1133_v8 }
 0x260   : > { %1166 = vst.msk [vmem:[#allocation2] sm:$0xff] %vm1090_vm0, %v1164_v9 }
 0x261   : > { %1167 = vst.msk [vmem:[#allocation2 + $0x8] sm:$0xff] %vm1090_vm0, %v1165_v10 }
 0x262 PF: > { %vm1174_vm1 = vcmask 523264   ;;  %v1219_v25 = vld [vmem:[%s6496_s26 + $0x8] sm:$0xff]  ;;  %v1221_v26 = vld [vmem:[%s6496_s26 + $0x18] sm:$0xff]  ;;  %v1218_v28 = vld [vmem:[%s6496_s26] sm:$0xff]  ;;  %v6307_v44 = vmov 0.0   ;;  %s7253_s4 = sld [smem:[#allocation21_spill]]  ;;  %v1236_v2 = vlaneseq }
 0x263   : > { %v5970_v27 = vpack.c.bf16 %v1221_v26, %v1219_v25  ;;  %v1220_v29 = vld [vmem:[%s6496_s26 + $0x10] sm:$0xff]  ;;  %v1223_v31 = vld [vmem:[%s6496_s26 + $0x28] sm:$0xff]  ;;  %v1225_v32 = vld [vmem:[%s6496_s26 + $0x38] sm:$0xff]  ;;  %1316 = vmatprep.mubr.f32.mxu0 %v6307_v44  ;;  %5729 = vmatprep.subr.mxu1 %v6307_v44  ;;  %s7255_s0 = sld [smem:[#allocation22_spill]]  ;;  %vm6308_vm2 = vmmov 0   ;;  %s6309_s21 = smov 64  }
 0x264   : > { %v5972_v30 = vpack.c.bf16 %v1220_v29, %v1218_v28  ;;  %v5974_v33 = vpack.c.bf16 %v1225_v32, %v1223_v31  ;;  %v1222_v34 = vld [vmem:[%s6496_s26 + $0x20] sm:$0xff]  ;;  %v1224_v35 = vld [vmem:[%s6496_s26 + $0x30] sm:$0xff]  ;;  %v1227_v37 = vld [vmem:[%s6496_s26 + $0x48] sm:$0xff]  ;;  %v6657_v3 = vshrl.u32 %v1236_v2, 7  ;;  %5731 = vmatprep.mubr.msk.f32.mxu1 %vm6308_vm2, %v6307_v44  ;;  %s6311_s23 = smov 120   ;;  %vm1364_vm3 = vcmask 64512  }
 0x265   : > { %5971 = vmatprep.subr.bf16.mxu0 %v5970_v27  ;;  %v5976_v36 = vpack.c.bf16 %v1224_v35, %v1222_v34  ;;  %v1229_v38 = vld [vmem:[%s6496_s26 + $0x58] sm:$0xff]  ;;  %v1226_v39 = vld [vmem:[%s6496_s26 + $0x40] sm:$0xff]  ;;  %v1228_v41 = vld [vmem:[%s6496_s26 + $0x50] sm:$0xff]  ;;  %s7257_s2 = sld [smem:[#allocation14_spill]]  ;;  %s6313_s25 = smov 48  }
 0x266   : > { %5973 = vmatpush1.bf16.msra.mxu0 %v5972_v30  ;;  %v5978_v40 = vpack.c.bf16 %v1229_v38, %v1227_v37  ;;  %v1231_v42 = vld [vmem:[%s6496_s26 + $0x68] sm:$0xff]  ;;  %v1233_v43 = vld [vmem:[%s6496_s26 + $0x78] sm:$0xff]  ;;  %v5980_v45 = vpack.c.bf16 %v1228_v41, %v1226_v39  ;;  %v1230_v47 = vld [vmem:[%s6496_s26 + $0x60] sm:$0xff]  ;;  %v6664_v4 = vsub.s32 0, %v6657_v3  ;;  %v1242_v6 = vsub.s32 1, %v6657_v3  ;;  %s6314_s10 = smov 112  }
 0x267   : > { %v1170_v11 = vld [vmem:[#allocation2] sm:$0xff]  ;;  %5975 = vmatprep.subr.bf16.mxu0 %v5974_v33  ;;  %v5982_v46 = vpack.c.bf16 %v1233_v43, %v1231_v42  ;;  %v1232_v48 = vld [vmem:[%s6496_s26 + $0x70] sm:$0xff]  ;;  %s6317_s9 = smov 32   ;;  %s6318_s11 = smov 96  }
 0x268   : > { %v1171_v12 = vld [vmem:[#allocation2 + $0x8] sm:$0xff]  ;;  %v1175_v13 = vsel %vm1174_vm1, %v1170_v11, 0.0  ;;  %v5984_v49 = vpack.c.bf16 %v1232_v48, %v1230_v47  ;;  %s7254_s26 = scalar_lea.vmem %s7253_s4, %s6481_s3  ;;  %v1234_v5 = vld [vmem:[%s6501_s24] sm:$0x3]  ;;  %s6310_s24 = smov 56  }
 0x269   : > { %1176 = vadd.xlane.f32.xlu0 %v1175_v13  ;;  %v1178_v14 = vsel %vm1174_vm1, %v1171_v12, 0.0  ;;  %v5434_v57 = vld [vmem:[%s7254_s26] ss:$0 sm:$0xff]  ;;  %s7256_s1 = scalar_lea.vmem %s7255_s0, %s6481_s3  ;;  %v1239_v7 = vrot.slane %v1234_v5, %v6664_v4  ;;  %v1243_v8 = vrot.slane %v1234_v5, %v1242_v6  ;;  %s6315_s4 = smov 40  }
 0x26a   : > { %5977 = vmatpush1.bf16.msra.mxu0 %v5976_v36  ;;  %v5435_v59 = vld [vmem:[%s7256_s1] ss:$0 sm:$0xff]  ;;  %s6316_s26 = smov 104   ;;  %s6319_s0 = smov 24  }
 0x26b   : > { %5979 = vmatprep.subr.bf16.mxu0 %v5978_v40  ;;  %v5438_v25 = vld.sshfl [vmem:[%s7257_s2] sm:$0x11 pattern:$0x75316420]  ;;  %s6320_s1 = smov 88   ;;  %s6324_s6 = smov 72  }
 0x26c   : > { %v1346_v26 = vcombine.high %v5438_v25, %v5438_v25  ;;  %p5513_p6 = scmp.ge.s32.totalorder %s6296_s29, 1 }
 0x26d   : > { %1179 = vadd.xlane.f32.xlu0 %v1178_v14 }
 0x26e   : > { %5981 = vmatpush1.bf16.msra.mxu0 %v5980_v45 }
 0x26f   : > { %5983 = vmatprep.subr.bf16.mxu0 %v5982_v46 }
 0x272   : > { %5985 = vmatpush1.bf16.msra.mxu0 %v5984_v49 }
 0x273   : > { %5719 = vmatprep.subr.mxu0 %v6307_v44 }
 0x2f6   : > { %v1177_v15 = vpop.xlane.xlu0 %1176 }
 0x2f7   : > { %v1182_v16 = vmul.f32 0.015625, %v1177_v15 }
 0x2f9   : > { %v1184_v17 = vsub.f32 %v1170_v11, %v1182_v16 }
 0x2fa   : > { %v1180_v18 = vpop.xlane.xlu0 %1179 }
 0x2fb   : > { %v1183_v19 = vmul.f32 0.015625, %v1180_v18  ;;  %v1186_v20 = vmul.f32 %v1184_v17, %v1184_v17 }
 0x2fd   : > { %v1185_v21 = vsub.f32 %v1171_v12, %v1183_v19  ;;  %v1188_v22 = vsel %vm1174_vm1, %v1186_v20, 0.0 }
 0x2fe   : > { %1189 = vadd.xlane.f32.xlu1 %v1188_v22 }
 0x2ff   : > { %v1187_v23 = vmul.f32 %v1185_v21, %v1185_v21 }
 0x301   : > { %v1191_v24 = vsel %vm1174_vm1, %v1187_v23, 0.0 }
 0x302   : > { %1192 = vadd.xlane.f32.xlu1 %v1191_v24 }
 0x38b   : > { %v1190_v50 = vpop.xlane.xlu1 %1189 }
 0x38c   : > { %v1194_v51 = vmul.f32 0.015625, %v1190_v50 }
 0x38e   : > { %v1196_v52 = vadd.f32 1e-05, %v1194_v51 }
 0x38f   : > { %v1193_v53 = vpop.xlane.xlu1 %1192 }
 0x390   : > { %6128 = vrsqrt.f32 %v1196_v52  ;;  %v1195_v54 = vmul.f32 0.015625, %v1193_v53 }
 0x392   : > { %v1197_v55 = vadd.f32 1e-05, %v1195_v54 }
 0x394   : > { %6130 = vrsqrt.f32 %v1197_v55 }
 0x39a   : > { %v6129_v56 = vpop.eup %6128 }
 0x39b   : > { %v1200_v58 = vmul.f32 %v6129_v56, %v1184_v17 }
 0x39d   : > { %v1208_v60 = vmul.f32 %v5434_v57, %v1200_v58 }
 0x39e   : > { %v6131_v61 = vpop.eup %6130 }
 0x39f   : > { %v1216_v62 = vadd.f32 %v5435_v59, %v1208_v60  ;;  %v1201_v63 = vmul.f32 %v6131_v61, %v1185_v21  ;;  %v6312_v21 = vmov 1966171168  }
 0x3a0   : > { %v1348_v22 = vunpack.c.l.s4 %v6312_v21 }
 0x3a1   : > { %5436 = vmatmul.mubr.msk.f32.vlgmr.msra.gmra.mrb[0].mxu0 %vm1174_vm1, %v1216_v62  ;;  %v1209_v0 = vmul.f32 %v5434_v57, %v1201_v63 }
 0x3a2   : > { %1322 = vmatprep.mubr.f32.mxu0 %v6307_v44  ;;  %v1349_v23 = vunpack.c.0.s8 %v1348_v22 }
 0x3a3   : > { %v1217_v1 = vadd.f32 %v5435_v59, %v1209_v0 }
 0x3a4   : > { %v1352_v24 = vsub.s32 %v1349_v23, %v6657_v3 }
 0x3a5   : > { %5437 = vmatmul.mubr.msk.f32.gmra.mrb[2].mxu0 %vm1174_vm1, %v1217_v1 }
 0x3a6   : > { %5721 = vmatprep.mubr.msk.f32.mxu0 %vm6308_vm2, %v6307_v44  ;;  %v1353_v27 = vrot.slane %v5438_v25, %v1352_v24  ;;  %v1360_v28 = vrot.slane %v1346_v26, %v1352_v24 }
 0x3a8   : > { %v6709_v29 = vrot.slane %v1353_v27, %v6664_v4  ;;  %v6712_v33 = vrot.slane %v1360_v28, %v6664_v4 }
 0x474   : > { %v1318_v9 = vpop.f32.mrb[0].mxu0 }
 0x475   : > { %v6671_v10 = vadd.f32 %v1318_v9, %v1239_v7  ;;  %v1320_v11 = vpop.f32.mrb[1].mxu0 }
 0x476   : > { %v6673_v12 = vadd.f32 %v1320_v11, %v1243_v8 }
 0x477   : > { %1362 = vrot.lane.b32.xlu0 %v6671_v10, %s6309_s21 }
 0x478   : > { %v1324_v13 = vpop.f32.mrb[2].mxu0  ;;  %5730 = vmatpush3.msra.mxu1 %v6673_v12 }
 0x479   : > { %v6677_v14 = vadd.f32 %v1324_v13, %v1239_v7  ;;  %v1326_v15 = vpop.f32.mrb[3].mxu0  ;;  %5734 = vmatprep.subr.mxu1 %v6307_v44 }
 0x47a   : > { %v6680_v16 = vadd.f32 %v1326_v15, %v1243_v8 }
 0x47b   : > { %1440 = vrot.lane.b32.xlu1 %v6677_v14, %s6309_s21  ;;  %s6321_s21 = smov 16  }
 0x47f   : > { %1778 = vrot.lane.b32.xlu1 %v6677_v14, %s6310_s24 }
 0x483   : > { %1776 = vrot.lane.b32.xlu1 %v6677_v14, %s6311_s23 }
 0x4e9   : > { %v1363_v17 = vpop.permute.xlu0 %1362 }
 0x4ea   : > { %5720 = vmatpush3.xpose.msk.msra.mxu0 %vm1364_vm3, %v1363_v17 }
 0x4eb   : > { %5724 = vmatprep.subr.mxu0 %v6307_v44 }
 0x4ed   : > { %v1441_v18 = vpop.permute.xlu1 %1440  ;;  %5722 = vmatmul.mubr.msk.f32.vlgmr.msra.gmra.mrb[4].mxu0 %vm1364_vm3, %v6671_v10 }
 0x4ee   : > { %5725 = vmatpush3.xpose.msk.msra.mxu0 %vm1364_vm3, %v1441_v18  ;;  %5726 = vmatprep.mubr.msk.f32.mxu0 %vm6308_vm2, %v6307_v44 }
 0x4ef   : > { %5744 = vmatprep.subr.mxu0 %v6307_v44 }
 0x4f1   : > { %v1779_v19 = vpop.permute.xlu1 %1778  ;;  %5727 = vmatmul.mubr.msk.f32.vlgmr.msra.gmra.mrb[6].mxu0 %vm1364_vm3, %v6677_v14 }
 0x4f2   : > { %5745 = vmatpush3.xpose.msk.msra.mxu0 %vm1364_vm3, %v1779_v19  ;;  %5746 = vmatprep.mubr.msk.f32.mxu0 %vm6308_vm2, %v6307_v44 }
 0x4f3   : > { %5754 = vmatprep.subr.mxu0 %v6307_v44 }
 0x4f5   : > { %v1777_v20 = vpop.permute.xlu1 %1776 }
 0x4f6   : > { %5747 = vmatmul.mubr.msk.f32.vlgmr.msra.gmra.mrb[8].mxu0 %vm1364_vm3, %v1777_v20 }
 0x4f7   : > { %5756 = vmatprep.mubr.msk.f32.mxu0 %vm6308_vm2, %v6307_v44 }
 0x5c0   : > { %v1435_v30 = vpop.f32.mrb[4].mxu0 }
 0x5c1   : > { %v1516_v31 = vmul.f32 0.35355338, %v1435_v30  ;;  %v5723_v32 = vpop.f32.mrb[5].mxu0 }
 0x5c3   : > { %v1528_v34 = vadd.f32 %v6709_v29, %v1516_v31 }
 0x5c4   : > { %v1512_v35 = vpop.f32.mrb[6].mxu0 }
 0x5c5   : > { %v1517_v36 = vmul.f32 0.35355338, %v1512_v35  ;;  %v5728_v37 = vpop.f32.mrb[7].mxu0  ;;  %v1530_v38 = vsel %vm1364_vm3, %v1528_v34, -inf }
 0x5c6   : > { %1531 = vmax.xlane.f32.xlu0 %v1530_v38 }
 0x5c7   : > { %v1529_v39 = vadd.f32 %v6712_v33, %v1517_v36 }
 0x5c9   : > { %v1850_v40 = vpop.f32.mrb[8].mxu0  ;;  %v1533_v41 = vsel %vm1364_vm3, %v1529_v39, -inf }
 0x5ca   : > { %1534 = vmax.xlane.f32.xlu1 %v1533_v41  ;;  %v5748_v42 = vpop.f32.mrb[9].mxu0  ;;  %v1855_v43 = vmul.f32 0.35355338, %v1850_v40 }
 0x5cc   : > { %v1857_v45 = vadd.f32 %v1855_v43, %v6712_v33 }
 0x5ce   : > { %v1861_v46 = vsel %vm1364_vm3, %v1857_v45, -inf }
 0x5db   : > { %1698 = vrot.lane.b32.xlu1 %v6671_v10, %s6311_s23 }
 0x5ff   : > { %1862 = vmax.xlane.f32.xlu1 %v1861_v46 }
 0x610   : > { %2198 = vrot.lane.b32.xlu1 %v6671_v10, %s6313_s25 }
 0x614   : > { %2196 = vrot.lane.b32.xlu1 %v6671_v10, %s6314_s10 }
 0x618   : > { %2276 = vrot.lane.b32.xlu1 %v6677_v14, %s6313_s25  ;;  %s7258_s25 = scalar_lea.vmem %s7203_s13, %s6481_s3 }
 0x653   : > { %v1532_v47 = vpop.xlane.xlu0 %1531 }
 0x654   : > { %v1536_v48 = vsub.f32 %v1528_v34, %v1532_v47 }
 0x656   : > { %v1538_v49 = vmul.f32 1.442695, %v1536_v48 }
 0x657   : > { %v1535_v50 = vpop.xlane.xlu1 %1534 }
 0x658   : > { %6132 = vpow2.f32 %v1538_v49  ;;  %v1537_v51 = vsub.f32 %v1529_v39, %v1535_v50 }
 0x65a   : > { %v1540_v52 = vmul.f32 1.442695, %v1537_v51 }
 0x65b   : > { %v1699_v57 = vpop.permute.xlu1 %1698 }
 0x65c   : > { %6134 = vpow2.f32 %v1540_v52 }
 0x662   : > { %v6133_v53 = vpop.eup %6132 }
 0x663   : > { %v1542_v54 = vsel %vm1364_vm3, %v6133_v53, 0.0 }
 0x664   : > { %1543 = vadd.xlane.f32.xlu0 %v1542_v54 }
 0x666   : > { %v6135_v55 = vpop.eup %6134 }
 0x667   : > { %v1545_v56 = vsel %vm1364_vm3, %v6135_v55, 0.0 }
 0x668   : > { %1546 = vadd.xlane.f32.xlu0 %v1545_v56 }
 0x67e   : > { %1700 = vrot.lane.b32.xlu0 %v6671_v10, %s6310_s24  ;;  %s6322_s24 = smov 80  }
 0x68c   : > { %v1863_v58 = vpop.xlane.xlu1 %1862 }
 0x68d   : > { %v1865_v59 = vsub.f32 %v1857_v45, %v1863_v58 }
 0x68f   : > { %v1868_v60 = vmul.f32 1.442695, %v1865_v59 }
 0x690   : > { %v2199_v13 = vpop.permute.xlu1 %2198 }
 0x691   : > { %6136 = vpow2.f32 %v1868_v60 }
 0x694   : > { %v2197_v17 = vpop.permute.xlu1 %2196 }
 0x698   : > { %v2277_v19 = vpop.permute.xlu1 %2276 }
 0x69b   : > { %v6137_v61 = vpop.eup %6136 }
 0x69c   : > { %v1873_v62 = vsel %vm1364_vm3, %v6137_v61, 0.0 }
 0x69d   : > { %1874 = vadd.xlane.f32.xlu0 %v1873_v62 }
 0x6b3   : > { %1958 = vrot.lane.b32.xlu0 %v6680_v16, %s6311_s23 }
 0x6b7   : > { %2274 = vrot.lane.b32.xlu0 %v6677_v14, %s6314_s10 }
 0x6f1   : > { %v1544_v63 = vpop.xlane.xlu0 %1543 }
 0x6f2   : > { %6138 = vrcp.f32 %v1544_v63 }
 0x6f5   : > { %v1547_v0 = vpop.xlane.xlu0 %1546 }
 0x6f6   : > { %6140 = vrcp.f32 %v1547_v0 }
 0x6f9   : > { %v1701_v8 = vpop.permute.xlu0 %1700 }
 0x6fc   : > { %v6139_v1 = vpop.eup %6138 }
 0x6fd   : > { %v1550_v2 = vmul.f32 %v6139_v1, %v6133_v53 }
 0x6ff   : > { %5732 = vmatmul.mubr.msk.f32.vlgmr.msra.gmra.mrb[0].mxu1 %vm1364_vm3, %v1550_v2 }
 0x700   : > { %v6141_v5 = vpop.eup %6140  ;;  %5735 = vmatpush3.msra.mxu1 %v6680_v16  ;;  %5736 = vmatprep.mubr.msk.f32.mxu1 %vm6308_vm2, %v6307_v44 }
 0x701   : > { %v1551_v7 = vmul.f32 %v6141_v5, %v6135_v55  ;;  %5739 = vmatprep.subr.mxu1 %v6307_v44 }
 0x703   : > { %5737 = vmatmul.mubr.msk.f32.vlgmr.msra.gmra.mrb[2].mxu1 %vm1364_vm3, %v1551_v7 }
 0x704   : > { %5741 = vmatprep.mubr.msk.f32.mxu1 %vm6308_vm2, %v6307_v44 }
 0x707   : > { %5740 = vmatpush3.xpose.msk.msra.mxu1 %vm1364_vm3, %v1701_v8 }
 0x708   : > { %5749 = vmatprep.subr.mxu1 %v6307_v44 }
 0x70a   : > { %5742 = vmatmul.mubr.msk.f32.vlgmr.msra.gmra.mrb[4].mxu1 %vm1364_vm3, %v1699_v57 }
 0x70b   : > { %5751 = vmatprep.mubr.msk.f32.mxu1 %vm6308_vm2, %v6307_v44 }
 0x72a   : > { %v1875_v9 = vpop.xlane.xlu0 %1874 }
 0x72b   : > { %6142 = vrcp.f32 %v1875_v9 }
 0x72e   : > { %v1959_v11 = vpop.permute.xlu0 %1958 }
 0x72f   : > { %5755 = vmatpush3.msra.mxu0 %v1959_v11  ;;  %v1330_v11 = vld [vmem:[%s6511_s28 + $0x8] sm:$0xff] }
 0x730   : > { %5769 = vmatprep.subr.mxu0 %v6307_v44 }
 0x732   : > { %v2275_v20 = vpop.permute.xlu0 %2274 }
 0x735   : > { %v6143_v15 = vpop.eup %6142 }
 0x736   : > { %v1879_v18 = vmul.f32 %v6143_v15, %v6137_v61 }
 0x738   : > { %5757 = vmatmul.mubr.msk.f32.vlgmr.msra.gmra.mrb[10].mxu0 %vm1364_vm3, %v1879_v18 }
 0x739   : > { %5770 = vmatpush3.xpose.msk.msra.mxu0 %vm1364_vm3, %v2199_v13  ;;  %5771 = vmatprep.mubr.msk.f32.mxu0 %vm6308_vm2, %v6307_v44  ;;  %v1329_v13 = vld [vmem:[%s6511_s28] sm:$0xff] }
 0x73a   : > { %5774 = vmatprep.subr.mxu0 %v6307_v44 }
 0x73c   : > { %5772 = vmatmul.mubr.msk.f32.vlgmr.msra.gmra.mrb[12].mxu0 %vm1364_vm3, %v2197_v17 }
 0x73d   : > { %5775 = vmatpush3.xpose.msk.msra.mxu0 %vm1364_vm3, %v2277_v19  ;;  %5776 = vmatprep.mubr.msk.f32.mxu0 %vm6308_vm2, %v6307_v44 }
 0x73e   : > { %5784 = vmatprep.subr.mxu0 %v6307_v44 }
 0x740   : > { %5777 = vmatmul.mubr.msk.f32.vlgmr.msra.gmra.mrb[14].mxu0 %vm1364_vm3, %v2275_v20 }
 0x741   : > { %5786 = vmatprep.mubr.msk.f32.mxu0 %vm6308_vm2, %v6307_v44 }
 0x7d2   : > { %v6762_v21 = vpop.f32.mrb[0].mxu1 }
 0x7d3   : > { %v5733_v22 = vpop.f32.mrb[1].mxu1 }
 0x7d6   : > { %v6764_v23 = vpop.f32.mrb[2].mxu1 }
 0x7d7   : > { %v5738_v24 = vpop.f32.mrb[3].mxu1 }
 0x7dd   : > { %v1772_v25 = vpop.f32.mrb[4].mxu1 }
 0x7de   : > { %v1854_v26 = vmul.f32 0.35355338, %v1772_v25  ;;  %v5743_v27 = vpop.f32.mrb[5].mxu1 }
 0x7e0   : > { %v1856_v28 = vadd.f32 %v1854_v26, %v6709_v29 }
 0x7e2   : > { %v1858_v30 = vsel %vm1364_vm3, %v1856_v28, -inf }
 0x7e3   : > { %1859 = vmax.xlane.f32.xlu1 %v1858_v30 }
 0x80b   : > { %v6768_v31 = vpop.f32.mrb[10].mxu0 }
 0x80c   : > { %v5758_v32 = vpop.f32.mrb[11].mxu0 }
 0x80f   : > { %v2270_v34 = vpop.f32.mrb[12].mxu0 }
 0x810   : > { %v2352_v35 = vmul.f32 0.35355338, %v2270_v34  ;;  %v5773_v36 = vpop.f32.mrb[13].mxu0 }
 0x812   : > { %v2354_v37 = vadd.f32 %v2352_v35, %v6709_v29 }
 0x813   : > { %v2348_v38 = vpop.f32.mrb[14].mxu0 }
 0x814   : > { %v2353_v39 = vmul.f32 0.35355338, %v2348_v38  ;;  %v5778_v40 = vpop.f32.mrb[15].mxu0  ;;  %v2356_v41 = vsel %vm1364_vm3, %v2354_v37, -inf }
 0x815   : > { %2357 = vmax.xlane.f32.xlu1 %v2356_v41 }
 0x816   : > { %v2355_v42 = vadd.f32 %v2353_v39, %v6712_v33 }
 0x818   : > { %v2359_v43 = vsel %vm1364_vm3, %v2355_v42, -inf }
 0x819   : > { %2360 = vmax.xlane.f32.xlu1 %v2359_v43 }
 0x870   : > { %v1860_v45 = vpop.xlane.xlu1 %1859 }
 0x871   : > { %v1864_v46 = vsub.f32 %v1856_v28, %v1860_v45 }
 0x873   : > { %v1866_v47 = vmul.f32 1.442695, %v1864_v46 }
 0x875   : > { %6144 = vpow2.f32 %v1866_v47 }
 0x87f   : > { %v6145_v48 = vpop.eup %6144 }
 0x880   : > { %v1870_v49 = vsel %vm1364_vm3, %v6145_v48, 0.0 }
 0x881   : > { %1871 = vadd.xlane.f32.xlu0 %v1870_v49 }
 0x897   : > { %1881 = vrot.lane.b32.xlu0 %v6673_v12, %s6311_s23  ;;  %s6323_s23 = smov 8  }
 0x89b   : > { %2454 = vrot.lane.b32.xlu0 %v6680_v16, %s6314_s10 }
 0x89f   : > { %2615 = vrot.lane.b32.xlu0 %v6671_v10, %s6315_s4 }
 0x8a2   : > { %v2358_v50 = vpop.xlane.xlu1 %2357 }
 0x8a3   : > { %2613 = vrot.lane.b32.xlu0 %v6671_v10, %s6316_s26  ;;  %v2362_v51 = vsub.f32 %v2354_v37, %v2358_v50 }
 0x8a5   : > { %v2364_v52 = vmul.f32 1.442695, %v2362_v51 }
 0x8a6   : > { %v2361_v53 = vpop.xlane.xlu1 %2360 }
 0x8a7   : > { %6146 = vpow2.f32 %v2364_v52  ;;  %2693 = vrot.lane.b32.xlu0 %v6677_v14, %s6315_s4  ;;  %v2363_v54 = vsub.f32 %v2355_v42, %v2361_v53 }
 0x8a9   : > { %v2366_v55 = vmul.f32 1.442695, %v2363_v54 }
 0x8ab   : > { %6148 = vpow2.f32 %v2366_v55 }
 0x8b1   : > { %v6147_v56 = vpop.eup %6146 }
 0x8b2   : > { %v2368_v57 = vsel %vm1364_vm3, %v6147_v56, 0.0 }
 0x8b3   : > { %2369 = vadd.xlane.f32.xlu1 %v2368_v57 }
 0x8b5   : > { %v6149_v58 = vpop.eup %6148 }
 0x8b6   : > { %v2371_v59 = vsel %vm1364_vm3, %v6149_v58, 0.0 }
 0x8b7   : > { %2372 = vadd.xlane.f32.xlu1 %v2371_v59 }
 0x8c8   : > { %2378 = vrot.lane.b32.xlu1 %v6673_v12, %s6314_s10 }
 0x8cc   : > { %2691 = vrot.lane.b32.xlu1 %v6677_v14, %s6316_s26 }
 0x8d0   : > { %3032 = vrot.lane.b32.xlu1 %v6671_v10, %s6317_s9 }
 0x90e   : > { %v1872_v60 = vpop.xlane.xlu0 %1871 }
 0x90f   : > { %6150 = vrcp.f32 %v1872_v60 }
 0x912   : > { %v1882_v61 = vpop.permute.xlu0 %1881 }
 0x913   : > { %5750 = vmatpush3.msra.mxu1 %v1882_v61 }
 0x914   : > { %5759 = vmatprep.subr.mxu1 %v1330_v11 }
 0x916   : > { %v2455_v62 = vpop.permute.xlu0 %2454 }
 0x917   : > { %5785 = vmatpush3.msra.mxu0 %v2455_v62 }
 0x918   : > { %5794 = vmatprep.subr.mxu0 %v6307_v44 }
 0x919   : > { %v6151_v63 = vpop.eup %6150 }
 0x91a   : > { %v1878_v0 = vmul.f32 %v6151_v63, %v6145_v48  ;;  %v2616_v7 = vpop.permute.xlu0 %2615 }
 0x91c   : > { %5752 = vmatmul.mubr.msk.f32.vlgmr.msra.gmra.mrb[6].mxu1 %vm1364_vm3, %v1878_v0 }
 0x91d   : > { %5760 = vmatpush3.msra.mxu1 %v1330_v11 }
 0x91e   : > { %v2614_v9 = vpop.permute.xlu0 %2613  ;;  %5764 = vmatprep.subr.mxu1 %v1329_v13 }
 0x922   : > { %v2694_v30 = vpop.permute.xlu0 %2693 }
 0x940   : > { %v2370_v1 = vpop.xlane.xlu1 %2369 }
 0x944   : > { %v2373_v2 = vpop.xlane.xlu1 %2372 }
 0x945   : > { %6152 = vrcp.f32 %v2373_v2 }
 0x946   : > { %6154 = vrcp.f32 %v2370_v1 }
 0x948   : > { %v2379_v19 = vpop.permute.xlu1 %2378 }
 0x94c   : > { %v2692_v40 = vpop.permute.xlu1 %2691 }
 0x94f   : > { %v6153_v5 = vpop.eup %6152 }
 0x950   : > { %v2377_v8 = vmul.f32 %v6153_v5, %v6149_v58  ;;  %v6155_v18 = vpop.eup %6154  ;;  %v3033_v41 = vpop.permute.xlu1 %3032 }
 0x951   : > { %v2376_v20 = vmul.f32 %v6155_v18, %v6147_v56 }
 0x952   : > { %5787 = vmatmul.mubr.msk.f32.vlgmr.msra.gmra.mrb[16].mxu0 %vm1364_vm3, %v2377_v8 }
 0x953   : > { %5795 = vmatpush3.xpose.msk.msra.mxu0 %vm1364_vm3, %v2616_v7  ;;  %5796 = vmatprep.mubr.msk.f32.mxu0 %vm6308_vm2, %v6307_v44 }
 0x954   : > { %5804 = vmatprep.subr.mxu0 %v6307_v44 }
 0x956   : > { %5797 = vmatmul.mubr.msk.f32.vlgmr.msra.gmra.mrb[18].mxu0 %vm1364_vm3, %v2614_v9 }
 0x957   : > { %5806 = vmatprep.mubr.msk.f32.mxu0 %vm6308_vm2, %v6307_v44 }
 0x9ef   : > { %v1953_v15 = vpop.f32.mrb[6].mxu1 }
 0x9f0   : > { %v5753_v17 = vpop.f32.mrb[7].mxu1  ;;  %5761 = vmatprep.mubr.msk.f32.mxu1 %vm1364_vm3, %v1953_v15 }
 0x9f1   : > { %5762 = vmatmul.mubr.msk.f32.vlgmr.msra.gmra.mrb[8].mxu1 %vm1364_vm3, %v6768_v31 }
 0x9f2   : > { %5766 = vmatprep.mubr.msk.f32.mxu1 %vm1364_vm3, %v6762_v21  ;;  %5765 = vmatpush3.msra.mxu1 %v1329_v13 }
 0x9f3   : > { %5779 = vmatprep.subr.mxu1 %v6307_v44 }
 0x9f9   : > { %5767 = vmatmul.mubr.msk.f32.vlgmr.msra.gmra.mrb[8].mxu1 %vm1364_vm3, %v6764_v23  ;;  %v1331_v23 = vld [vmem:[%s6511_s28 + $0x10] sm:$0xff] }
 0x9fa   : > { %5780 = vmatpush3.msra.mxu1 %v2379_v19  ;;  %5781 = vmatprep.mubr.msk.f32.mxu1 %vm6308_vm2, %v6307_v44 }
 0x9fb   : > { %5789 = vmatprep.subr.mxu1 %v1331_v23 }
 0x9fd   : > { %5782 = vmatmul.mubr.msk.f32.vlgmr.msra.gmra.mrb[10].mxu1 %vm1364_vm3, %v2376_v20 }
 0x9fe   : > { %5790 = vmatpush3.msra.mxu1 %v1331_v23 }
 0x9ff   : > { %5799 = vmatprep.subr.mxu1 %v6307_v44 }
 0xa25   : > { %v2526_v22 = vpop.f32.mrb[16].mxu0 }
 0xa26   : > { %v5788_v24 = vpop.f32.mrb[17].mxu0 }
 0xa29   : > { %v2687_v25 = vpop.f32.mrb[18].mxu0 }
 0xa2a   : > { %v2769_v21 = vmul.f32 0.35355338, %v2687_v25  ;;  %v5798_v26 = vpop.f32.mrb[19].mxu0 }
 0xa2c   : > { %v2771_v27 = vadd.f32 %v2769_v21, %v6709_v29 }
 0xa2e   : > { %v2773_v28 = vsel %vm1364_vm3, %v2771_v27, -inf }
 0xa2f   : > { %2774 = vmax.xlane.f32.xlu0 %v2773_v28 }
 0xa45   : > { %2795 = vrot.lane.b32.xlu0 %v6673_v12, %s6316_s26 }
 0xa49   : > { %3030 = vrot.lane.b32.xlu0 %v6671_v10, %s6318_s11 }
 0xa4d   : > { %3108 = vrot.lane.b32.xlu0 %v6677_v14, %s6318_s11 }
 0xabc   : > { %v2775_v31 = vpop.xlane.xlu0 %2774 }
 0xabd   : > { %v2779_v32 = vsub.f32 %v2771_v27, %v2775_v31 }
 0xabf   : > { %v2781_v34 = vmul.f32 1.442695, %v2779_v32 }
 0xac0   : > { %v2796_v35 = vpop.permute.xlu0 %2795 }
 0xac1   : > { %6156 = vpow2.f32 %v2781_v34  ;;  %5805 = vmatpush3.msra.mxu0 %v2796_v35 }
 0xac2   : > { %5819 = vmatprep.subr.mxu0 %v6307_v44 }
 0xac4   : > { %v3031_v46 = vpop.permute.xlu0 %3030 }
 0xac8   : > { %v3109_v48 = vpop.permute.xlu0 %3108 }
 0xacb   : > { %v6157_v36 = vpop.eup %6156 }
 0xacc   : > { %v2785_v37 = vsel %vm1364_vm3, %v6157_v36, 0.0 }
 0xacd   : > { %2786 = vadd.xlane.f32.xlu1 %v2785_v37 }
 0xad0   : > { %v2450_v38 = vpop.f32.mrb[10].mxu1 }
 0xad1   : > { %v5783_v39 = vpop.f32.mrb[11].mxu1  ;;  %5791 = vmatprep.mubr.msk.f32.mxu1 %vm1364_vm3, %v2450_v38 }
 0xad2   : > { %5792 = vmatmul.mubr.msk.f32.vlgmr.msra.gmra.mrb[8].mxu1 %vm1364_vm3, %v2526_v22 }
 0xad3   : > { %5800 = vmatpush3.xpose.msk.msra.mxu1 %vm1364_vm3, %v2694_v30  ;;  %5801 = vmatprep.mubr.msk.f32.mxu1 %vm6308_vm2, %v6307_v44  ;;  %v1332_v30 = vld [vmem:[%s6511_s28 + $0x18] sm:$0xff] }
 0xad4   : > { %5809 = vmatprep.subr.mxu1 %v6307_v44 }
 0xad6   : > { %5802 = vmatmul.mubr.msk.f32.vlgmr.msra.gmra.mrb[12].mxu1 %vm1364_vm3, %v2692_v40 }
 0xad7   : > { %5811 = vmatprep.mubr.msk.f32.mxu1 %vm6308_vm2, %v6307_v44 }
 0xade   : > { %3110 = vrot.lane.b32.xlu1 %v6677_v14, %s6317_s9  ;;  %s7260_s9 = scalar_lea.vmem %s7205_s15, %s6481_s3 }
 0xb5a   : > { %v2787_v42 = vpop.xlane.xlu1 %2786 }
 0xb5b   : > { %6158 = vrcp.f32 %v2787_v42 }
 0xb5e   : > { %v3111_v47 = vpop.permute.xlu1 %3110 }
 0xb65   : > { %v6159_v43 = vpop.eup %6158 }
 0xb66   : > { %v2793_v45 = vmul.f32 %v6159_v43, %v6157_v36  ;;  %v1333_v43 = vld [vmem:[%s6511_s28 + $0x20] sm:$0xff] }
 0xb68   : > { %5807 = vmatmul.mubr.msk.f32.vlgmr.msra.gmra.mrb[20].mxu0 %vm1364_vm3, %v2793_v45 }
 0xb69   : > { %5820 = vmatpush3.xpose.msk.msra.mxu0 %vm1364_vm3, %v3033_v41  ;;  %5821 = vmatprep.mubr.msk.f32.mxu0 %vm6308_vm2, %v6307_v44 }
 0xb6a   : > { %5824 = vmatprep.subr.mxu0 %v6307_v44 }
 0xb6c   : > { %5822 = vmatmul.mubr.msk.f32.vlgmr.msra.gmra.mrb[22].mxu0 %vm1364_vm3, %v3031_v46 }
 0xb6d   : > { %5825 = vmatpush3.xpose.msk.msra.mxu0 %vm1364_vm3, %v3111_v47  ;;  %5826 = vmatprep.mubr.msk.f32.mxu0 %vm6308_vm2, %v6307_v44 }
 0xb6e   : > { %5834 = vmatprep.subr.mxu0 %v6307_v44 }
 0xb70   : > { %5827 = vmatmul.mubr.msk.f32.vlgmr.msra.gmra.mrb[24].mxu0 %vm1364_vm3, %v3109_v48 }
 0xb71   : > { %5836 = vmatprep.mubr.msk.f32.mxu0 %vm6308_vm2, %v6307_v44 }
 0xba9   : > { %v2765_v49 = vpop.f32.mrb[12].mxu1 }
 0xbaa   : > { %v2770_v50 = vmul.f32 0.35355338, %v2765_v49  ;;  %v5803_v51 = vpop.f32.mrb[13].mxu1 }
 0xbac   : > { %v2772_v52 = vadd.f32 %v2770_v50, %v6712_v33 }
 0xbae   : > { %v2776_v53 = vsel %vm1364_vm3, %v2772_v52, -inf }
 0xbaf   : > { %2777 = vmax.xlane.f32.xlu1 %v2776_v53 }
 0xc3b   : > { %v2867_v54 = vpop.f32.mrb[20].mxu0 }
 0xc3c   : > { %v2778_v55 = vpop.xlane.xlu1 %2777  ;;  %v5808_v56 = vpop.f32.mrb[21].mxu0 }
 0xc3d   : > { %v2780_v57 = vsub.f32 %v2772_v52, %v2778_v55 }
 0xc3f   : > { %v2783_v58 = vmul.f32 1.442695, %v2780_v57  ;;  %v3104_v59 = vpop.f32.mrb[22].mxu0 }
 0xc40   : > { %v3186_v60 = vmul.f32 0.35355338, %v3104_v59  ;;  %v5823_v61 = vpop.f32.mrb[23].mxu0 }
 0xc41   : > { %6160 = vpow2.f32 %v2783_v58 }
 0xc42   : > { %v3188_v62 = vadd.f32 %v3186_v60, %v6709_v29 }
 0xc43   : > { %v3182_v63 = vpop.f32.mrb[24].mxu0 }
 0xc44   : > { %v3187_v0 = vmul.f32 0.35355338, %v3182_v63  ;;  %v5828_v1 = vpop.f32.mrb[25].mxu0  ;;  %v3190_v2 = vsel %vm1364_vm3, %v3188_v62, -inf }
 0xc45   : > { %3191 = vmax.xlane.f32.xlu1 %v3190_v2 }
 0xc46   : > { %v3189_v5 = vadd.f32 %v3187_v0, %v6712_v33 }
 0xc48   : > { %v3193_v7 = vsel %vm1364_vm3, %v3189_v5, -inf }
 0xc49   : > { %3194 = vmax.xlane.f32.xlu1 %v3193_v7 }
 0xc4b   : > { %v6161_v8 = vpop.eup %6160 }
 0xc4c   : > { %v2788_v9 = vsel %vm1364_vm3, %v6161_v8, 0.0 }
 0xc4d   : > { %2789 = vadd.xlane.f32.xlu0 %v2788_v9 }
 0xc63   : > { %2871 = vrot.lane.b32.xlu0 %v6680_v16, %s6316_s26 }
 0xc67   : > { %3288 = vrot.lane.b32.xlu0 %v6680_v16, %s6318_s11 }
 0xc6b   : > { %3449 = vrot.lane.b32.xlu0 %v6671_v10, %s6319_s0 }
 0xc6f   : > { %3447 = vrot.lane.b32.xlu0 %v6671_v10, %s6320_s1 }
 0xc73   : > { %3527 = vrot.lane.b32.xlu0 %v6677_v14, %s6319_s0 }
 0xcd2   : > { %v3192_v11 = vpop.xlane.xlu1 %3191 }
 0xcd3   : > { %v3196_v13 = vsub.f32 %v3188_v62, %v3192_v11 }
 0xcd5   : > { %v3198_v15 = vmul.f32 1.442695, %v3196_v13 }
 0xcd6   : > { %v3195_v17 = vpop.xlane.xlu1 %3194 }
 0xcd7   : > { %6162 = vpow2.f32 %v3198_v15  ;;  %v3197_v18 = vsub.f32 %v3189_v5, %v3195_v17 }
 0xcd9   : > { %v3200_v19 = vmul.f32 1.442695, %v3197_v18 }
 0xcda   : > { %v2790_v20 = vpop.xlane.xlu0 %2789 }
 0xcdb   : > { %6164 = vpow2.f32 %v3200_v19 }
 0xcdc   : > { %6166 = vrcp.f32 %v2790_v20 }
 0xcde   : > { %v2872_v22 = vpop.permute.xlu0 %2871 }
 0xcdf   : > { %5810 = vmatpush3.msra.mxu1 %v2872_v22 }
 0xce0   : > { %5814 = vmatprep.subr.mxu1 %v1332_v30 }
 0xce1   : > { %v6163_v24 = vpop.eup %6162 }
 0xce2   : > { %v3289_v25 = vpop.permute.xlu0 %3288  ;;  %v3202_v21 = vsel %vm1364_vm3, %v6163_v24, 0.0 }
 0xce3   : > { %5835 = vmatpush3.msra.mxu0 %v3289_v25  ;;  %3203 = vadd.xlane.f32.xlu1 %v3202_v21 }
 0xce4   : > { %5844 = vmatprep.subr.mxu0 %v6307_v44 }
 0xce5   : > { %v6165_v26 = vpop.eup %6164 }
 0xce6   : > { %v6167_v27 = vpop.eup %6166  ;;  %v3205_v28 = vsel %vm1364_vm3, %v6165_v26, 0.0  ;;  %v3450_v35 = vpop.permute.xlu0 %3449 }
 0xce7   : > { %v2794_v23 = vmul.f32 %v6167_v27, %v6161_v8  ;;  %3206 = vadd.xlane.f32.xlu1 %v3205_v28 }
 0xce9   : > { %5812 = vmatmul.mubr.msk.f32.vlgmr.msra.gmra.mrb[14].mxu1 %vm1364_vm3, %v2794_v23 }
 0xcea   : > { %5816 = vmatprep.mubr.msk.f32.mxu1 %vm1364_vm3, %v2867_v54  ;;  %5815 = vmatpush3.msra.mxu1 %v1332_v30  ;;  %v3448_v37 = vpop.permute.xlu0 %3447 }
 0xceb   : > { %5829 = vmatprep.subr.mxu1 %v6307_v44 }
 0xcee   : > { %v3528_v54 = vpop.permute.xlu0 %3527 }
 0xcf8   : > { %3212 = vrot.lane.b32.xlu1 %v6673_v12, %s6318_s11  ;;  %s7261_s11 = scalar_lea.vmem %s7209_s19, %s6481_s3 }
 0xcfc   : > { %3525 = vrot.lane.b32.xlu1 %v6677_v14, %s6320_s1 }
 0xd00   : > { %3866 = vrot.lane.b32.xlu1 %v6671_v10, %s6321_s21 }
 0xd70   : > { %v3204_v31 = vpop.xlane.xlu1 %3203 }
 0xd74   : > { %v3207_v32 = vpop.xlane.xlu1 %3206 }
 0xd75   : > { %6168 = vrcp.f32 %v3207_v32 }
 0xd76   : > { %6170 = vrcp.f32 %v3204_v31 }
 0xd78   : > { %v3213_v40 = vpop.permute.xlu1 %3212 }
 0xd7c   : > { %v3526_v55 = vpop.permute.xlu1 %3525 }
 0xd7f   : > { %v6169_v34 = vpop.eup %6168 }
 0xd80   : > { %v3211_v36 = vmul.f32 %v6169_v34, %v6165_v26  ;;  %v6171_v38 = vpop.eup %6170  ;;  %v3867_v5 = vpop.permute.xlu1 %3866 }
 0xd81   : > { %v3210_v42 = vmul.f32 %v6171_v38, %v6163_v24 }
 0xd82   : > { %5837 = vmatmul.mubr.msk.f32.vlgmr.msra.gmra.mrb[26].mxu0 %vm1364_vm3, %v3211_v36 }
 0xd83   : > { %5845 = vmatpush3.xpose.msk.msra.mxu0 %vm1364_vm3, %v3450_v35  ;;  %5846 = vmatprep.mubr.msk.f32.mxu0 %vm6308_vm2, %v6307_v44 }
 0xd84   : > { %5854 = vmatprep.subr.mxu0 %v6307_v44 }
 0xd86   : > { %5847 = vmatmul.mubr.msk.f32.vlgmr.msra.gmra.mrb[28].mxu0 %vm1364_vm3, %v3448_v37 }
 0xd87   : > { %5856 = vmatprep.mubr.msk.f32.mxu0 %vm6308_vm2, %v6307_v44 }
 0xdbc   : > { %v2943_v39 = vpop.f32.mrb[14].mxu1 }
 0xdbd   : > { %v5813_v41 = vpop.f32.mrb[15].mxu1  ;;  %5817 = vmatmul.mubr.msk.f32.vlgmr.msra.gmra.mrb[8].mxu1 %vm1364_vm3, %v2943_v39 }
 0xdbe   : > { %5830 = vmatpush3.msra.mxu1 %v3213_v40  ;;  %5831 = vmatprep.mubr.msk.f32.mxu1 %vm6308_vm2, %v6307_v44  ;;  %v1334_v40 = vld [vmem:[%s6511_s28 + $0x28] sm:$0xff] }
 0xdbf   : > { %5839 = vmatprep.subr.mxu1 %v1333_v43 }
 0xdc1   : > { %5832 = vmatmul.mubr.msk.f32.vlgmr.msra.gmra.mrb[16].mxu1 %vm1364_vm3, %v3210_v42 }
 0xdc2   : > { %5840 = vmatpush3.msra.mxu1 %v1333_v43 }
 0xdc3   : > { %5849 = vmatprep.subr.mxu1 %v6307_v44 }
 0xe55   : > { %v3360_v45 = vpop.f32.mrb[26].mxu0 }
 0xe56   : > { %v5838_v46 = vpop.f32.mrb[27].mxu0 }
 0xe59   : > { %v3521_v47 = vpop.f32.mrb[28].mxu0 }
 0xe5a   : > { %v3603_v48 = vmul.f32 0.35355338, %v3521_v47  ;;  %v5848_v49 = vpop.f32.mrb[29].mxu0 }
 0xe5c   : > { %v3605_v50 = vadd.f32 %v3603_v48, %v6709_v29 }
 0xe5e   : > { %v3607_v51 = vsel %vm1364_vm3, %v3605_v50, -inf }
 0xe5f   : > { %3608 = vmax.xlane.f32.xlu0 %v3607_v51 }
 0xe75   : > { %3629 = vrot.lane.b32.xlu0 %v6673_v12, %s6320_s1 }
 0xe79   : > { %3864 = vrot.lane.b32.xlu0 %v6671_v10, %s6322_s24 }
 0xe7d   : > { %3942 = vrot.lane.b32.xlu0 %v6677_v14, %s6322_s24 }
 0xe94   : > { %v3284_v52 = vpop.f32.mrb[16].mxu1 }
 0xe95   : > { %v5833_v53 = vpop.f32.mrb[17].mxu1  ;;  %5841 = vmatprep.mubr.msk.f32.mxu1 %vm1364_vm3, %v3284_v52 }
 0xe96   : > { %5842 = vmatmul.mubr.msk.f32.vlgmr.msra.gmra.mrb[8].mxu1 %vm1364_vm3, %v3360_v45 }
 0xe97   : > { %5850 = vmatpush3.xpose.msk.msra.mxu1 %vm1364_vm3, %v3528_v54  ;;  %5851 = vmatprep.mubr.msk.f32.mxu1 %vm6308_vm2, %v6307_v44 }
 0xe98   : > { %5859 = vmatprep.subr.mxu1 %v6307_v44 }
 0xe9a   : > { %5852 = vmatmul.mubr.msk.f32.vlgmr.msra.gmra.mrb[18].mxu1 %vm1364_vm3, %v3526_v55 }
 0xe9b   : > { %5861 = vmatprep.mubr.msk.f32.mxu1 %vm6308_vm2, %v6307_v44 }
 0xeec   : > { %v3609_v56 = vpop.xlane.xlu0 %3608 }
 0xeed   : > { %v3613_v57 = vsub.f32 %v3605_v50, %v3609_v56  ;;  %v1335_v56 = vld [vmem:[%s6511_s28 + $0x30] sm:$0xff] }
 0xeef   : > { %v3615_v58 = vmul.f32 1.442695, %v3613_v57 }
 0xef0   : > { %v3630_v59 = vpop.permute.xlu0 %3629 }
 0xef1   : > { %6172 = vpow2.f32 %v3615_v58  ;;  %5855 = vmatpush3.msra.mxu0 %v3630_v59 }
 0xef2   : > { %5869 = vmatprep.subr.mxu0 %v6307_v44 }
 0xef4   : > { %v3865_v11 = vpop.permute.xlu0 %3864 }
 0xef8   : > { %v3943_v15 = vpop.permute.xlu0 %3942 }
 0xefb   : > { %v6173_v60 = vpop.eup %6172 }
 0xefc   : > { %v3619_v61 = vsel %vm1364_vm3, %v6173_v60, 0.0 }
 0xefd   : > { %3620 = vadd.xlane.f32.xlu1 %v3619_v61 }
 0xf0e   : > { %3944 = vrot.lane.b32.xlu1 %v6677_v14, %s6321_s21 }
 0xf6d   : > { %v3599_v62 = vpop.f32.mrb[18].mxu1 }
 0xf6e   : > { %v3604_v63 = vmul.f32 0.35355338, %v3599_v62  ;;  %v5853_v0 = vpop.f32.mrb[19].mxu1 }
 0xf70   : > { %v3606_v1 = vadd.f32 %v3604_v63, %v6712_v33 }
 0xf72   : > { %v3610_v2 = vsel %vm1364_vm3, %v3606_v1, -inf }
 0xf73   : > { %3611 = vmax.xlane.f32.xlu1 %v3610_v2 }
 0xf8a   : > { %v3621_v7 = vpop.xlane.xlu1 %3620 }
 0xf8b   : > { %6174 = vrcp.f32 %v3621_v7 }
 0xf8e   : > { %v3945_v13 = vpop.permute.xlu1 %3944 }
 0xf95   : > { %v6175_v8 = vpop.eup %6174 }
 0xf96   : > { %v3627_v9 = vmul.f32 %v6175_v8, %v6173_v60 }
 0xf98   : > { %5857 = vmatmul.mubr.msk.f32.vlgmr.msra.gmra.mrb[30].mxu0 %vm1364_vm3, %v3627_v9 }
 0xf99   : > { %5870 = vmatpush3.xpose.msk.msra.mxu0 %vm1364_vm3, %v3867_v5  ;;  %5871 = vmatprep.mubr.msk.f32.mxu0 %vm6308_vm2, %v6307_v44 }
 0xf9a   : > { %5874 = vmatprep.subr.mxu0 %v6307_v44 }
 0xf9c   : > { %5872 = vmatmul.mubr.msk.f32.vlgmr.msra.gmra.mrb[32].mxu0 %vm1364_vm3, %v3865_v11 }
 0xf9d   : > { %5875 = vmatpush3.xpose.msk.msra.mxu0 %vm1364_vm3, %v3945_v13  ;;  %5876 = vmatprep.mubr.msk.f32.mxu0 %vm6308_vm2, %v6307_v44 }
 0xf9e   : > { %5884 = vmatprep.subr.mxu0 %v6307_v44 }
 0xfa0   : > { %5877 = vmatmul.mubr.msk.f32.vlgmr.msra.gmra.mrb[34].mxu0 %vm1364_vm3, %v3943_v15 }
 0xfa1   : > { %5886 = vmatprep.mubr.msk.f32.mxu0 %vm6308_vm2, %v6307_v44 }
0x1000   : > { %v3612_v17 = vpop.xlane.xlu1 %3611 }
0x1001   : > { %v3614_v18 = vsub.f32 %v3606_v1, %v3612_v17 }
0x1003   : > { %v3617_v19 = vmul.f32 1.442695, %v3614_v18 }
0x1005   : > { %6176 = vpow2.f32 %v3617_v19 }
0x100f   : > { %v6177_v20 = vpop.eup %6176 }
0x1010   : > { %v3622_v22 = vsel %vm1364_vm3, %v6177_v20, 0.0 }
0x1011   : > { %3623 = vadd.xlane.f32.xlu0 %v3622_v22 }
0x1027   : > { %3705 = vrot.lane.b32.xlu0 %v6680_v16, %s6320_s1 }
0x102b   : > { %4122 = vrot.lane.b32.xlu0 %v6680_v16, %s6322_s24 }
0x102f   : > { %4283 = vrot.lane.b32.xlu0 %v6671_v10, %s6323_s23 }
0x1033   : > { %4361 = vrot.lane.b32.xlu0 %v6677_v14, %s6323_s23 }
0x1037   : > { %4281 = vrot.lane.b32.xlu0 %v6671_v10, %s6324_s6 }
0x106b   : > { %v3701_v24 = vpop.f32.mrb[30].mxu0 }
0x106c   : > { %v5858_v25 = vpop.f32.mrb[31].mxu0 }
0x106f   : > { %v3938_v21 = vpop.f32.mrb[32].mxu0 }
0x1070   : > { %v4020_v26 = vmul.f32 0.35355338, %v3938_v21  ;;  %v5873_v27 = vpop.f32.mrb[33].mxu0 }
0x1072   : > { %v4022_v28 = vadd.f32 %v4020_v26, %v6709_v29 }
0x1073   : > { %v4016_v23 = vpop.f32.mrb[34].mxu0 }
0x1074   : > { %v4021_v30 = vmul.f32 0.35355338, %v4016_v23  ;;  %v5878_v31 = vpop.f32.mrb[35].mxu0  ;;  %v4024_v32 = vsel %vm1364_vm3, %v4022_v28, -inf }
0x1075   : > { %4025 = vmax.xlane.f32.xlu1 %v4024_v32 }
0x1076   : > { %v4023_v34 = vadd.f32 %v4021_v30, %v6712_v33 }
0x1078   : > { %v4027_v35 = vsel %vm1364_vm3, %v4023_v34, -inf }
0x1079   : > { %4028 = vmax.xlane.f32.xlu1 %v4027_v35 }
0x109e   : > { %v3624_v10 = vpop.xlane.xlu0 %3623 }
0x109f   : > { %6178 = vrcp.f32 %v3624_v10 }
0x10a2   : > { %v3706_v36 = vpop.permute.xlu0 %3705 }
0x10a3   : > { %5860 = vmatpush3.msra.mxu1 %v3706_v36 }
0x10a4   : > { %5864 = vmatprep.subr.mxu1 %v1334_v40 }
0x10a6   : > { %v4123_v37 = vpop.permute.xlu0 %4122 }
0x10a7   : > { %5885 = vmatpush3.msra.mxu0 %v4123_v37 }
0x10a8   : > { %5894 = vmatprep.subr.mxu0 %v6307_v44 }
0x10a9   : > { %v6179_v38 = vpop.eup %6178 }
0x10aa   : > { %v3628_v39 = vmul.f32 %v6179_v38, %v6177_v20  ;;  %v4284_v58 = vpop.permute.xlu0 %4283  ;;  %v1336_v38 = vld [vmem:[%s6511_s28 + $0x38] sm:$0xff] }
0x10ac   : > { %5862 = vmatmul.mubr.msk.f32.vlgmr.msra.gmra.mrb[20].mxu1 %vm1364_vm3, %v3628_v39 }
0x10ad   : > { %5866 = vmatprep.mubr.msk.f32.mxu1 %vm1364_vm3, %v3701_v24  ;;  %5865 = vmatpush3.msra.mxu1 %v1334_v40 }
0x10ae   : > { %5879 = vmatprep.subr.mxu1 %v6307_v44  ;;  %v4362_v61 = vpop.permute.xlu0 %4361 }
0x10b2   : > { %v4282_v63 = vpop.permute.xlu0 %4281 }
0x1102   : > { %v4026_v41 = vpop.xlane.xlu1 %4025 }
0x1103   : > { %v4030_v42 = vsub.f32 %v4022_v28, %v4026_v41 }
0x1105   : > { %v4032_v43 = vmul.f32 1.442695, %v4030_v42 }
0x1106   : > { %v4029_v45 = vpop.xlane.xlu1 %4028 }
0x1107   : > { %6180 = vpow2.f32 %v4032_v43  ;;  %v4031_v46 = vsub.f32 %v4023_v34, %v4029_v45  ;;  %v5503_v43 = vld [vmem:[%s7258_s25] ss:$0 sm:$0xff]  ;;  %v6216_v45 = vld [vmem:[#allocation2 + $0x8] sm:$0xff] }
0x1109   : > { %v4034_v47 = vmul.f32 1.442695, %v4031_v46 }
0x110b   : > { %6182 = vpow2.f32 %v4034_v47 }
0x1111   : > { %v6181_v48 = vpop.eup %6180 }
0x1112   : > { %v4036_v49 = vsel %vm1364_vm3, %v6181_v48, 0.0 }
0x1113   : > { %4037 = vadd.xlane.f32.xlu1 %v4036_v49 }
0x1115   : > { %v6183_v50 = vpop.eup %6182 }
0x1116   : > { %v4039_v51 = vsel %vm1364_vm3, %v6183_v50, 0.0 }
0x1117   : > { %4040 = vadd.xlane.f32.xlu1 %v4039_v51 }
0x1128   : > { %4046 = vrot.lane.b32.xlu1 %v6673_v12, %s6322_s24 }
0x112c   : > { %4359 = vrot.lane.b32.xlu1 %v6677_v14, %s6324_s6 }
0x117f   : > { %v3777_v52 = vpop.f32.mrb[20].mxu1 }
0x1180   : > { %v5863_v53 = vpop.f32.mrb[21].mxu1  ;;  %5867 = vmatmul.mubr.msk.f32.vlgmr.msra.gmra.mrb[8].mxu1 %vm1364_vm3, %v3777_v52 }
0x1181   : > { %5881 = vmatprep.mubr.msk.f32.mxu1 %vm6308_vm2, %v6307_v44 }
0x11a0   : > { %v4038_v54 = vpop.xlane.xlu1 %4037 }
0x11a1   : > { %6184 = vrcp.f32 %v4038_v54 }
0x11a4   : > { %v4041_v55 = vpop.xlane.xlu1 %4040 }
0x11a5   : > { %6186 = vrcp.f32 %v4041_v55 }
0x11a8   : > { %v4047_v57 = vpop.permute.xlu1 %4046 }
0x11a9   : > { %5880 = vmatpush3.msra.mxu1 %v4047_v57 }
0x11aa   : > { %5889 = vmatprep.subr.mxu1 %v1335_v56 }
0x11ab   : > { %v6185_v59 = vpop.eup %6184 }
0x11ac   : > { %v4044_v60 = vmul.f32 %v6185_v59, %v6181_v48  ;;  %v4360_v7 = vpop.permute.xlu1 %4359  ;;  %v6217_v48 = vld [vmem:[#allocation2] sm:$0xff] }
0x11ae   : > { %5882 = vmatmul.mubr.msk.f32.vlgmr.msra.gmra.mrb[22].mxu1 %vm1364_vm3, %v4044_v60 }
0x11af   : > { %v6187_v14 = vpop.eup %6186  ;;  %5890 = vmatpush3.msra.mxu1 %v1335_v56 }
0x11b0   : > { %v4045_v62 = vmul.f32 %v6187_v14, %v6183_v50  ;;  %5899 = vmatprep.subr.mxu1 %v6307_v44 }
0x11b2   : > { %5887 = vmatmul.mubr.msk.f32.vlgmr.msra.gmra.mrb[36].mxu0 %vm1364_vm3, %v4045_v62 }
0x11b3   : > { %5895 = vmatpush3.xpose.msk.msra.mxu0 %vm1364_vm3, %v4284_v58  ;;  %5896 = vmatprep.mubr.msk.f32.mxu0 %vm6308_vm2, %v6307_v44 }
0x11b4   : > { %5904 = vmatprep.subr.mxu0 %v6307_v44 }
0x11b6   : > { %5897 = vmatmul.mubr.msk.f32.vlgmr.msra.gmra.mrb[38].mxu0 %vm1364_vm3, %v4282_v63  ;;  %v4754_v63 = vld [vmem:[%s6524_s20 + $0x8] sm:$0xff] }
0x11b7   : > { %5906 = vmatprep.mubr.msk.f32.mxu0 %vm6308_vm2, %v6307_v44 }
0x1281   : > { %v4118_v0 = vpop.f32.mrb[22].mxu1 }
0x1282   : > { %v5883_v1 = vpop.f32.mrb[23].mxu1  ;;  %5891 = vmatprep.mubr.msk.f32.mxu1 %vm1364_vm3, %v4118_v0  ;;  %v4756_v0 = vld [vmem:[%s6524_s20 + $0x18] sm:$0xff] }
0x1283   : > { %v5986_v1 = vpack.c.bf16 %v4756_v0, %v4754_v63  ;;  %v4919_v63 = vld [vmem:[%s6535_s5 + $0xb8] sm:$0xff] }
0x1285   : > { %v4194_v2 = vpop.f32.mrb[36].mxu0 }
0x1286   : > { %v5888_v5 = vpop.f32.mrb[37].mxu0  ;;  %5892 = vmatmul.mubr.msk.f32.vlgmr.msra.gmra.mrb[8].mxu1 %vm1364_vm3, %v4194_v2  ;;  %v4753_v2 = vld [vmem:[%s6524_s20] sm:$0xff] }
0x1287   : > { %5900 = vmatpush3.xpose.msk.msra.mxu1 %vm1364_vm3, %v4362_v61  ;;  %5901 = vmatprep.mubr.msk.f32.mxu1 %vm6308_vm2, %v6307_v44  ;;  %v4755_v5 = vld [vmem:[%s6524_s20 + $0x10] sm:$0xff] }
0x1288   : > { %5909 = vmatprep.subr.mxu1 %v6307_v44 }
0x1289   : > { %v4355_v8 = vpop.f32.mrb[38].mxu0 }
0x128a   : > { %v4437_v9 = vmul.f32 0.35355338, %v4355_v8  ;;  %v5898_v11 = vpop.f32.mrb[39].mxu0  ;;  %5902 = vmatmul.mubr.msk.f32.vlgmr.msra.gmra.mrb[24].mxu1 %vm1364_vm3, %v4360_v7  ;;  %v5988_v7 = vpack.c.bf16 %v4755_v5, %v4753_v2  ;;  %v4758_v8 = vld [vmem:[%s6524_s20 + $0x28] sm:$0xff]  ;;  %v4903_v2 = vld [vmem:[%s6535_s5 + $0x38] sm:$0xff] }
0x128b   : > { %5911 = vmatprep.mubr.msk.f32.mxu1 %vm6308_vm2, %v6307_v44 }
0x128c   : > { %v4439_v13 = vadd.f32 %v4437_v9, %v6709_v29  ;;  %v4760_v9 = vld [vmem:[%s6524_s20 + $0x38] sm:$0xff] }
0x128d   : > { %v5990_v11 = vpack.c.bf16 %v4760_v9, %v4758_v8  ;;  %v4921_v8 = vld [vmem:[%s6535_s5 + $0xc8] sm:$0xff] }
0x128e   : > { %v4441_v15 = vsel %vm1364_vm3, %v4439_v13, -inf }
0x128f   : > { %4442 = vmax.xlane.f32.xlu0 %v4441_v15  ;;  %v4759_v15 = vld [vmem:[%s6524_s20 + $0x30] sm:$0xff] }
0x131c   : > { %v4443_v17 = vpop.xlane.xlu0 %4442 }
0x131d   : > { %v4447_v18 = vsub.f32 %v4439_v13, %v4443_v17  ;;  %v4757_v13 = vld [vmem:[%s6524_s20 + $0x20] sm:$0xff] }
0x131e   : > { %v5992_v17 = vpack.c.bf16 %v4759_v15, %v4757_v13  ;;  %v4905_v13 = vld [vmem:[%s6535_s5 + $0x48] sm:$0xff] }
0x131f   : > { %v4449_v19 = vmul.f32 1.442695, %v4447_v18  ;;  %v4762_v18 = vld [vmem:[%s6524_s20 + $0x48] sm:$0xff] }
0x1321   : > { %6188 = vpow2.f32 %v4449_v19  ;;  %v4764_v19 = vld [vmem:[%s6524_s20 + $0x58] sm:$0xff] }
0x132b   : > { %v6189_v20 = vpop.eup %6188 }
0x132c   : > { %v4453_v22 = vsel %vm1364_vm3, %v6189_v20, 0.0 }
0x132d   : > { %4454 = vadd.xlane.f32.xlu0 %v4453_v22  ;;  %v4761_v22 = vld [vmem:[%s6524_s20 + $0x40] sm:$0xff] }
0x135d   : > { %v4433_v24 = vpop.f32.mrb[24].mxu1 }
0x135e   : > { %v4438_v25 = vmul.f32 0.35355338, %v4433_v24  ;;  %v5903_v21 = vpop.f32.mrb[25].mxu1  ;;  %v4763_v24 = vld [vmem:[%s6524_s20 + $0x50] sm:$0xff] }
0x135f   : > { %v4766_v21 = vld [vmem:[%s6524_s20 + $0x68] sm:$0xff] }
0x1360   : > { %v4440_v26 = vadd.f32 %v4438_v25, %v6712_v33  ;;  %v5996_v25 = vpack.c.bf16 %v4763_v24, %v4761_v22  ;;  %v4907_v22 = vld [vmem:[%s6535_s5 + $0x58] sm:$0xff] }
0x1362   : > { %v4444_v27 = vsel %vm1364_vm3, %v4440_v26, -inf }
0x1363   : > { %4445 = vmax.xlane.f32.xlu1 %v4444_v27  ;;  %v4765_v27 = vld [vmem:[%s6524_s20 + $0x60] sm:$0xff] }
0x1374   : > { %4539 = vrot.lane.b32.xlu1 %v6680_v16, %s6324_s6 }
0x13ba   : > { %v4455_v33 = vpop.xlane.xlu0 %4454 }
0x13f0   : > { %v4446_v29 = vpop.xlane.xlu1 %4445 }
0x13f1   : > { %v4448_v28 = vsub.f32 %v4440_v26, %v4446_v29  ;;  %v4768_v26 = vld [vmem:[%s6524_s20 + $0x78] sm:$0xff] }
0x13f2   : > { %v5998_v29 = vpack.c.bf16 %v4768_v26, %v4766_v21  ;;  %v4925_v21 = vld [vmem:[%s6535_s5 + $0xe8] sm:$0xff] }
0x13f3   : > { %v4451_v23 = vmul.f32 1.442695, %v4448_v28  ;;  %v4767_v28 = vld [vmem:[%s6524_s20 + $0x70] sm:$0xff]  ;;  %s7259_s20 = scalar_lea.vmem %s7204_s14, %s6481_s3 }
0x13f4   : > { %v4540_v30 = vpop.permute.xlu1 %4539 }
0x13f5   : > { %6190 = vpow2.f32 %v4451_v23  ;;  %5910 = vmatpush3.msra.mxu1 %v4540_v30  ;;  %v6000_v23 = vpack.c.bf16 %v4767_v28, %v4765_v27  ;;  %v4908_v27 = vld [vmem:[%s6535_s5 + $0x60] sm:$0xff] }
0x13f6   : > { %6192 = vrcp.f32 %v4455_v33  ;;  %5914 = vmatprep.subr.mxu1 %v1336_v38 }
0x13ff   : > { %v6191_v31 = vpop.eup %6190 }
0x1400   : > { %v4456_v32 = vsel %vm1364_vm3, %v6191_v31, 0.0  ;;  %v6193_v35 = vpop.eup %6192 }
0x1401   : > { %4457 = vadd.xlane.f32.xlu0 %v4456_v32  ;;  %v4461_v16 = vmul.f32 %v6193_v35, %v6189_v20  ;;  %v5994_v20 = vpack.c.bf16 %v4764_v19, %v4762_v18  ;;  %v4923_v18 = vld [vmem:[%s6535_s5 + $0xd8] sm:$0xff] }
0x1417   : > { %4463 = vrot.lane.b32.xlu0 %v6673_v12, %s6324_s6 }
0x148e   : > { %v4458_v34 = vpop.xlane.xlu0 %4457 }
0x148f   : > { %6194 = vrcp.f32 %v4458_v34 }
0x1492   : > { %v4464_v10 = vpop.permute.xlu0 %4463 }
0x1493   : > { %5905 = vmatpush3.msra.mxu0 %v4464_v10 }
0x1494   : > { %5907 = vmatmul.mubr.msk.f32.vlgmr.msra.gmra.mrb[40].mxu0 %vm1364_vm3, %v4461_v16  ;;  %5987 = vmatprep.subr.bf16.mxu0 %v5986_v1  ;;  %v4902_v1 = vld [vmem:[%s6535_s5 + $0x30] sm:$0xff] }
0x1495   : > { %4851 = vmatprep.mubr.f32.mxu0 %v6307_v44  ;;  %5989 = vmatpush1.bf16.msra.mxu0 %v5988_v7  ;;  %v6016_v5 = vpack.c.bf16 %v4903_v2, %v4902_v1  ;;  %v4920_v7 = vld [vmem:[%s6535_s5 + $0xc0] sm:$0xff] }
0x1496   : > { %5991 = vmatprep.subr.bf16.mxu0 %v5990_v11  ;;  %v6018_v9 = vpack.c.bf16 %v4921_v8, %v4920_v7  ;;  %v4904_v11 = vld [vmem:[%s6535_s5 + $0x40] sm:$0xff] }
0x1497   : > { %v6020_v15 = vpack.c.bf16 %v4905_v13, %v4904_v11  ;;  %v5512_v2 = vld [vmem:[%s7261_s11] ss:$0 sm:$0xff] }
0x1499   : > { %v6195_v36 = vpop.eup %6194  ;;  %5993 = vmatpush1.bf16.msra.mxu0 %v5992_v17  ;;  %v4922_v17 = vld [vmem:[%s6535_s5 + $0xd0] sm:$0xff] }
0x149a   : > { %v4462_v37 = vmul.f32 %v6195_v36, %v6191_v31  ;;  %5995 = vmatprep.subr.bf16.mxu0 %v5994_v20  ;;  %v5504_v36 = vld [vmem:[%s7259_s20] ss:$0 sm:$0xff]  ;;  %v6022_v19 = vpack.c.bf16 %v4923_v18, %v4922_v17  ;;  %v4906_v20 = vld [vmem:[%s6535_s5 + $0x50] sm:$0xff] }
0x149b   : > { %v6024_v24 = vpack.c.bf16 %v4907_v22, %v4906_v20  ;;  %v5019_v20 = vld [vmem:[#allocation3 + $0x8] sm:$0xff] (!%p5513_p6) }
0x149c   : > { %5912 = vmatmul.mubr.msk.f32.vlgmr.msra.gmra.mrb[26].mxu1 %vm1364_vm3, %v4462_v37 }
0x149d   : > { %5915 = vmatpush3.msra.mxu1 %v1336_v38  ;;  %5997 = vmatpush1.bf16.msra.mxu0 %v5996_v25  ;;  %v4924_v25 = vld [vmem:[%s6535_s5 + $0xe0] sm:$0xff] }
0x149e   : > { %5999 = vmatprep.subr.bf16.mxu0 %v5998_v29  ;;  %v6026_v26 = vpack.c.bf16 %v4925_v21, %v4924_v25  ;;  %v4909_v29 = vld [vmem:[%s6535_s5 + $0x68] sm:$0xff] }
0x149f   : > { %v6028_v28 = vpack.c.bf16 %v4909_v29, %v4908_v27 }
0x14a1   : > { %6001 = vmatpush1.bf16.msra.mxu0 %v6000_v23  ;;  %v4926_v23 = vld [vmem:[%s6535_s5 + $0xf0] sm:$0xff] }
0x1567   : > { %v4535_v12 = vpop.f32.mrb[40].mxu0 }
0x1568   : > { %v5908_v39 = vpop.f32.mrb[41].mxu0  ;;  %5916 = vmatprep.mubr.msk.f32.mxu1 %vm1364_vm3, %v4535_v12  ;;  %v5505_v12 = vld [vmem:[%s7260_s9] ss:$0 sm:$0xff] }
0x156f   : > { %v4611_v40 = vpop.f32.mrb[26].mxu1 }
0x1570   : > { %v5913_v41 = vpop.f32.mrb[27].mxu1  ;;  %5917 = vmatmul.mubr.msk.f32.vlgmr.msra.gmra.mrb[8].mxu1 %vm1364_vm3, %v4611_v40 }
0x1643   : > { %v5918_v42 = vpop.f32.mrb[8].mxu1 }
0x1644   : > { %v4699_v46 = vadd.f32 %v6216_v45, %v5918_v42  ;;  %v4687_v47 = vpop.f32.mrb[9].mxu1  ;;  %v4913_v45 = vld [vmem:[%s6535_s5 + $0x88] sm:$0xff] }
0x1645   : > { %v4698_v49 = vadd.f32 %v6217_v48, %v4687_v47  ;;  %v4896_v47 = vld [vmem:[%s6535_s5] sm:$0xff]  ;;  %v4897_v48 = vld [vmem:[%s6535_s5 + $0x8] sm:$0xff] }
0x1646   : > { %v6998_v50 = vadd.f32 %v5503_v43, %v4699_v46 }
0x1647   : > { %v7000_v51 = vadd.f32 %v5503_v43, %v4698_v49  ;;  %v4912_v43 = vld [vmem:[%s6535_s5 + $0x80] sm:$0xff]  ;;  %v6004_v49 = vpack.c.bf16 %v4897_v48, %v4896_v47 }
0x1648   : > { %v4714_v52 = vsel %vm1174_vm1, %v6998_v50, 0.0  ;;  %v6002_v46 = vpack.c.bf16 %v4913_v45, %v4912_v43 }
0x1649   : > { %4715 = vadd.xlane.f32.xlu0 %v4714_v52  ;;  %v4711_v53 = vsel %vm1174_vm1, %v7000_v51, 0.0  ;;  %v4914_v52 = vld [vmem:[%s6535_s5 + $0x90] sm:$0xff] }
0x164a   : > { %4712 = vadd.xlane.f32.xlu1 %v4711_v53  ;;  %6003 = vmatprep.subr.bf16.mxu1 %v6002_v46  ;;  %v4915_v53 = vld [vmem:[%s6535_s5 + $0x98] sm:$0xff] }
0x164b   : > { %6005 = vmatpush3.bf16.msra.mxu1 %v6004_v49 }
0x16d6   : > { %v4716_v54 = vpop.xlane.xlu0 %4715 }
0x16d7   : > { %v4718_v55 = vmul.f32 0.015625, %v4716_v54  ;;  %v4713_v56 = vpop.xlane.xlu1 %4712  ;;  %v4898_v54 = vld [vmem:[%s6535_s5 + $0x10] sm:$0xff] }
0x16d8   : > { %v4717_v57 = vmul.f32 0.015625, %v4713_v56 }
0x16d9   : > { %v4720_v58 = vsub.f32 %v6998_v50, %v4718_v55  ;;  %v4899_v55 = vld [vmem:[%s6535_s5 + $0x18] sm:$0xff] }
0x16da   : > { %v4719_v59 = vsub.f32 %v7000_v51, %v4717_v57  ;;  %v6008_v56 = vpack.c.bf16 %v4899_v55, %v4898_v54  ;;  %v4916_v57 = vld [vmem:[%s6535_s5 + $0xa0] sm:$0xff] }
0x16db   : > { %v4722_v60 = vmul.f32 %v4720_v58, %v4720_v58 }
0x16dc   : > { %v4721_v14 = vmul.f32 %v4719_v59, %v4719_v59 }
0x16dd   : > { %v4726_v61 = vsel %vm1174_vm1, %v4722_v60, 0.0  ;;  %v4900_v60 = vld [vmem:[%s6535_s5 + $0x20] sm:$0xff] }
0x16de   : > { %4727 = vadd.xlane.f32.xlu1 %v4726_v61  ;;  %v4723_v62 = vsel %vm1174_vm1, %v4721_v14, 0.0  ;;  %v4901_v14 = vld [vmem:[%s6535_s5 + $0x28] sm:$0xff] }
0x16df   : > { %4724 = vadd.xlane.f32.xlu0 %v4723_v62  ;;  %v6012_v61 = vpack.c.bf16 %v4901_v14, %v4900_v60  ;;  %v4918_v62 = vld [vmem:[%s6535_s5 + $0xb0] sm:$0xff] }
0x16e0   : > { %v6014_v0 = vpack.c.bf16 %v4919_v63, %v4918_v62 }
0x176b   : > { %v4728_v30 = vpop.xlane.xlu1 %4727 }
0x176c   : > { %v4730_v31 = vmul.f32 0.015625, %v4728_v30  ;;  %v4725_v32 = vpop.xlane.xlu0 %4724  ;;  %v4927_v30 = vld [vmem:[%s6535_s5 + $0xf8] sm:$0xff] }
0x176d   : > { %v4729_v33 = vmul.f32 0.015625, %v4725_v32  ;;  %v4910_v32 = vld [vmem:[%s6535_s5 + $0x70] sm:$0xff] }
0x176e   : > { %v4732_v34 = vadd.f32 1e-05, %v4730_v31  ;;  %v6030_v31 = vpack.c.bf16 %v4927_v30, %v4926_v23 }
0x176f   : > { %v4731_v35 = vadd.f32 1e-05, %v4729_v33  ;;  %v4911_v33 = vld [vmem:[%s6535_s5 + $0x78] sm:$0xff] }
0x1770   : > { %6196 = vrsqrt.f32 %v4732_v34  ;;  %v6032_v34 = vpack.c.bf16 %v4911_v33, %v4910_v32 }
0x1771   : > { %6198 = vrsqrt.f32 %v4731_v35  ;;  %v4769_v35 = vld [vmem:[%s6529_s8] sm:$0x3] }
0x177a   : > { %v6197_v16 = vpop.eup %6196 }
0x177b   : > { %v6199_v10 = vpop.eup %6198  ;;  %v4736_v38 = vmul.f32 %v6197_v16, %v4720_v58  ;;  %v4917_v58 = vld [vmem:[%s6535_s5 + $0xa8] sm:$0xff]  ;;  %v4774_v16 = vrot.slane %v4769_v35, %v6664_v4 }
0x177c   : > { %v4735_v37 = vmul.f32 %v6199_v10, %v4719_v59  ;;  %v6010_v59 = vpack.c.bf16 %v4917_v58, %v4916_v57  ;;  %v4778_v10 = vrot.slane %v4769_v35, %v1242_v6 }
0x177d   : > { %v4744_v41 = vmul.f32 %v5504_v36, %v4736_v38 }
0x177e   : > { %v4743_v39 = vmul.f32 %v5504_v36, %v4735_v37 }
0x177f   : > { %v4752_v42 = vadd.f32 %v5505_v12, %v4744_v41 }
0x1780   : > { %v4751_v40 = vadd.f32 %v5505_v12, %v4743_v39 }
0x1782   : > { %5506 = vmatmul.mubr.msk.f32.vlgmr.msra.gmra.mrb[42].mxu0 %vm1174_vm1, %v4751_v40 }
0x1783   : > { %4857 = vmatprep.mubr.f32.mxu0 %v6307_v44  ;;  %v6006_v44 = vpack.c.bf16 %v4915_v53, %v4914_v52 }
0x1785   : > { %6007 = vmatprep.subr.bf16.mxu1 %v6006_v44 }
0x1786   : > { %5507 = vmatmul.mubr.msk.f32.gmra.mrb[44].mxu0 %vm1174_vm1, %v4752_v42  ;;  %6009 = vmatpush3.bf16.msra.mxu1 %v6008_v56 }
0x1787   : > { %6011 = vmatprep.subr.bf16.mxu1 %v6010_v59 }
0x178a   : > { %6013 = vmatpush3.bf16.msra.mxu1 %v6012_v61 }
0x178b   : > { %6015 = vmatprep.subr.bf16.mxu1 %v6014_v0 }
0x178e   : > { %6017 = vmatpush3.bf16.msra.mxu1 %v6016_v5 }
0x178f   : > { %6019 = vmatprep.subr.bf16.mxu1 %v6018_v9 }
0x1792   : > { %6021 = vmatpush3.bf16.msra.mxu1 %v6020_v15 }
0x1793   : > { %6023 = vmatprep.subr.bf16.mxu1 %v6022_v19  ;;  %v5018_v19 = vld [vmem:[#allocation3] sm:$0xff] (!%p5513_p6) }
0x1796   : > { %6025 = vmatpush3.bf16.msra.mxu1 %v6024_v24 }
0x1797   : > { %6027 = vmatprep.subr.bf16.mxu1 %v6026_v26 }
0x179a   : > { %6029 = vmatpush3.bf16.msra.mxu1 %v6028_v28 }
0x179b   : > { %6031 = vmatprep.subr.bf16.mxu1 %v6030_v31 }
0x179e   : > { %6033 = vmatpush3.bf16.msra.mxu1 %v6032_v34 }
0x1855   : > { %v4853_v36 = vpop.f32.mrb[42].mxu0 }
0x1856   : > { %v4854_v37 = vadd.f32 %v4853_v36, %v4774_v16  ;;  %v4855_v38 = vpop.f32.mrb[43].mxu0 }
0x1857   : > { %v4856_v12 = vadd.f32 %v4855_v38, %v4778_v10 }
0x1858   : > { %v5508_v39 = vmul.f32 -1.702, %v4854_v37 }
0x1859   : > { %v5509_v40 = vmul.f32 -1.702, %v4856_v12  ;;  %v4859_v41 = vpop.f32.mrb[44].mxu0 }
0x185a   : > { %v4872_v42 = vmul.f32 1.442695, %v5508_v39  ;;  %v4860_v43 = vadd.f32 %v4859_v41, %v4774_v16  ;;  %v4861_v45 = vpop.f32.mrb[45].mxu0 }
0x185b   : > { %v4874_v46 = vmul.f32 1.442695, %v5509_v40  ;;  %v4862_v47 = vadd.f32 %v4861_v45, %v4778_v10 }
0x185c   : > { %6200 = vpow2.f32 %v4872_v42  ;;  %v5510_v48 = vmul.f32 -1.702, %v4860_v43 }
0x185d   : > { %6202 = vpow2.f32 %v4874_v46  ;;  %v5511_v49 = vmul.f32 -1.702, %v4862_v47 }
0x185e   : > { %v4876_v4 = vmul.f32 1.442695, %v5510_v48 }
0x185f   : > { %v4878_v52 = vmul.f32 1.442695, %v5511_v49 }
0x1860   : > { %6204 = vpow2.f32 %v4876_v4 }
0x1861   : > { %6206 = vpow2.f32 %v4878_v52 }
0x1866   : > { %v6201_v3 = vpop.eup %6200 }
0x1867   : > { %v6203_v6 = vpop.eup %6202  ;;  %v4880_v53 = vadd.f32 1.0, %v6201_v3 }
0x1868   : > { %v4881_v44 = vadd.f32 1.0, %v6203_v6 }
0x1869   : > { %6208 = vrcp.f32 %v4880_v53 }
0x186a   : > { %v6205_v54 = vpop.eup %6204  ;;  %6210 = vrcp.f32 %v4881_v44 }
0x186b   : > { %v6207_v55 = vpop.eup %6206  ;;  %v4882_v56 = vadd.f32 1.0, %v6205_v54 }
0x186c   : > { %v4883_v57 = vadd.f32 1.0, %v6207_v55 }
0x186d   : > { %6212 = vrcp.f32 %v4882_v56 }
0x186e   : > { %6214 = vrcp.f32 %v4883_v57 }
0x1873   : > { %v6209_v58 = vpop.eup %6208 }
0x1874   : > { %v6211_v59 = vpop.eup %6210  ;;  %v4892_v14 = vmul.f32 %v6209_v58, %v4854_v37 }
0x1875   : > { %v4893_v60 = vmul.f32 %v6211_v59, %v4856_v12 }
0x1877   : > { %v6213_v61 = vpop.eup %6212  ;;  %4999 = vmatprep.mubr.f32.mxu1 %v4893_v60 }
0x1878   : > { %v6215_v62 = vpop.eup %6214  ;;  %5000 = vmatmul.mubr.f32.vlgmr.msra.gmra.mrb[28].mxu1 %v4892_v14  ;;  %v4894_v0 = vmul.f32 %v6213_v61, %v4860_v43 }
0x1879   : > { %v4895_v63 = vmul.f32 %v6215_v62, %v4862_v47 }
0x187b   : > { %5004 = vmatprep.mubr.f32.mxu1 %v4895_v63 }
0x187c   : > { %5005 = vmatmul.mubr.f32.gmra.mrb[30].mxu1 %v4894_v0 }
0x194b   : > { %v5668_v1 = vpop.f32.mrb[28].mxu1 }
0x194c   : > { %v5669_v5 = vpop.f32.mrb[29].mxu1 }
0x194d   : > { %v5670_v7 = vadd.f32 %v5669_v5, %v5668_v1 }
0x194f   : > { %v5002_v8 = vadd.f32 %v5670_v7, %v5512_v2  ;;  %v5671_v9 = vpop.f32.mrb[30].mxu1 }
0x1950   : > { %v5672_v11 = vpop.f32.mrb[31].mxu1 }
0x1951   : > { %v5010_v13 = vadd.f32 %v5002_v8, %v7000_v51  ;;  %v5673_v15 = vadd.f32 %v5672_v11, %v5671_v9  ;;  %5017 = sbr.rel (%p5513_p6) target bundleno = 6490 (0x195a), region = 124 }
0x1953   : > { %5012 = vst.msk [vmem:[#allocation2] sm:$0xff] %vm1174_vm1, %v5010_v13  ;;  %v5007_v17 = vadd.f32 %v5673_v15, %v5512_v2  ;;  %v5020_v22 = vadd.f32 (!%p5513_p6), %v5018_v19, %v5010_v13 }
0x1955   : > { %v5011_v18 = vadd.f32 %v5007_v17, %v6998_v50  ;;  %5022 = vst.msk [vmem:[#allocation3] sm:$0xff] (!%p5513_p6), %vm1174_vm1, %v5020_v22 }
0x1957   : > { %5013 = vst.msk [vmem:[#allocation2 + $0x8] sm:$0xff] %vm1174_vm1, %v5011_v18  ;;  %v5021_v24 = vadd.f32 (!%p5513_p6), %v5019_v20, %v5011_v18 }
0x1959   : > { %5023 = vst.msk [vmem:[#allocation3 + $0x8] sm:$0xff] %vm1174_vm1, %v5021_v24 }
0x195a PF: > { %p5514_p7 = scmp.ne.s32.totalorder %s6296_s29, 1 }
0x195b   : > { %v5030_v51 = vsel (!%p5514_p7), %vm1174_vm1, %v5010_v13, 0.0  ;;  %v5033_v50 = vsel (!%p5514_p7), %vm1174_vm1, %v5011_v18, 0.0  ;;  %v5080_v33 = vld [vmem:[%s7212_s22] sm:$0xff] (!%p5514_p7)  ;;  %v5081_v34 = vld [vmem:[%s7212_s22 + $0x8] sm:$0xff] (!%p5514_p7)  ;;  %v5082_v35 = vld [vmem:[%s7212_s22 + $0x10] sm:$0xff] (!%p5514_p7)  ;;  %s7262_s11 = sld [smem:[#allocation25_spill]] (!%p5514_p7) }
0x195c   : > { %5027 = sbr.rel (%p5514_p7) target bundleno = 7028 (0x1b74), region = 128  ;;  %5031 = vadd.xlane.f32.xlu0 (!%p5514_p7), %v5030_v51  ;;  %v6034_v16 = vpack.c.bf16 (!%p5514_p7), %v5081_v34, %v5080_v33  ;;  %v5083_v10 = vld [vmem:[%s7212_s22 + $0x18] sm:$0xff] (!%p5514_p7)  ;;  %v5084_v37 = vld [vmem:[%s7212_s22 + $0x20] sm:$0xff] (!%p5514_p7)  ;;  %v5085_v38 = vld [vmem:[%s7212_s22 + $0x28] sm:$0xff] (!%p5514_p7)  ;;  %s7263_s0 = sld [smem:[#allocation26_spill]] (!%p5514_p7) }
0x195d   : > { %v6038_v36 = vpack.c.bf16 (!%p5514_p7), %v5083_v10, %v5082_v35  ;;  %v6042_v12 = vpack.c.bf16 (!%p5514_p7), %v5085_v38, %v5084_v37  ;;  %v5086_v39 = vld [vmem:[%s7212_s22 + $0x30] sm:$0xff] (!%p5514_p7)  ;;  %v5087_v40 = vld [vmem:[%s7212_s22 + $0x38] sm:$0xff] (!%p5514_p7)  ;;  %s7264_s24 = sld [smem:[#allocation27_spill]] (!%p5514_p7) }
0x195e   : > { %6035 = vmatprep.subr.bf16.mxu0 (!%p5514_p7), %v6034_v16  ;;  %v6046_v41 = vpack.c.bf16 (!%p5514_p7), %v5087_v40, %v5086_v39  ;;  %v5072_v44 = vld [vmem:[#allocation3] sm:$0xff] (!%p5514_p7) }
0x195f   : > { %6037 = vmatpush3.bf16.msra.mxu0 (!%p5514_p7), %v6034_v16 }
0x1960   : > { %5034 = vadd.xlane.f32.xlu0 (!%p5514_p7), %v5033_v50  ;;  %6039 = vmatprep.subr.bf16.mxu0 (!%p5514_p7), %v6038_v36  ;;  %v5073_v58 = vld [vmem:[#allocation3 + $0x8] sm:$0xff] (!%p5514_p7) }
0x1961   : > { %v5515_v4 = vld [vmem:[%s7262_s11] ss:$0 sm:$0xff] (!%p5514_p7) }
0x1962   : > { %v5516_v3 = vld [vmem:[%s7263_s0] ss:$0 sm:$0xff] (!%p5514_p7) }
0x1963   : > { %6041 = vmatpush3.bf16.msra.mxu0 %v6038_v36  ;;  %v5517_v62 = vld [vmem:[%s7264_s24] ss:$0 sm:$0xff] }
0x1964   : > { %6043 = vmatprep.subr.bf16.mxu0 %v6042_v12 }
0x1967   : > { %6045 = vmatpush3.bf16.msra.mxu0 %v6042_v12 }
0x1968   : > { %6047 = vmatprep.subr.bf16.mxu0 %v6046_v41 }
0x196b   : > { %6049 = vmatpush3.bf16.msra.mxu0 %v6046_v41 }
0x19e9   : > { %v5032_v25 = vpop.xlane.xlu0 %5031 }
0x19ea   : > { %v5036_v21 = vmul.f32 0.015625, %v5032_v25 }
0x19ec   : > { %v5038_v26 = vsub.f32 %v5010_v13, %v5036_v21 }
0x19ed   : > { %v5035_v27 = vpop.xlane.xlu0 %5034 }
0x19ee   : > { %v5037_v29 = vmul.f32 0.015625, %v5035_v27  ;;  %v5040_v28 = vmul.f32 %v5038_v26, %v5038_v26 }
0x19f0   : > { %v5039_v23 = vsub.f32 %v5011_v18, %v5037_v29  ;;  %v5042_v30 = vsel %vm1174_vm1, %v5040_v28, 0.0 }
0x19f1   : > { %5043 = vadd.xlane.f32.xlu1 %v5042_v30 }
0x19f2   : > { %v5041_v31 = vmul.f32 %v5039_v23, %v5039_v23 }
0x19f4   : > { %v5045_v32 = vsel %vm1174_vm1, %v5041_v31, 0.0 }
0x19f5   : > { %5046 = vadd.xlane.f32.xlu1 %v5045_v32 }
0x1a7e   : > { %v5044_v42 = vpop.xlane.xlu1 %5043 }
0x1a7f   : > { %v5048_v43 = vmul.f32 0.015625, %v5044_v42 }
0x1a81   : > { %v5050_v45 = vadd.f32 1e-05, %v5048_v43 }
0x1a82   : > { %v5047_v46 = vpop.xlane.xlu1 %5046 }
0x1a83   : > { %6218 = vrsqrt.f32 %v5050_v45  ;;  %v5049_v47 = vmul.f32 0.015625, %v5047_v46 }
0x1a85   : > { %v5051_v48 = vadd.f32 1e-05, %v5049_v47 }
0x1a87   : > { %6220 = vrsqrt.f32 %v5051_v48 }
0x1a8d   : > { %v6219_v49 = vpop.eup %6218 }
0x1a8e   : > { %v5054_v52 = vmul.f32 %v6219_v49, %v5038_v26 }
0x1a90   : > { %v5062_v6 = vmul.f32 %v5515_v4, %v5054_v52 }
0x1a91   : > { %v6221_v53 = vpop.eup %6220 }
0x1a92   : > { %v5055_v54 = vmul.f32 %v6221_v53, %v5039_v23  ;;  %v5070_v55 = vadd.f32 %v5516_v3, %v5062_v6 }
0x1a94   : > { %v5063_v56 = vmul.f32 %v5515_v4, %v5055_v54  ;;  %v5074_v57 = vadd.f32 %v5072_v44, %v5070_v55 }
0x1a96   : > { %v5071_v59 = vadd.f32 %v5516_v3, %v5063_v56  ;;  %v5076_v60 = vmul.f32 0.5, %v5074_v57 }
0x1a98   : > { %5078 = vst.msk [vmem:[#allocation4] sm:$0xff] %vm1174_vm1, %v5076_v60  ;;  %5935 = vmatprep.mubr.msk.f32.mxu0 %vm1174_vm1, %v5076_v60  ;;  %v5075_v14 = vadd.f32 %v5073_v58, %v5071_v59 }
0x1a9a   : > { %v5077_v61 = vmul.f32 0.5, %v5075_v14 }
0x1a9c   : > { %5079 = vst.msk [vmem:[#allocation4 + $0x8] sm:$0xff] %vm1174_vm1, %v5077_v61  ;;  %5936 = vmatmul.mubr.msk.f32.vlgmr.msra.gmra.mrb[0].mxu0 %vm1174_vm1, %v5077_v61 }
0x1b6f   : > { %v5937_v63 = vpop.f32.mrb[0].mxu0 }
0x1b70   : > { %v5173_v0 = vadd.f32 %v5937_v63, %v5517_v62  ;;  %v5167_v1 = vpop.f32.mrb[1].mxu0 }
0x1b71   : > { %v5168_v2 = vadd.f32 %v5517_v62, %v5167_v1 }
0x1b72   : > { %5177 = vst [vmem:[#allocation6 + $0x8] sm:$0xff] %v5173_v0 }
0x1b73   : > { %5176 = vst [vmem:[#allocation6] sm:$0xff] %v5168_v2 }
0x1b74 PF: > { %s7265_s6 = sld [smem:[#allocation11_spill]]  ;;  %s6325_s25 = smov [#allocation4]  }
0x1b75   : > { %s5187_s28 = sshll.u32 %s6325_s25, 4  ;;  %s6326_s10 = smov [#allocation6]   ;;  %s5188_s28 = int_to_ptr.vmem [resolvable:$true] %s5187_s28 }
0x1b76   : > { %s5203_s20 = sshll.u32 %s6326_s10, 4  ;;  %s6222_s4 = scalar_lea.vmem %s5188_s28, 256  ;;  %s5204_s20 = int_to_ptr.vmem [resolvable:$true] %s5203_s20 }
0x1b77   : > { %p6223_p9 = scmp.ne.s32.totalorder %s5188_s28, %s6222_s4  ;;  %p6229_p12 = scmp.lt.s32.totalorder %s5188_s28, %s5188_s28 }
0x1b78   : > { %p6230_p13 = scmp.lt.s32.totalorder %s6222_s4, %s6222_s4 }
0x1b7a   : > { %s7266_s27 = sadd.s32 4294967295, %s7265_s6   ;;  %p6231_p0 = por %p6230_p13, %p6229_p12 }
0x1b7b   : > { %p7131_p8 = scmp.eq.s32.totalorder %s7266_s27, 1 }
0x1b7d   : > { %p6224_p10 = pnand %p6223_p9, %p7131_p8 }
0x1b7f   : > { %p6225_p11 = pneg %p6224_p10 }
0x1b81   : > { %p6232_p1 = pnand %p6231_p0, %p6225_p11 }
0x1b83   : > { %6235 = shalt.err (!%p6232_p1)
}
0x1b84   : > { %s7268_s8 = sld [smem:[#allocation28_spill]] }
0x1b8a   : > { %s6236_s5 = scalar_lea.hbm %s7268_s8, 256 }
0x1b8b   : > { %p6237_p2 = scmp.ne.s32.totalorder %s7268_s8, %s6236_s5  ;;  %p6242_p5 = scmp.lt.u32.totalorder %s6236_s5, %s7268_s8 }
0x1b8d   : > { %p6238_p3 = pnand %p6237_p2, %p7131_p8 }
0x1b8f   : > { %p6239_p4 = pneg %p6238_p3 }
0x1b91   : > { %p6244_p6 = pnand %p6242_p5, %p6239_p4 }
0x1b93   : > { %6247 = shalt.err (!%p6244_p6)
}
0x1b94   : > { %s6327_s1 = smov 128   ;;  %s6248_s6 = scalar_lea.vmem %s5204_s20, 256 }
0x1b95   : > { %6065 = dma.vmem_to_hbm [thread:$0]  (%p7131_p8), %s5188_s28, 256, %s7268_s8, [#allocation5], %s6327_s1, %s6327_s1, %s6323_s23  }
0x1b96   : > { %p6249_p7 = scmp.ne.s32.totalorder %s5204_s20, %s6248_s6  ;;  %p6255_p11 = scmp.lt.s32.totalorder %s5204_s20, %s5204_s20 }
0x1b97   : > { %p6256_p12 = scmp.lt.s32.totalorder %s6248_s6, %s6248_s6 }
0x1b98   : > { %p6250_p9 = pnand %p6249_p7, %p7131_p8 }
0x1b99   : > { %p6257_p13 = por %p6256_p12, %p6255_p11 }
0x1b9a   : > { %p6251_p10 = pneg %p6250_p9 }
0x1b9c   : > { %p6258_p0 = pnand %p6257_p13, %p6251_p10 }
0x1b9e   : > { %6261 = shalt.err (!%p6258_p0)
}
0x1b9f   : > { %s7269_s10 = sld [smem:[#allocation29_spill]] }
0x1ba5   : > { %s6262_s4 = scalar_lea.hbm %s7269_s10, 256 }
0x1ba6   : > { %p6263_p1 = scmp.ne.s32.totalorder %s7269_s10, %s6262_s4  ;;  %p6268_p4 = scmp.lt.u32.totalorder %s6262_s4, %s7269_s10 }
0x1ba8   : > { %p6264_p2 = pnand %p6263_p1, %p7131_p8 }
0x1baa   : > { %p6265_p3 = pneg %p6264_p2 }
0x1bac   : > { %p6270_p5 = pnand %p6268_p4, %p6265_p3 }
0x1bae   : > { %6273 = shalt.err (!%p6270_p5)
}
0x1baf   : > { %6067 = dma.vmem_to_hbm [thread:$0]  (%p7131_p8), %s5204_s20, 256, %s7269_s10, [#allocation7], %s6327_s1, %s6327_s1, %s6323_s23  }
0x1bb0   : > { %6287 = dma.done.wait (%p7131_p8), [#allocation5], 256  }
0x1bb1   : > { %6289 = vsyncadd (%p7131_p8), [#allocation5], 4294967040 }
0x1bb2   : > { %6291 = dma.done.wait (%p7131_p8), [#allocation7], 256  }
0x1bb3   : > { %6293 = vsyncadd (%p7131_p8), [#allocation7], 4294967040 }
0x1bb4 PF: > { %s7270_s3 = sld [smem:[#allocation11_spill]]  ;;  %s7271_s29 = sld [smem:[#allocation10_spill]] }
0x1bb5   : > { %s7272_s2 = sld [smem:[#allocation12_spill]] }
0x1bba   : > { %s38_s6 = sadd.s32 1, %s7270_s3  }
0x1bbb   : > { %p35_p6 = scmp.ge.s32.totalorder %s38_s6, 4  }
0x1bbd   :  { %37 = sbr.rel (!%p35_p6) target bundleno = 21 (0x15), region = 204 }
0x1bc4   :  { %5223 = vsyncpa [#allocation5], 1 }
0x1bc5   :  { %5225 = vsyncpa [#allocation5 + $0x1], 1 }
0x1bc6   :  { %5226 = vsyncpa [#allocation7], 1 }

</bundles_post_ra>
